<compile_context>
chip_gen: v7x
topology: tpu7x:2x2x1
jax: 0.10.0
libtpu: 0.0.40
codegen_flags: <defaults>
</compile_context>

<pallas_src>
import functools

import jax
import jax.numpy as jnp
from jax.experimental import pallas as pl
from jax.experimental.pallas import tpu as pltpu


# ---------------- fused SimSPPF kernel ----------------

def _sim_sppf_kernel(x_ref, w1_ref, b1_ref, w2_ref, b2_ref, o_ref, pbuf_ref,
                     *, H, W, p, co):
    """One (batch element, hidden-channel group) grid step.

    x_ref : (H*W, Cin)     bf16  input, channels-last, flattened spatial
    w1_ref: (Cin, tc)      bf16  conv1 weights (BN1 scale folded), this group
    b1_ref: (1, tc)        f32   conv1 folded bias, this group
    w2_ref: (4, tc, Cout)  bf16  conv2 weights split over the 4 concat branches
    b2_ref: (1, Cout)      f32   conv2 folded bias
    o_ref : (H*W, Cout)    f32   output block == conv2 accumulator (VMEM-resident
                                 across the hidden-channel-group reduction axis)
    pbuf_ref: (H+2p, Wp, tc) f32 zero-framed scratch for shifted-window pooling;
                                 interior lives at rows [p, p+H), cols [co, co+W)
    """
    HW = H * W
    tc = pbuf_ref.shape[-1]
    g = pl.program_id(1)

    @pl.when(g == 0)
    def _init():
        # Output block doubles as the f32 conv2 accumulator across groups.
        o_ref[...] = jnp.zeros_like(o_ref)
        # Zero the pool scratch once per batch element.  The pad frame is never
        # written afterwards (only the interior is), so zero-once is enough.
        pbuf_ref[...] = jnp.zeros_like(pbuf_ref)

    # ---- pw1: 1x1 conv (BN1 scale folded into w1) + bias + ReLU ----
    h = jnp.dot(x_ref[...], w1_ref[...], preferred_element_type=jnp.float32)
    h = jnp.maximum(h + b1_ref[...], 0.0)                 # (HW, tc) f32, >= 0

    # ---- SPPF max pool (k x k, stride 1, pad p=k//2), separable: W-pass, H-pass.
    # Zero padding is equivalent to -inf padding ONLY because all pooled values
    # are post-ReLU (>= 0); this silently breaks for non-ReLU SPPF variants.
    def pool(v):                                          # (HW, tc) -> (HW, tc)
        v3 = v.reshape(H, W, tc)
        pbuf_ref[pl.ds(p, H), pl.ds(co, W), :] = v3       # aligned interior store
        res = v3
        for s in range(-p, p + 1):                        # W-direction pass
            if s == 0:
                continue
            res = jnp.maximum(res, pbuf_ref[pl.ds(p, H), pl.ds(co + s, W), :])
        pbuf_ref[pl.ds(p, H), pl.ds(co, W), :] = res
        out = res
        for s in range(-p, p + 1):                        # H-direction pass
            if s == 0:
                continue
            out = jnp.maximum(out, pbuf_ref[pl.ds(p + s, H), pl.ds(co, W), :])
        return out.reshape(HW, tc)

    # ---- pw2: the 4-branch concat is never materialized; w2 is split per branch
    # and each bf16 partial product accumulates into the resident f32 output
    # block.  Interleaving the dots with the pool chain overlaps MXU and
    # VPU/load/store work and keeps only one pooled activation live at a time.
    o_ref[...] += jnp.dot(h.astype(jnp.bfloat16), w2_ref[0],
                          preferred_element_type=jnp.float32)
    o1 = pool(h)
    o_ref[...] += jnp.dot(o1.astype(jnp.bfloat16), w2_ref[1],
                          preferred_element_type=jnp.float32)
    o2 = pool(o1)
    o_ref[...] += jnp.dot(o2.astype(jnp.bfloat16), w2_ref[2],
                          preferred_element_type=jnp.float32)
    o3 = pool(o2)
    o_ref[...] += jnp.dot(o3.astype(jnp.bfloat16), w2_ref[3],
                          preferred_element_type=jnp.float32)

    @pl.when(g == pl.num_programs(1) - 1)
    def _finalize():
        o_ref[...] = jnp.maximum(o_ref[...] + b2_ref[...], 0.0)


# ---------------- wrapper ----------------

def _round_up(x, m):
    return (x + m - 1) // m * m


def _choose_channel_tile(hidden, cap=512):
    """Largest hidden-channel tile <= cap that divides `hidden` and keeps the
    (8,128) block-layout rule (multiple of 128, or the full dimension)."""
    if hidden <= cap:
        return hidden
    t = (cap // 128) * 128
    while t >= 128:
        if hidden % t == 0:
            return t
        t -= 128
    # Fallback: single group.  For a very large, oddly-sized `hidden` this may
    # exceed the VMEM budget; pass channel_tile explicitly in that case.
    return hidden


def _vmem_limit_bytes():
    # ~3/4 of physical per-core VMEM, capped at 100 MiB: keeps the pipeline
    # double-buffered on v7x (64 MiB physical) while letting v5e/v6e (128 MiB)
    # use larger resident blocks.
    try:
        cap = int(pltpu.get_tpu_info().vmem_capacity_bytes)
    except Exception:
        cap = 64 * 1024 * 1024
    return max(32 * 1024 * 1024, min(cap * 3 // 4, 100 * 1024 * 1024))


@functools.partial(jax.jit, static_argnames=("pool_size", "channel_tile"))
def sim_sppf_block(x_nchw, params, *, pool_size=5, channel_tile=None):
    """Forward pass of SimSPPFBlock (mode='max'), NCHW in / NCHW out."""
    n, cin, h, w = x_nchw.shape
    w1 = params["w1"]                     # (Cin, hidden)
    w2 = params["w2"]                     # (4*hidden, Cout)
    hidden = w1.shape[1]
    cout = w2.shape[1]
    assert w1.shape[0] == cin and w2.shape[0] == 4 * hidden
    hw = h * w
    p = pool_size // 2

    # Fold BN scales into the conv weights (bf16 for the MXU); biases stay f32.
    w1f = (w1 * params["scale1"][None, :]).astype(jnp.bfloat16)
    w2f = (w2 * params["scale2"][None, :]).astype(jnp.bfloat16).reshape(4, hidden, cout)
    b1 = params["bias1"].reshape(1, hidden).astype(jnp.float32)
    b2 = params["bias2"].reshape(1, cout).astype(jnp.float32)

    tc = channel_tile if channel_tile is not None else _choose_channel_tile(hidden)
    assert hidden % tc == 0
    n_groups = hidden // tc

    # Zero-framed pooling buffer geometry: interior columns start at a
    # sublane-aligned offset so the interior stores are aligned.
    hp = h + 2 * p
    co = _round_up(p, 8)
    wp = _round_up(co + w + p, 8)

    # Single NCHW -> channels-last transpose at entry (and one back at exit).
    # TODO(synk): if the surrounding graph is already channels-last, feed NHWC
    # directly and drop these two extra HBM round-trips.
    x2d = jnp.transpose(x_nchw, (0, 2, 3, 1)).reshape(n, hw, cin).astype(jnp.bfloat16)

    flops = 2 * n * hw * (cin * hidden + 4 * hidden * cout)
    bytes_accessed = (n * hw * cin * 2          # x (bf16)
                      + cin * hidden * 2        # w1 (bf16)
                      + 4 * hidden * cout * 2   # w2 (bf16)
                      + (hidden + cout) * 4     # biases (f32)
                      + n * hw * cout * 4)      # out (f32)

    kernel = functools.partial(_sim_sppf_kernel, H=h, W=w, p=p, co=co)
    out2d = pl.pallas_call(
        kernel,
        out_shape=jax.ShapeDtypeStruct((n, hw, cout), jnp.float32),
        grid_spec=pltpu.PrefetchScalarGridSpec(
            num_scalar_prefetch=0,
            grid=(n, n_groups),
            in_specs=[
                pl.BlockSpec((None, hw, cin), lambda b, g: (b, 0, 0)),   # x
                pl.BlockSpec((cin, tc), lambda b, g: (0, g)),            # w1 group
                pl.BlockSpec((1, tc), lambda b, g: (0, g)),              # b1 group
                pl.BlockSpec((4, tc, cout), lambda b, g: (0, g, 0)),     # w2 group
                pl.BlockSpec((1, cout), lambda b, g: (0, 0)),            # b2
            ],
            out_specs=pl.BlockSpec((None, hw, cout), lambda b, g: (b, 0, 0)),
            scratch_shapes=[
                pltpu.VMEM((hp, wp, tc), jnp.float32),   # zero-framed pool buffer
            ],
        ),
        compiler_params=pltpu.CompilerParams(
            dimension_semantics=("parallel", "arbitrary"),
            vmem_limit_bytes=_vmem_limit_bytes(),
        ),
        cost_estimate=pl.CostEstimate(flops=flops, transcendentals=0,
                                      bytes_accessed=bytes_accessed),
    )(x2d, w1f, b1, w2f, b2)

    return jnp.transpose(out2d.reshape(n, h, w, cout), (0, 3, 1, 2))


# ---------------- parameters (Conv2d bias=False + folded eval-mode BN) ----------------

def _fold_bn(gamma, beta, mean, var, eps=1e-5):
    scale = gamma / jnp.sqrt(var + eps)
    bias = beta - mean * scale
    return scale, bias


def make_sim_sppf_params(key, in_channels, out_channels):
    hidden = in_channels // 2
    ks = jax.random.split(key, 10)
    # pw1: Conv2d(in, hidden, 1, bias=False) + BN(hidden)
    w1 = jax.random.normal(ks[0], (in_channels, hidden), jnp.float32) * 0.3
    g1 = 1.0 + 0.1 * jax.random.normal(ks[1], (hidden,), jnp.float32)
    b1 = 0.1 * jax.random.normal(ks[2], (hidden,), jnp.float32)
    m1 = 0.1 * jax.random.normal(ks[3], (hidden,), jnp.float32)
    v1 = 0.5 + jnp.abs(jax.random.normal(ks[4], (hidden,), jnp.float32)) * 0.5
    # pw2: Conv2d(4*hidden, out, 1, bias=False) + BN(out)
    w2 = jax.random.normal(ks[5], (4 * hidden, out_channels), jnp.float32) * 0.3
    g2 = 1.0 + 0.1 * jax.random.normal(ks[6], (out_channels,), jnp.float32)
    b2 = 0.1 * jax.random.normal(ks[7], (out_channels,), jnp.float32)
    m2 = 0.1 * jax.random.normal(ks[8], (out_channels,), jnp.float32)
    v2 = 0.5 + jnp.abs(jax.random.normal(ks[9], (out_channels,), jnp.float32)) * 0.5
    s1, bi1 = _fold_bn(g1, b1, m1, v1)
    s2, bi2 = _fold_bn(g2, b2, m2, v2)
    return {"w1": w1, "scale1": s1, "bias1": bi1,
            "w2": w2, "scale2": s2, "bias2": bi2}


# ---------------- pure-JAX reference for verification ----------------

def _reference_sim_sppf(x_nchw, params, pool_size):
    p = pool_size // 2
    hp = jax.lax.Precision.HIGHEST
    x = jnp.transpose(x_nchw, (0, 2, 3, 1))
    h = jnp.einsum("nhwc,cd->nhwd", x, params["w1"], precision=hp)
    h = jax.nn.relu(h * params["scale1"] + params["bias1"])

    def mp(t):
        return jax.lax.reduce_window(
            t, -jnp.inf, jax.lax.max,
            window_dimensions=(1, pool_size, pool_size, 1),
            window_strides=(1, 1, 1, 1),
            padding=((0, 0), (p, p), (p, p), (0, 0)))

    o1 = mp(h)
    o2 = mp(o1)
    o3 = mp(o2)
    cat = jnp.concatenate([h, o1, o2, o3], axis=-1)
    y = jnp.einsum("nhwc,cd->nhwd", cat, params["w2"], precision=hp)
    y = jax.nn.relu(y * params["scale2"] + params["bias2"])
    return jnp.transpose(y, (0, 3, 1, 2))


if __name__ == "__main__":
    key = jax.random.PRNGKey(0)
    k_x, k_p = jax.random.split(key)

    N, C_IN, C_OUT, H, W = 2, 4, 8, 16, 16
    x = jax.random.normal(k_x, (N, C_IN, H, W), jnp.float32)
    params = make_sim_sppf_params(k_p, C_IN, C_OUT)

    out = sim_sppf_block(x, params, pool_size=5)
    jax.block_until_ready(out)
    assert out.shape == (N, C_OUT, H, W), out.shape

    ref = _reference_sim_sppf(x, params, 5)
    # bf16 MXU matmuls with f32 accumulation vs. an all-f32 HIGHEST reference.
    assert jnp.allclose(out, ref, rtol=3e-2, atol=3e-2), float(
        jnp.max(jnp.abs(out - ref)))

    print("KERNEL_OK")
</pallas_src>

<mosaic_0001>
module attributes {stable_mosaic.version = 11 : i64} {
  func.func @_sim_sppf_kernel(%arg0: i32, %arg1: i32, %arg2: memref<1x256x4xbf16, #tpu.memory_space<vmem>>, %arg3: memref<4x2xbf16, #tpu.memory_space<vmem>>, %arg4: memref<1x2xf32, #tpu.memory_space<vmem>>, %arg5: memref<4x2x8xbf16, #tpu.memory_space<vmem>>, %arg6: memref<1x8xf32, #tpu.memory_space<vmem>>, %arg7: memref<1x256x8xf32, #tpu.memory_space<vmem>>, %arg8: memref<20x32x2xf32, #tpu.memory_space<vmem>>) attributes {dimension_semantics = [#tpu.dimension_semantics<parallel>, #tpu.dimension_semantics<arbitrary>], iteration_bounds = array<i64: 2, 1>, scalar_prefetch = 0 : i64, scratch_operands = 1 : i64, tpu.core_type = #tpu.core_type<tc>, window_params = [{transform_indices = @transform_0, window_bounds = array<i64: 1, 256, 4>}, {transform_indices = @transform_1, window_bounds = array<i64: 4, 2>}, {transform_indices = @transform_2, window_bounds = array<i64: 1, 2>}, {transform_indices = @transform_3, window_bounds = array<i64: 4, 2, 8>}, {pipeline_mode = #tpu.pipeline_mode<synchronous>, transform_indices = @transform_4, window_bounds = array<i64: 1, 8>}, {transform_indices = @transform_5, window_bounds = array<i64: 1, 256, 8>}]} {
    %c0_i32 = arith.constant 0 : i32
    %0 = arith.cmpi eq, %arg1, %c0_i32 : i32
    %1 = arith.extui %0 : i1 to i32
    %c0_i32_0 = arith.constant 0 : i32
    %2 = arith.cmpi ne, %1, %c0_i32_0 : i32
    scf.if %2 {
      %cst_131 = arith.constant 0.000000e+00 : f32
      %115 = vector.broadcast %cst_131 : f32 to vector<256x8xf32>
      %c0_132 = arith.constant 0 : index
      %c0_133 = arith.constant 0 : index
      %c0_134 = arith.constant 0 : index
      %116 = vector.load %arg7[%c0_132, %c0_133, %c0_134] : memref<1x256x8xf32, #tpu.memory_space<vmem>>, vector<1x256x8xf32>
      %117 = vector.shape_cast %116 : vector<1x256x8xf32> to vector<256x8xf32>
      %118 = vector.shape_cast %115 : vector<256x8xf32> to vector<1x256x8xf32>
      tpu.vector_store %arg7[%c0_132, %c0_133, %c0_134], %118 {strides = array<i32>} : memref<1x256x8xf32, #tpu.memory_space<vmem>>, vector<1x256x8xf32>,
      %cst_135 = arith.constant 0.000000e+00 : f32
      %119 = vector.broadcast %cst_135 : f32 to vector<20x32x2xf32>
      %c0_136 = arith.constant 0 : index
      %c0_137 = arith.constant 0 : index
      %c0_138 = arith.constant 0 : index
      %120 = vector.load %arg8[%c0_136, %c0_137, %c0_138] : memref<20x32x2xf32, #tpu.memory_space<vmem>>, vector<20x32x2xf32>
      tpu.vector_store %arg8[%c0_136, %c0_137, %c0_138], %119 {strides = array<i32>} : memref<20x32x2xf32, #tpu.memory_space<vmem>>, vector<20x32x2xf32>,
    } else {
    }
    %c0 = arith.constant 0 : index
    %c0_1 = arith.constant 0 : index
    %c0_2 = arith.constant 0 : index
    %3 = vector.load %arg2[%c0, %c0_1, %c0_2] : memref<1x256x4xbf16, #tpu.memory_space<vmem>>, vector<1x256x4xbf16>
    %4 = vector.shape_cast %3 : vector<1x256x4xbf16> to vector<256x4xbf16>
    %c0_3 = arith.constant 0 : index
    %c0_4 = arith.constant 0 : index
    %5 = vector.load %arg3[%c0_3, %c0_4] : memref<4x2xbf16, #tpu.memory_space<vmem>>, vector<4x2xbf16>
    %cst = arith.constant dense<0.000000e+00> : vector<256x2xf32>
    %6 = tpu.matmul %4, %5, %cst {dimension_numbers = #tpu.dot_dimension_numbers<[1], [0], [0], [1], [0, 0, 1, 1], [], []>} : vector<256x4xbf16>, vector<4x2xbf16>, vector<256x2xf32> -> vector<256x2xf32>
    %c0_5 = arith.constant 0 : index
    %c0_6 = arith.constant 0 : index
    %7 = vector.load %arg4[%c0_5, %c0_6] : memref<1x2xf32, #tpu.memory_space<vmem>>, vector<1x2xf32>
    %8 = vector.broadcast %7 : vector<1x2xf32> to vector<256x2xf32>
    %9 = arith.addf %6, %8 : vector<256x2xf32>
    %cst_7 = arith.constant 0.000000e+00 : f32
    %10 = vector.broadcast %cst_7 : f32 to vector<256x2xf32>
    %11 = arith.maximumf %9, %10 : vector<256x2xf32>
    %c0_8 = arith.constant 0 : index
    %c0_9 = arith.constant 0 : index
    %c0_10 = arith.constant 0 : index
    %12 = vector.load %arg7[%c0_8, %c0_9, %c0_10] : memref<1x256x8xf32, #tpu.memory_space<vmem>>, vector<1x256x8xf32>
    %13 = vector.shape_cast %12 : vector<1x256x8xf32> to vector<256x8xf32>
    %14 = arith.truncf %11 : vector<256x2xf32> to vector<256x2xbf16>
    %c0_11 = arith.constant 0 : index
    %c0_12 = arith.constant 0 : index
    %c0_13 = arith.constant 0 : index
    %15 = vector.load %arg5[%c0_11, %c0_12, %c0_13] : memref<4x2x8xbf16, #tpu.memory_space<vmem>>, vector<1x2x8xbf16>
    %16 = vector.shape_cast %15 : vector<1x2x8xbf16> to vector<2x8xbf16>
    %cst_14 = arith.constant dense<0.000000e+00> : vector<256x8xf32>
    %17 = tpu.matmul %14, %16, %cst_14 {dimension_numbers = #tpu.dot_dimension_numbers<[1], [0], [0], [1], [0, 0, 1, 1], [], []>} : vector<256x2xbf16>, vector<2x8xbf16>, vector<256x8xf32> -> vector<256x8xf32>
    %18 = arith.addf %13, %17 : vector<256x8xf32>
    %c0_15 = arith.constant 0 : index
    %c0_16 = arith.constant 0 : index
    %c0_17 = arith.constant 0 : index
    %19 = vector.load %arg7[%c0_15, %c0_16, %c0_17] : memref<1x256x8xf32, #tpu.memory_space<vmem>>, vector<1x256x8xf32>
    %20 = vector.shape_cast %19 : vector<1x256x8xf32> to vector<256x8xf32>
    %21 = vector.shape_cast %18 : vector<256x8xf32> to vector<1x256x8xf32>
    tpu.vector_store %arg7[%c0_15, %c0_16, %c0_17], %21 {strides = array<i32>} : memref<1x256x8xf32, #tpu.memory_space<vmem>>, vector<1x256x8xf32>,
    %22 = vector.shape_cast %11 : vector<256x2xf32> to vector<16x16x2xf32>
    %c2 = arith.constant 2 : index
    %c8 = arith.constant 8 : index
    %c0_18 = arith.constant 0 : index
    %23 = vector.load %arg8[%c2, %c8, %c0_18] : memref<20x32x2xf32, #tpu.memory_space<vmem>>, vector<16x16x2xf32>
    tpu.vector_store %arg8[%c2, %c8, %c0_18], %22 {strides = array<i32>} : memref<20x32x2xf32, #tpu.memory_space<vmem>>, vector<16x16x2xf32>,
    %c2_19 = arith.constant 2 : index
    %c6 = arith.constant 6 : index
    %c0_20 = arith.constant 0 : index
    %24 = vector.load %arg8[%c2_19, %c6, %c0_20] : memref<20x32x2xf32, #tpu.memory_space<vmem>>, vector<16x16x2xf32>
    %25 = arith.maximumf %22, %24 : vector<16x16x2xf32>
    %c2_21 = arith.constant 2 : index
    %c7 = arith.constant 7 : index
    %c0_22 = arith.constant 0 : index
    %26 = vector.load %arg8[%c2_21, %c7, %c0_22] : memref<20x32x2xf32, #tpu.memory_space<vmem>>, vector<16x16x2xf32>
    %27 = arith.maximumf %25, %26 : vector<16x16x2xf32>
    %c2_23 = arith.constant 2 : index
    %c9 = arith.constant 9 : index
    %c0_24 = arith.constant 0 : index
    %28 = vector.load %arg8[%c2_23, %c9, %c0_24] : memref<20x32x2xf32, #tpu.memory_space<vmem>>, vector<16x16x2xf32>
    %29 = arith.maximumf %27, %28 : vector<16x16x2xf32>
    %c2_25 = arith.constant 2 : index
    %c10 = arith.constant 10 : index
    %c0_26 = arith.constant 0 : index
    %30 = vector.load %arg8[%c2_25, %c10, %c0_26] : memref<20x32x2xf32, #tpu.memory_space<vmem>>, vector<16x16x2xf32>
    %31 = arith.maximumf %29, %30 : vector<16x16x2xf32>
    %c2_27 = arith.constant 2 : index
    %c8_28 = arith.constant 8 : index
    %c0_29 = arith.constant 0 : index
    %32 = vector.load %arg8[%c2_27, %c8_28, %c0_29] : memref<20x32x2xf32, #tpu.memory_space<vmem>>, vector<16x16x2xf32>
    tpu.vector_store %arg8[%c2_27, %c8_28, %c0_29], %31 {strides = array<i32>} : memref<20x32x2xf32, #tpu.memory_space<vmem>>, vector<16x16x2xf32>,
    %c0_30 = arith.constant 0 : index
    %c8_31 = arith.constant 8 : index
    %c0_32 = arith.constant 0 : index
    %33 = vector.load %arg8[%c0_30, %c8_31, %c0_32] : memref<20x32x2xf32, #tpu.memory_space<vmem>>, vector<16x16x2xf32>
    %34 = arith.maximumf %31, %33 : vector<16x16x2xf32>
    %c1 = arith.constant 1 : index
    %c8_33 = arith.constant 8 : index
    %c0_34 = arith.constant 0 : index
    %35 = vector.load %arg8[%c1, %c8_33, %c0_34] : memref<20x32x2xf32, #tpu.memory_space<vmem>>, vector<16x16x2xf32>
    %36 = arith.maximumf %34, %35 : vector<16x16x2xf32>
    %c3 = arith.constant 3 : index
    %c8_35 = arith.constant 8 : index
    %c0_36 = arith.constant 0 : index
    %37 = vector.load %arg8[%c3, %c8_35, %c0_36] : memref<20x32x2xf32, #tpu.memory_space<vmem>>, vector<16x16x2xf32>
    %38 = arith.maximumf %36, %37 : vector<16x16x2xf32>
    %c4 = arith.constant 4 : index
    %c8_37 = arith.constant 8 : index
    %c0_38 = arith.constant 0 : index
    %39 = vector.load %arg8[%c4, %c8_37, %c0_38] : memref<20x32x2xf32, #tpu.memory_space<vmem>>, vector<16x16x2xf32>
    %40 = arith.maximumf %38, %39 : vector<16x16x2xf32>
    %41 = vector.shape_cast %40 : vector<16x16x2xf32> to vector<256x2xf32>
    %c0_39 = arith.constant 0 : index
    %c0_40 = arith.constant 0 : index
    %c0_41 = arith.constant 0 : index
    %42 = vector.load %arg7[%c0_39, %c0_40, %c0_41] : memref<1x256x8xf32, #tpu.memory_space<vmem>>, vector<1x256x8xf32>
    %43 = vector.shape_cast %42 : vector<1x256x8xf32> to vector<256x8xf32>
    %44 = arith.truncf %41 : vector<256x2xf32> to vector<256x2xbf16>
    %c1_42 = arith.constant 1 : index
    %c0_43 = arith.constant 0 : index
    %c0_44 = arith.constant 0 : index
    %45 = vector.load %arg5[%c1_42, %c0_43, %c0_44] : memref<4x2x8xbf16, #tpu.memory_space<vmem>>, vector<1x2x8xbf16>
    %46 = vector.shape_cast %45 : vector<1x2x8xbf16> to vector<2x8xbf16>
    %cst_45 = arith.constant dense<0.000000e+00> : vector<256x8xf32>
    %47 = tpu.matmul %44, %46, %cst_45 {dimension_numbers = #tpu.dot_dimension_numbers<[1], [0], [0], [1], [0, 0, 1, 1], [], []>} : vector<256x2xbf16>, vector<2x8xbf16>, vector<256x8xf32> -> vector<256x8xf32>
    %48 = arith.addf %43, %47 : vector<256x8xf32>
    %c0_46 = arith.constant 0 : index
    %c0_47 = arith.constant 0 : index
    %c0_48 = arith.constant 0 : index
    %49 = vector.load %arg7[%c0_46, %c0_47, %c0_48] : memref<1x256x8xf32, #tpu.memory_space<vmem>>, vector<1x256x8xf32>
    %50 = vector.shape_cast %49 : vector<1x256x8xf32> to vector<256x8xf32>
    %51 = vector.shape_cast %48 : vector<256x8xf32> to vector<1x256x8xf32>
    tpu.vector_store %arg7[%c0_46, %c0_47, %c0_48], %51 {strides = array<i32>} : memref<1x256x8xf32, #tpu.memory_space<vmem>>, vector<1x256x8xf32>,
    %52 = vector.shape_cast %41 : vector<256x2xf32> to vector<16x16x2xf32>
    %c2_49 = arith.constant 2 : index
    %c8_50 = arith.constant 8 : index
    %c0_51 = arith.constant 0 : index
    %53 = vector.load %arg8[%c2_49, %c8_50, %c0_51] : memref<20x32x2xf32, #tpu.memory_space<vmem>>, vector<16x16x2xf32>
    tpu.vector_store %arg8[%c2_49, %c8_50, %c0_51], %52 {strides = array<i32>} : memref<20x32x2xf32, #tpu.memory_space<vmem>>, vector<16x16x2xf32>,
    %c2_52 = arith.constant 2 : index
    %c6_53 = arith.constant 6 : index
    %c0_54 = arith.constant 0 : index
    %54 = vector.load %arg8[%c2_52, %c6_53, %c0_54] : memref<20x32x2xf32, #tpu.memory_space<vmem>>, vector<16x16x2xf32>
    %55 = arith.maximumf %52, %54 : vector<16x16x2xf32>
    %c2_55 = arith.constant 2 : index
    %c7_56 = arith.constant 7 : index
    %c0_57 = arith.constant 0 : index
    %56 = vector.load %arg8[%c2_55, %c7_56, %c0_57] : memref<20x32x2xf32, #tpu.memory_space<vmem>>, vector<16x16x2xf32>
    %57 = arith.maximumf %55, %56 : vector<16x16x2xf32>
    %c2_58 = arith.constant 2 : index
    %c9_59 = arith.constant 9 : index
    %c0_60 = arith.constant 0 : index
    %58 = vector.load %arg8[%c2_58, %c9_59, %c0_60] : memref<20x32x2xf32, #tpu.memory_space<vmem>>, vector<16x16x2xf32>
    %59 = arith.maximumf %57, %58 : vector<16x16x2xf32>
    %c2_61 = arith.constant 2 : index
    %c10_62 = arith.constant 10 : index
    %c0_63 = arith.constant 0 : index
    %60 = vector.load %arg8[%c2_61, %c10_62, %c0_63] : memref<20x32x2xf32, #tpu.memory_space<vmem>>, vector<16x16x2xf32>
    %61 = arith.maximumf %59, %60 : vector<16x16x2xf32>
    %c2_64 = arith.constant 2 : index
    %c8_65 = arith.constant 8 : index
    %c0_66 = arith.constant 0 : index
    %62 = vector.load %arg8[%c2_64, %c8_65, %c0_66] : memref<20x32x2xf32, #tpu.memory_space<vmem>>, vector<16x16x2xf32>
    tpu.vector_store %arg8[%c2_64, %c8_65, %c0_66], %61 {strides = array<i32>} : memref<20x32x2xf32, #tpu.memory_space<vmem>>, vector<16x16x2xf32>,
    %c0_67 = arith.constant 0 : index
    %c8_68 = arith.constant 8 : index
    %c0_69 = arith.constant 0 : index
    %63 = vector.load %arg8[%c0_67, %c8_68, %c0_69] : memref<20x32x2xf32, #tpu.memory_space<vmem>>, vector<16x16x2xf32>
    %64 = arith.maximumf %61, %63 : vector<16x16x2xf32>
    %c1_70 = arith.constant 1 : index
    %c8_71 = arith.constant 8 : index
    %c0_72 = arith.constant 0 : index
    %65 = vector.load %arg8[%c1_70, %c8_71, %c0_72] : memref<20x32x2xf32, #tpu.memory_space<vmem>>, vector<16x16x2xf32>
    %66 = arith.maximumf %64, %65 : vector<16x16x2xf32>
    %c3_73 = arith.constant 3 : index
    %c8_74 = arith.constant 8 : index
    %c0_75 = arith.constant 0 : index
    %67 = vector.load %arg8[%c3_73, %c8_74, %c0_75] : memref<20x32x2xf32, #tpu.memory_space<vmem>>, vector<16x16x2xf32>
    %68 = arith.maximumf %66, %67 : vector<16x16x2xf32>
    %c4_76 = arith.constant 4 : index
    %c8_77 = arith.constant 8 : index
    %c0_78 = arith.constant 0 : index
    %69 = vector.load %arg8[%c4_76, %c8_77, %c0_78] : memref<20x32x2xf32, #tpu.memory_space<vmem>>, vector<16x16x2xf32>
    %70 = arith.maximumf %68, %69 : vector<16x16x2xf32>
    %71 = vector.shape_cast %70 : vector<16x16x2xf32> to vector<256x2xf32>
    %c0_79 = arith.constant 0 : index
    %c0_80 = arith.constant 0 : index
    %c0_81 = arith.constant 0 : index
    %72 = vector.load %arg7[%c0_79, %c0_80, %c0_81] : memref<1x256x8xf32, #tpu.memory_space<vmem>>, vector<1x256x8xf32>
    %73 = vector.shape_cast %72 : vector<1x256x8xf32> to vector<256x8xf32>
    %74 = arith.truncf %71 : vector<256x2xf32> to vector<256x2xbf16>
    %c2_82 = arith.constant 2 : index
    %c0_83 = arith.constant 0 : index
    %c0_84 = arith.constant 0 : index
    %75 = vector.load %arg5[%c2_82, %c0_83, %c0_84] : memref<4x2x8xbf16, #tpu.memory_space<vmem>>, vector<1x2x8xbf16>
    %76 = vector.shape_cast %75 : vector<1x2x8xbf16> to vector<2x8xbf16>
    %cst_85 = arith.constant dense<0.000000e+00> : vector<256x8xf32>
    %77 = tpu.matmul %74, %76, %cst_85 {dimension_numbers = #tpu.dot_dimension_numbers<[1], [0], [0], [1], [0, 0, 1, 1], [], []>} : vector<256x2xbf16>, vector<2x8xbf16>, vector<256x8xf32> -> vector<256x8xf32>
    %78 = arith.addf %73, %77 : vector<256x8xf32>
    %c0_86 = arith.constant 0 : index
    %c0_87 = arith.constant 0 : index
    %c0_88 = arith.constant 0 : index
    %79 = vector.load %arg7[%c0_86, %c0_87, %c0_88] : memref<1x256x8xf32, #tpu.memory_space<vmem>>, vector<1x256x8xf32>
    %80 = vector.shape_cast %79 : vector<1x256x8xf32> to vector<256x8xf32>
    %81 = vector.shape_cast %78 : vector<256x8xf32> to vector<1x256x8xf32>
    tpu.vector_store %arg7[%c0_86, %c0_87, %c0_88], %81 {strides = array<i32>} : memref<1x256x8xf32, #tpu.memory_space<vmem>>, vector<1x256x8xf32>,
    %82 = vector.shape_cast %71 : vector<256x2xf32> to vector<16x16x2xf32>
    %c2_89 = arith.constant 2 : index
    %c8_90 = arith.constant 8 : index
    %c0_91 = arith.constant 0 : index
    %83 = vector.load %arg8[%c2_89, %c8_90, %c0_91] : memref<20x32x2xf32, #tpu.memory_space<vmem>>, vector<16x16x2xf32>
    tpu.vector_store %arg8[%c2_89, %c8_90, %c0_91], %82 {strides = array<i32>} : memref<20x32x2xf32, #tpu.memory_space<vmem>>, vector<16x16x2xf32>,
    %c2_92 = arith.constant 2 : index
    %c6_93 = arith.constant 6 : index
    %c0_94 = arith.constant 0 : index
    %84 = vector.load %arg8[%c2_92, %c6_93, %c0_94] : memref<20x32x2xf32, #tpu.memory_space<vmem>>, vector<16x16x2xf32>
    %85 = arith.maximumf %82, %84 : vector<16x16x2xf32>
    %c2_95 = arith.constant 2 : index
    %c7_96 = arith.constant 7 : index
    %c0_97 = arith.constant 0 : index
    %86 = vector.load %arg8[%c2_95, %c7_96, %c0_97] : memref<20x32x2xf32, #tpu.memory_space<vmem>>, vector<16x16x2xf32>
    %87 = arith.maximumf %85, %86 : vector<16x16x2xf32>
    %c2_98 = arith.constant 2 : index
    %c9_99 = arith.constant 9 : index
    %c0_100 = arith.constant 0 : index
    %88 = vector.load %arg8[%c2_98, %c9_99, %c0_100] : memref<20x32x2xf32, #tpu.memory_space<vmem>>, vector<16x16x2xf32>
    %89 = arith.maximumf %87, %88 : vector<16x16x2xf32>
    %c2_101 = arith.constant 2 : index
    %c10_102 = arith.constant 10 : index
    %c0_103 = arith.constant 0 : index
    %90 = vector.load %arg8[%c2_101, %c10_102, %c0_103] : memref<20x32x2xf32, #tpu.memory_space<vmem>>, vector<16x16x2xf32>
    %91 = arith.maximumf %89, %90 : vector<16x16x2xf32>
    %c2_104 = arith.constant 2 : index
    %c8_105 = arith.constant 8 : index
    %c0_106 = arith.constant 0 : index
    %92 = vector.load %arg8[%c2_104, %c8_105, %c0_106] : memref<20x32x2xf32, #tpu.memory_space<vmem>>, vector<16x16x2xf32>
    tpu.vector_store %arg8[%c2_104, %c8_105, %c0_106], %91 {strides = array<i32>} : memref<20x32x2xf32, #tpu.memory_space<vmem>>, vector<16x16x2xf32>,
    %c0_107 = arith.constant 0 : index
    %c8_108 = arith.constant 8 : index
    %c0_109 = arith.constant 0 : index
    %93 = vector.load %arg8[%c0_107, %c8_108, %c0_109] : memref<20x32x2xf32, #tpu.memory_space<vmem>>, vector<16x16x2xf32>
    %94 = arith.maximumf %91, %93 : vector<16x16x2xf32>
    %c1_110 = arith.constant 1 : index
    %c8_111 = arith.constant 8 : index
    %c0_112 = arith.constant 0 : index
    %95 = vector.load %arg8[%c1_110, %c8_111, %c0_112] : memref<20x32x2xf32, #tpu.memory_space<vmem>>, vector<16x16x2xf32>
    %96 = arith.maximumf %94, %95 : vector<16x16x2xf32>
    %c3_113 = arith.constant 3 : index
    %c8_114 = arith.constant 8 : index
    %c0_115 = arith.constant 0 : index
    %97 = vector.load %arg8[%c3_113, %c8_114, %c0_115] : memref<20x32x2xf32, #tpu.memory_space<vmem>>, vector<16x16x2xf32>
    %98 = arith.maximumf %96, %97 : vector<16x16x2xf32>
    %c4_116 = arith.constant 4 : index
    %c8_117 = arith.constant 8 : index
    %c0_118 = arith.constant 0 : index
    %99 = vector.load %arg8[%c4_116, %c8_117, %c0_118] : memref<20x32x2xf32, #tpu.memory_space<vmem>>, vector<16x16x2xf32>
    %100 = arith.maximumf %98, %99 : vector<16x16x2xf32>
    %101 = vector.shape_cast %100 : vector<16x16x2xf32> to vector<256x2xf32>
    %c0_119 = arith.constant 0 : index
    %c0_120 = arith.constant 0 : index
    %c0_121 = arith.constant 0 : index
    %102 = vector.load %arg7[%c0_119, %c0_120, %c0_121] : memref<1x256x8xf32, #tpu.memory_space<vmem>>, vector<1x256x8xf32>
    %103 = vector.shape_cast %102 : vector<1x256x8xf32> to vector<256x8xf32>
    %104 = arith.truncf %101 : vector<256x2xf32> to vector<256x2xbf16>
    %c3_122 = arith.constant 3 : index
    %c0_123 = arith.constant 0 : index
    %c0_124 = arith.constant 0 : index
    %105 = vector.load %arg5[%c3_122, %c0_123, %c0_124] : memref<4x2x8xbf16, #tpu.memory_space<vmem>>, vector<1x2x8xbf16>
    %106 = vector.shape_cast %105 : vector<1x2x8xbf16> to vector<2x8xbf16>
    %cst_125 = arith.constant dense<0.000000e+00> : vector<256x8xf32>
    %107 = tpu.matmul %104, %106, %cst_125 {dimension_numbers = #tpu.dot_dimension_numbers<[1], [0], [0], [1], [0, 0, 1, 1], [], []>} : vector<256x2xbf16>, vector<2x8xbf16>, vector<256x8xf32> -> vector<256x8xf32>
    %108 = arith.addf %103, %107 : vector<256x8xf32>
    %c0_126 = arith.constant 0 : index
    %c0_127 = arith.constant 0 : index
    %c0_128 = arith.constant 0 : index
    %109 = vector.load %arg7[%c0_126, %c0_127, %c0_128] : memref<1x256x8xf32, #tpu.memory_space<vmem>>, vector<1x256x8xf32>
    %110 = vector.shape_cast %109 : vector<1x256x8xf32> to vector<256x8xf32>
    %111 = vector.shape_cast %108 : vector<256x8xf32> to vector<1x256x8xf32>
    tpu.vector_store %arg7[%c0_126, %c0_127, %c0_128], %111 {strides = array<i32>} : memref<1x256x8xf32, #tpu.memory_space<vmem>>, vector<1x256x8xf32>,
    %c0_i32_129 = arith.constant 0 : i32
    %112 = arith.cmpi eq, %arg1, %c0_i32_129 : i32
    %113 = arith.extui %112 : i1 to i32
    %c0_i32_130 = arith.constant 0 : i32
    %114 = arith.cmpi ne, %113, %c0_i32_130 : i32
    scf.if %114 {
      %c0_131 = arith.constant 0 : index
      %c0_132 = arith.constant 0 : index
      %c0_133 = arith.constant 0 : index
      %115 = vector.load %arg7[%c0_131, %c0_132, %c0_133] : memref<1x256x8xf32, #tpu.memory_space<vmem>>, vector<1x256x8xf32>
      %116 = vector.shape_cast %115 : vector<1x256x8xf32> to vector<256x8xf32>
      %c0_134 = arith.constant 0 : index
      %c0_135 = arith.constant 0 : index
      %117 = vector.load %arg6[%c0_134, %c0_135] : memref<1x8xf32, #tpu.memory_space<vmem>>, vector<1x8xf32>
      %118 = vector.broadcast %117 : vector<1x8xf32> to vector<256x8xf32>
      %119 = arith.addf %116, %118 : vector<256x8xf32>
      %cst_136 = arith.constant 0.000000e+00 : f32
      %120 = vector.broadcast %cst_136 : f32 to vector<256x8xf32>
      %121 = arith.maximumf %119, %120 : vector<256x8xf32>
      %c0_137 = arith.constant 0 : index
      %c0_138 = arith.constant 0 : index
      %c0_139 = arith.constant 0 : index
      %122 = vector.load %arg7[%c0_137, %c0_138, %c0_139] : memref<1x256x8xf32, #tpu.memory_space<vmem>>, vector<1x256x8xf32>
      %123 = vector.shape_cast %122 : vector<1x256x8xf32> to vector<256x8xf32>
      %124 = vector.shape_cast %121 : vector<256x8xf32> to vector<1x256x8xf32>
      tpu.vector_store %arg7[%c0_137, %c0_138, %c0_139], %124 {strides = array<i32>} : memref<1x256x8xf32, #tpu.memory_space<vmem>>, vector<1x256x8xf32>,
    } else {
    }
    return
  }
  func.func @transform_0(%arg0: i32, %arg1: i32) -> (i32, i32, i32) {
    %c0_i32 = arith.constant 0 : i32
    %c0_i32_0 = arith.constant 0 : i32
    %c0_i32_1 = arith.constant 0 : i32
    return %arg0, %c0_i32, %c0_i32_0 : i32, i32, i32
  }
  func.func @transform_1(%arg0: i32, %arg1: i32) -> (i32, i32) {
    %c0_i32 = arith.constant 0 : i32
    %c0_i32_0 = arith.constant 0 : i32
    return %c0_i32, %arg1 : i32, i32
  }
  func.func @transform_2(%arg0: i32, %arg1: i32) -> (i32, i32) {
    %c0_i32 = arith.constant 0 : i32
    %c0_i32_0 = arith.constant 0 : i32
    return %c0_i32, %arg1 : i32, i32
  }
  func.func @transform_3(%arg0: i32, %arg1: i32) -> (i32, i32, i32) {
    %c0_i32 = arith.constant 0 : i32
    %c0_i32_0 = arith.constant 0 : i32
    %c0_i32_1 = arith.constant 0 : i32
    return %c0_i32, %arg1, %c0_i32_0 : i32, i32, i32
  }
  func.func @transform_4(%arg0: i32, %arg1: i32) -> (i32, i32) {
    %c0_i32 = arith.constant 0 : i32
    %c0_i32_0 = arith.constant 0 : i32
    %c0_i32_1 = arith.constant 0 : i32
    return %c0_i32, %c0_i32_0 : i32, i32
  }
  func.func @transform_5(%arg0: i32, %arg1: i32) -> (i32, i32, i32) {
    %c0_i32 = arith.constant 0 : i32
    %c0_i32_0 = arith.constant 0 : i32
    %c0_i32_1 = arith.constant 0 : i32
    return %arg0, %c0_i32, %c0_i32_0 : i32, i32, i32
  }
}

</mosaic_0001>

<bundles_post_ra>
// kernel: sim_sppf_block.1
= control target key start
LH: loop header
LB: loop body
LE: loop exit
PB: predicated region body
PF: predicated region fallthrough
CT: control target
= control target key end

     0   :  { %s4522_s18 = smov 0   ;;  %s4524_s19 = smov 0   ;;  %s7230_s0 = inlined_call_operand.vmem [shape: bf16[2,256,4], index: 0, kind: input, shape index: {}]   ;;  %s7231_s1 = inlined_call_operand.vmem [shape: bf16[4,2], index: 1, kind: input, shape index: {}]   ;;  %s7232_s2 = inlined_call_operand.vmem [shape: f32[1,2], index: 2, kind: input, shape index: {}]   ;;  %s7233_s3 = inlined_call_operand.vmem [shape: bf16[4,2,8], index: 3, kind: input, shape index: {}]   ;;  %s7234_s4 = inlined_call_operand.vmem [shape: f32[1,8], index: 4, kind: input, shape index: {}]   ;;  %s7235_s5 = inlined_call_operand.vmem [shape: f32[2,256,8], index: 5, kind: output, shape index: {}]  }
   0x1   :  { %s4526_s20 = smov 0  }
   0x2 LB: > { %s27_s21 = sadd.s32 1, %s4485_s19  ;;  %p4053_p0 = scmp.ge.s32.totalorder %s4489_s20, 1  ;;  %s4489_s20 = sphi %s4526_s20, %s15_s20   ;;  %s4485_s19 = sphi %s4524_s19, %s7303_s19   ;;  %s4481_s18 = sphi %s4522_s18, %s7302_s18  }
   0x3   : > { %p29_p1 = scmp.ge.s32.totalorder %s27_s21, 2  ;;  %p224_p2 = scmp.lt.s32.totalorder %s4489_s20, 3 }
   0x5   : > { %s7305_s21 = smov (%p29_p1, %s27_s21), 0  ;;  %p225_p3 = pnand %p4053_p0, %p224_p2 }
   0x7   : > { %228 = sbr.rel (%p225_p3) target bundleno = 782 (0x30e), region = 40 }
   0xe   : > { %v433_v0 = vld [vmem:[%s7231_s1] sm:$0x3]  ;;  %vm570_vm0 = vcmask 1041408   ;;  %p262_p4 = scmp.lt.s32.totalorder %s4481_s18, 1  ;;  %vm320_vm1 = vcmask 15360   ;;  %v7236_v2 = vmov 0.0  }
   0xf   : > { %4420 = vmatprep.subr.msk.bf16.mxu0 %vm570_vm0, %v433_v0  ;;  %4421 = vmatprep.subr.msk.bf16.mxu1 %vm570_vm0, %v433_v0  ;;  %v572_v1 = vsel %vm570_vm0, %v433_v0, 0  ;;  %333 = vst.msk [vmem:[#allocation2 + $0x60] sm:$0xff] %vm320_vm1, %v7236_v2  ;;  %334 = vst.msk [vmem:[#allocation2 + $0x68] sm:$0xff] %vm320_vm1, %v7236_v2  ;;  %vm521_vm2 = vcmask 31744   ;;  %v815_v19 = vld [vmem:[%s7233_s3] sm:$0x1] }
  0x10   : > { %4249 = vmatpush3.bf16.msra.mxu0 %v572_v1  ;;  %4419 = vmatpush3.bf16.msra.mxu1 %v572_v1  ;;  %s7307_s18 = smov (!%p262_p4, %s4481_s18), 1  ;;  %322 = vst.msk [vmem:[#allocation2 + $0x8] sm:$0xff] %vm320_vm1, %v7236_v2  ;;  %323 = vst.msk [vmem:[#allocation2 + $0x10] sm:$0xff] %vm320_vm1, %v7236_v2  ;;  %vm865_vm3 = vcmask 1040384   ;;  %v4107_v21 = vld [vmem:[%s7233_s3 + $0x1] sm:$0x1] }
  0x11   : > { %326 = vst.msk [vmem:[#allocation2 + $0x28] sm:$0xff] %vm320_vm1, %v7236_v2  ;;  %327 = vst.msk [vmem:[#allocation2 + $0x30] sm:$0xff] %vm320_vm1, %v7236_v2  ;;  %s4161_s24 = sshll.u32 %s7307_s18, 7  ;;  %4422 = vmatprep.subr.msk.bf16.mxu1 %vm865_vm3, %v815_v19  ;;  %v867_v20 = vsel %vm865_vm3, %v815_v19, 0  ;;  %4423 = vmatprep.subr.msk.bf16.mxu0 %vm865_vm3, %v4107_v21  ;;  %v1774_v22 = vsel %vm865_vm3, %v4107_v21, 0  ;;  %s4162_s13 = sshll.u32 %s7307_s18, 8 }
  0x12   : > { %329 = vst.msk [vmem:[#allocation2 + $0x40] sm:$0xff] %vm320_vm1, %v7236_v2  ;;  %330 = vst.msk [vmem:[#allocation2 + $0x48] sm:$0xff] %vm320_vm1, %v7236_v2  ;;  %s4693_s27 = scalar_lea.vmem %s7230_s0, %s4161_s24  ;;  %v4124_v23 = vld [vmem:[%s7233_s3 + $0x2] sm:$0x1]  ;;  %v4743_v24 = vld [vmem:[%s7233_s3 + $0x3] sm:$0x1]  ;;  %s6571_s16 = scalar_lea.vmem %s7235_s5, %s4162_s13 }
  0x13   : > { %331 = vst.msk [vmem:[#allocation2 + $0x50] sm:$0xff] %vm320_vm1, %v7236_v2  ;;  %332 = vst.msk [vmem:[#allocation2 + $0x58] sm:$0xff] %vm320_vm1, %v7236_v2  ;;  %v4451_v3 = vld [vmem:[%s4693_s27] sm:$0xff]   ;;  %v4453_v5 = vld [vmem:[%s4693_s27 + $0x8] sm:$0xff]   ;;  %v2676_v58 = vsel %vm865_vm3, %v4124_v23, 0  ;;  %vm287_vm4 = vcmask 64512  }
  0x14   : > { %335 = vst.msk [vmem:[#allocation2 + $0x70] sm:$0xff] %vm320_vm1, %v7236_v2  ;;  %336 = vst.msk [vmem:[#allocation2 + $0x78] sm:$0xff] %vm320_vm1, %v7236_v2  ;;  %v4452_v4 = vld [vmem:[%s4693_s27 + $0x40] sm:$0xff]   ;;  %4250 = vmatprep.mubr.msk.bf16.mxu0 %vm521_vm2, %v4451_v3  ;;  %v4454_v6 = vld [vmem:[%s4693_s27 + $0x48] sm:$0xff]  }
  0x15   : > { %337 = vst.msk [vmem:[#allocation2 + $0x80] sm:$0xff] %vm320_vm1, %v7236_v2  ;;  %338 = vst.msk [vmem:[#allocation2 + $0x88] sm:$0xff] %vm320_vm1, %v7236_v2  ;;  %4266 = vmatprep.mubr.msk.bf16.mxu1 %vm521_vm2, %v4452_v4  ;;  %4251 = vmatmul.mubr.msk.bf16.vlgmr.msra.gmra.mrb[0].mxu0 %vm521_vm2, %v4453_v5  ;;  %v4455_v7 = vld [vmem:[%s4693_s27 + $0x10] sm:$0xff]   ;;  %v4457_v9 = vld [vmem:[%s4693_s27 + $0x18] sm:$0xff]  }
  0x16   : > { %339 = vst.msk [vmem:[#allocation2 + $0x90] sm:$0xff] %vm320_vm1, %v7236_v2  ;;  %340 = vst.msk [vmem:[#allocation2 + $0x98] sm:$0xff] %vm320_vm1, %v7236_v2  ;;  %4267 = vmatmul.mubr.msk.bf16.vlgmr.msra.gmra.mrb[0].mxu1 %vm521_vm2, %v4454_v6  ;;  %v4456_v8 = vld [vmem:[%s4693_s27 + $0x50] sm:$0xff]   ;;  %4254 = vmatprep.mubr.msk.bf16.mxu0 %vm521_vm2, %v4455_v7  ;;  %v4458_v10 = vld [vmem:[%s4693_s27 + $0x58] sm:$0xff]  }
  0x17   : > { %341 = vst.msk [vmem:[#allocation2 + $0xa0] sm:$0xff] %vm320_vm1, %v7236_v2  ;;  %342 = vst.msk [vmem:[#allocation2 + $0xa8] sm:$0xff] %vm320_vm1, %v7236_v2  ;;  %4270 = vmatprep.mubr.msk.bf16.mxu1 %vm521_vm2, %v4456_v8  ;;  %v4459_v11 = vld [vmem:[%s4693_s27 + $0x20] sm:$0xff]   ;;  %v4461_v13 = vld [vmem:[%s4693_s27 + $0x28] sm:$0xff]   ;;  %4283 = vmatpush3.bf16.msra.mxu1 %v867_v20 }
  0x18   : > { %343 = vst.msk [vmem:[#allocation2 + $0xb0] sm:$0xff] %vm320_vm1, %v7236_v2  ;;  %344 = vst.msk [vmem:[#allocation2 + $0xb8] sm:$0xff] %vm320_vm1, %v7236_v2  ;;  %v4460_v12 = vld [vmem:[%s4693_s27 + $0x60] sm:$0xff]   ;;  %v4462_v14 = vld [vmem:[%s4693_s27 + $0x68] sm:$0xff]   ;;  %4317 = vmatpush3.bf16.msra.mxu0 %v1774_v22  ;;  %4424 = vmatprep.subr.msk.bf16.mxu1 %vm865_vm3, %v4124_v23 }
  0x19   : > { %345 = vst.msk [vmem:[#allocation2 + $0xc0] sm:$0xff] %vm320_vm1, %v7236_v2  ;;  %346 = vst.msk [vmem:[#allocation2 + $0xc8] sm:$0xff] %vm320_vm1, %v7236_v2  ;;  %v4463_v15 = vld [vmem:[%s4693_s27 + $0x30] sm:$0xff]   ;;  %v4465_v17 = vld [vmem:[%s4693_s27 + $0x38] sm:$0xff]   ;;  %4425 = vmatprep.subr.msk.bf16.mxu0 %vm865_vm3, %v4743_v24 }
  0x1a   : > { %347 = vst.msk [vmem:[#allocation2 + $0xd0] sm:$0xff] %vm320_vm1, %v7236_v2  ;;  %348 = vst.msk [vmem:[#allocation2 + $0xd8] sm:$0xff] %vm320_vm1, %v7236_v2  ;;  %v4464_v16 = vld [vmem:[%s4693_s27 + $0x70] sm:$0xff]   ;;  %v4466_v18 = vld [vmem:[%s4693_s27 + $0x78] sm:$0xff]  }
  0x1b   : > { %349 = vst.msk [vmem:[#allocation2 + $0xe0] sm:$0xff] %vm320_vm1, %v7236_v2  ;;  %350 = vst.msk [vmem:[#allocation2 + $0xe8] sm:$0xff] %vm320_vm1, %v7236_v2  ;;  %v4751_v25 = vld [vmem:[%s7232_s2] ss:$0 sm:$0xff] }
  0x1c   : > { %351 = vst.msk [vmem:[#allocation2 + $0xf0] sm:$0xff] %vm320_vm1, %v7236_v2  ;;  %352 = vst.msk [vmem:[#allocation2 + $0xf8] sm:$0xff] %vm320_vm1, %v7236_v2 }
  0x1d   : > { %353 = vst.msk [vmem:[#allocation2 + $0x100] sm:$0xff] %vm320_vm1, %v7236_v2  ;;  %354 = vst.msk [vmem:[#allocation2 + $0x108] sm:$0xff] %vm320_vm1, %v7236_v2  ;;  %4255 = vmatmul.mubr.msk.bf16.gmra.mrb[4].mxu0 %vm521_vm2, %v4457_v9 }
  0x1e   : > { %355 = vst.msk [vmem:[#allocation2 + $0x110] sm:$0xff] %vm320_vm1, %v7236_v2  ;;  %356 = vst.msk [vmem:[#allocation2 + $0x118] sm:$0xff] %vm320_vm1, %v7236_v2  ;;  %4271 = vmatmul.mubr.msk.bf16.gmra.mrb[4].mxu1 %vm521_vm2, %v4458_v10  ;;  %4258 = vmatprep.mubr.msk.bf16.mxu0 %vm521_vm2, %v4459_v11 }
  0x1f   : > { %357 = vst.msk [vmem:[#allocation2 + $0x120] sm:$0xff] %vm320_vm1, %v7236_v2  ;;  %358 = vst.msk [vmem:[#allocation2 + $0x128] sm:$0xff] %vm320_vm1, %v7236_v2  ;;  %4274 = vmatprep.mubr.msk.bf16.mxu1 %vm521_vm2, %v4460_v12 }
  0x20   : > { %359 = vst.msk [vmem:[#allocation2 + $0x130] sm:$0xff] %vm320_vm1, %v7236_v2  ;;  %360 = vst.msk [vmem:[#allocation2 + $0x138] sm:$0xff] %vm320_vm1, %v7236_v2 }
  0x21   : > { %361 = vst.msk [vmem:[#allocation2 + $0x140] sm:$0xff] %vm320_vm1, %v7236_v2  ;;  %362 = vst.msk [vmem:[#allocation2 + $0x148] sm:$0xff] %vm320_vm1, %v7236_v2 }
  0x22   : > { %363 = vst.msk [vmem:[#allocation2 + $0x150] sm:$0xff] %vm320_vm1, %v7236_v2  ;;  %364 = vst.msk [vmem:[#allocation2 + $0x158] sm:$0xff] %vm320_vm1, %v7236_v2 }
  0x23   : > { %365 = vst.msk [vmem:[#allocation2 + $0x160] sm:$0xff] %vm320_vm1, %v7236_v2  ;;  %366 = vst.msk [vmem:[#allocation2 + $0x168] sm:$0xff] %vm320_vm1, %v7236_v2 }
  0x24   : > { %367 = vst.msk [vmem:[#allocation2 + $0x170] sm:$0xff] %vm320_vm1, %v7236_v2  ;;  %368 = vst.msk [vmem:[#allocation2 + $0x178] sm:$0xff] %vm320_vm1, %v7236_v2 }
  0x25   : > { %369 = vst.msk [vmem:[#allocation2 + $0x180] sm:$0xff] %vm320_vm1, %v7236_v2  ;;  %370 = vst.msk [vmem:[#allocation2 + $0x188] sm:$0xff] %vm320_vm1, %v7236_v2  ;;  %4259 = vmatmul.mubr.msk.bf16.gmra.mrb[8].mxu0 %vm521_vm2, %v4461_v13 }
  0x26   : > { %371 = vst.msk [vmem:[#allocation2 + $0x190] sm:$0xff] %vm320_vm1, %v7236_v2  ;;  %372 = vst.msk [vmem:[#allocation2 + $0x198] sm:$0xff] %vm320_vm1, %v7236_v2  ;;  %4275 = vmatmul.mubr.msk.bf16.gmra.mrb[8].mxu1 %vm521_vm2, %v4462_v14  ;;  %4262 = vmatprep.mubr.msk.bf16.mxu0 %vm521_vm2, %v4463_v15 }
  0x27   : > { %373 = vst.msk [vmem:[#allocation2 + $0x1a0] sm:$0xff] %vm320_vm1, %v7236_v2  ;;  %374 = vst.msk [vmem:[#allocation2 + $0x1a8] sm:$0xff] %vm320_vm1, %v7236_v2  ;;  %4278 = vmatprep.mubr.msk.bf16.mxu1 %vm521_vm2, %v4464_v16 }
  0x28   : > { %375 = vst.msk [vmem:[#allocation2 + $0x1b0] sm:$0xff] %vm320_vm1, %v7236_v2  ;;  %376 = vst.msk [vmem:[#allocation2 + $0x1b8] sm:$0xff] %vm320_vm1, %v7236_v2 }
  0x29   : > { %377 = vst.msk [vmem:[#allocation2 + $0x1c0] sm:$0xff] %vm320_vm1, %v7236_v2  ;;  %378 = vst.msk [vmem:[#allocation2 + $0x1c8] sm:$0xff] %vm320_vm1, %v7236_v2 }
  0x2a   : > { %379 = vst.msk [vmem:[#allocation2 + $0x1d0] sm:$0xff] %vm320_vm1, %v7236_v2  ;;  %380 = vst.msk [vmem:[#allocation2 + $0x1d8] sm:$0xff] %vm320_vm1, %v7236_v2 }
  0x2b   : > { %381 = vst.msk [vmem:[#allocation2 + $0x1e0] sm:$0xff] %vm320_vm1, %v7236_v2  ;;  %382 = vst.msk [vmem:[#allocation2 + $0x1e8] sm:$0xff] %vm320_vm1, %v7236_v2 }
  0x2c   : > { %383 = vst.msk [vmem:[#allocation2 + $0x1f0] sm:$0xff] %vm320_vm1, %v7236_v2  ;;  %384 = vst.msk [vmem:[#allocation2 + $0x1f8] sm:$0xff] %vm320_vm1, %v7236_v2 }
  0x2d   : > { %385 = vst.msk [vmem:[#allocation2 + $0x200] sm:$0xff] %vm320_vm1, %v7236_v2  ;;  %386 = vst.msk [vmem:[#allocation2 + $0x208] sm:$0xff] %vm320_vm1, %v7236_v2  ;;  %4263 = vmatmul.mubr.msk.bf16.gmra.mrb[12].mxu0 %vm521_vm2, %v4465_v17 }
  0x2e   : > { %387 = vst.msk [vmem:[#allocation2 + $0x210] sm:$0xff] %vm320_vm1, %v7236_v2  ;;  %388 = vst.msk [vmem:[#allocation2 + $0x218] sm:$0xff] %vm320_vm1, %v7236_v2  ;;  %4279 = vmatmul.mubr.msk.bf16.gmra.mrb[12].mxu1 %vm521_vm2, %v4466_v18 }
  0x2f   : > { %389 = vst.msk [vmem:[#allocation2 + $0x220] sm:$0xff] %vm320_vm1, %v7236_v2  ;;  %390 = vst.msk [vmem:[#allocation2 + $0x228] sm:$0xff] %vm320_vm1, %v7236_v2 }
  0x30   : > { %391 = vst.msk [vmem:[#allocation2 + $0x230] sm:$0xff] %vm320_vm1, %v7236_v2  ;;  %392 = vst.msk [vmem:[#allocation2 + $0x238] sm:$0xff] %vm320_vm1, %v7236_v2 }
  0x31   : > { %394 = vst.msk [vmem:[#allocation2 + $0x248] sm:$0xff] %vm320_vm1, %v7236_v2  ;;  %395 = vst.msk [vmem:[#allocation2 + $0x250] sm:$0xff] %vm320_vm1, %v7236_v2 }
  0x32   : > { %398 = vst.msk [vmem:[#allocation2 + $0x268] sm:$0xff] %vm320_vm1, %v7236_v2  ;;  %399 = vst.msk [vmem:[#allocation2 + $0x270] sm:$0xff] %vm320_vm1, %v7236_v2 }
  0xe8   : > { %v4252_v26 = vpop.f32.mrb[0].mxu0 }
  0xe9   : > { %v617_v27 = vadd.f32 %v4252_v26, %v4751_v25  ;;  %v608_v28 = vpop.f32.mrb[1].mxu0  ;;  %v4268_v29 = vpop.f32.mrb[0].mxu1 }
  0xea   : > { %v609_v30 = vadd.f32 %v4751_v25, %v608_v28  ;;  %v4253_v31 = vpop.f32.mrb[2].mxu0  ;;  %v681_v32 = vadd.f32 %v4268_v29, %v4751_v25  ;;  %v672_v33 = vpop.f32.mrb[1].mxu1 }
  0xeb   : > { %v4756_v34 = vmax.f32 %v617_v27, 0.0  ;;  %v620_v35 = vadd.f32 %v4253_v31, %v4751_v25  ;;  %v611_v36 = vpop.f32.mrb[3].mxu0  ;;  %v673_v37 = vadd.f32 %v4751_v25, %v672_v33  ;;  %v4269_v38 = vpop.f32.mrb[2].mxu1 }
  0xec   : > { %v4760_v39 = vmax.f32 %v609_v30, 0.0  ;;  %v612_v40 = vadd.f32 %v4751_v25, %v611_v36  ;;  %v4763_v41 = vmax.f32 %v681_v32, 0.0  ;;  %v684_v42 = vadd.f32 %v4269_v38, %v4751_v25  ;;  %v675_v43 = vpop.f32.mrb[3].mxu1 }
  0xed   : > { %1098 = vst.msk [vmem:[#allocation2 + $0x68] sm:$0xff] %vm320_vm1, %v4756_v34  ;;  %v4768_v44 = vmax.f32 %v620_v35, 0.0  ;;  %v4770_v45 = vmax.f32 %v673_v37, 0.0  ;;  %v676_v46 = vadd.f32 %v4751_v25, %v675_v43  ;;  %v4856_v38 = vsel %vm865_vm3, %v4743_v24, 0 }
  0xee   : > { %1096 = vst.msk [vmem:[#allocation2 + $0x48] sm:$0xff] %vm320_vm1, %v4760_v39  ;;  %v4775_v47 = vmax.f32 %v612_v40, 0.0  ;;  %1114 = vst.msk [vmem:[#allocation2 + $0x168] sm:$0xff] %vm320_vm1, %v4763_v41  ;;  %v4779_v48 = vmax.f32 %v684_v42, 0.0 }
  0xef   : > { %v800_v49 = vpack.c.bf16 %v4768_v44, %v4756_v34  ;;  %1099 = vst.msk [vmem:[#allocation2 + $0x70] sm:$0xff] %vm320_vm1, %v4768_v44  ;;  %1112 = vst.msk [vmem:[#allocation2 + $0x148] sm:$0xff] %vm320_vm1, %v4770_v45  ;;  %v4787_v50 = vmax.f32 %v676_v46, 0.0 }
  0xf0   : > { %v799_v51 = vpack.c.bf16 %v4775_v47, %v4760_v39  ;;  %1097 = vst.msk [vmem:[#allocation2 + $0x50] sm:$0xff] %vm320_vm1, %v4775_v47  ;;  %v4256_v52 = vpop.f32.mrb[4].mxu0  ;;  %1115 = vst.msk [vmem:[#allocation2 + $0x170] sm:$0xff] %vm320_vm1, %v4779_v48 }
  0xf1   : > { %v633_v54 = vadd.f32 %v4256_v52, %v4751_v25  ;;  %v624_v55 = vpop.f32.mrb[5].mxu0  ;;  %1113 = vst.msk [vmem:[#allocation2 + $0x150] sm:$0xff] %vm320_vm1, %v4787_v50  ;;  %v4272_v57 = vpop.f32.mrb[4].mxu1 }
  0xf2   : > { %v625_v59 = vadd.f32 %v4751_v25, %v624_v55  ;;  %v4257_v60 = vpop.f32.mrb[6].mxu0  ;;  %4284 = vmatprep.mubr.msk.bf16.mxu1 %vm320_vm1, %v799_v51  ;;  %v697_v61 = vadd.f32 %v4272_v57, %v4751_v25  ;;  %v688_v62 = vpop.f32.mrb[5].mxu1 }
  0xf3   : > { %v4806_v63 = vmax.f32 %v633_v54, 0.0  ;;  %v636_v0 = vadd.f32 %v4257_v60, %v4751_v25  ;;  %v627_v1 = vpop.f32.mrb[7].mxu0  ;;  %4285 = vmatmul.mubr.msk.bf16.vlgmr.msra.gmra.mrb[16].mxu1 %vm320_vm1, %v800_v49  ;;  %v689_v3 = vadd.f32 %v4751_v25, %v688_v62  ;;  %v4273_v4 = vpop.f32.mrb[6].mxu1  ;;  %v4864_v54 = vld [vmem:[#allocation2 + $0x30] sm:$0xff] }
  0xf4   : > { %v1130_v5 = vld [vmem:[#allocation2 + $0x66] sm:$0xff]  ;;  %v4811_v6 = vmax.f32 %v625_v59, 0.0  ;;  %v628_v7 = vadd.f32 %v4751_v25, %v627_v1  ;;  %v4814_v8 = vmax.f32 %v697_v61, 0.0  ;;  %v700_v9 = vadd.f32 %v4273_v4, %v4751_v25  ;;  %v691_v10 = vpop.f32.mrb[7].mxu1  ;;  %4351 = vmatpush3.bf16.msra.mxu1 %v2676_v58 }
  0xf5   : > { %v1162_v11 = vmax.f32 %v4756_v34, %v1130_v5  ;;  %v1128_v12 = vld [vmem:[#allocation2 + $0x46] sm:$0xff]  ;;  %1102 = vst.msk [vmem:[#allocation2 + $0xa8] sm:$0xff] %vm320_vm1, %v4806_v63  ;;  %v4820_v14 = vmax.f32 %v636_v0, 0.0  ;;  %v4822_v15 = vmax.f32 %v689_v3, 0.0  ;;  %v692_v16 = vadd.f32 %v4751_v25, %v691_v10 }
  0xf6   : > { %v1146_v13 = vld [vmem:[#allocation2 + $0x166] sm:$0xff]  ;;  %v1160_v18 = vmax.f32 %v4760_v39, %v1128_v12  ;;  %v1131_v19 = vld [vmem:[#allocation2 + $0x6e] sm:$0xff]  ;;  %1100 = vst.msk [vmem:[#allocation2 + $0x88] sm:$0xff] %vm320_vm1, %v4811_v6  ;;  %v4829_v21 = vmax.f32 %v628_v7, 0.0  ;;  %1118 = vst.msk [vmem:[#allocation2 + $0x1a8] sm:$0xff] %vm320_vm1, %v4814_v8  ;;  %v4833_v22 = vmax.f32 %v700_v9, 0.0 }
  0xf7   : > { %v1194_v17 = vld [vmem:[#allocation2 + $0x67] sm:$0xff]  ;;  %v1178_v20 = vmax.f32 %v4763_v41, %v1146_v13  ;;  %v1163_v27 = vmax.f32 %v4768_v44, %v1131_v19  ;;  %v1195_v28 = vld [vmem:[#allocation2 + $0x6f] sm:$0xff]  ;;  %v802_v29 = vpack.c.bf16 %v4820_v14, %v4806_v63  ;;  %1103 = vst.msk [vmem:[#allocation2 + $0xb0] sm:$0xff] %vm320_vm1, %v4820_v14  ;;  %1116 = vst.msk [vmem:[#allocation2 + $0x188] sm:$0xff] %vm320_vm1, %v4822_v15  ;;  %v4842_v30 = vmax.f32 %v692_v16, 0.0 }
  0xf8   : > { %v1226_v23 = vmax.f32 %v1162_v11, %v1194_v17  ;;  %v1192_v26 = vld [vmem:[#allocation2 + $0x47] sm:$0xff]  ;;  %v1259_v33 = vld [vmem:[#allocation2 + $0x71] sm:$0xff]  ;;  %v801_v35 = vpack.c.bf16 %v4829_v21, %v4811_v6  ;;  %1101 = vst.msk [vmem:[#allocation2 + $0x90] sm:$0xff] %vm320_vm1, %v4829_v21  ;;  %1119 = vst.msk [vmem:[#allocation2 + $0x1b0] sm:$0xff] %vm320_vm1, %v4833_v22  ;;  %v4260_v37 = vpop.f32.mrb[8].mxu0 }
  0xf9   : > { %v4844_v31 = vmax.f32 %v1160_v18, %v1192_v26  ;;  %v1258_v32 = vld [vmem:[#allocation2 + $0x69] sm:$0xff]  ;;  %v1227_v39 = vmax.f32 %v1163_v27, %v1195_v28  ;;  %v649_v49 = vadd.f32 %v4260_v37, %v4751_v25  ;;  %1117 = vst.msk [vmem:[#allocation2 + $0x190] sm:$0xff] %vm320_vm1, %v4842_v30  ;;  %v640_v51 = vpop.f32.mrb[9].mxu0  ;;  %v4276_v52 = vpop.f32.mrb[8].mxu1  ;;  %v1323_v12 = vld [vmem:[#allocation2 + $0x72] sm:$0xff] }
  0xfa   : > { %v1129_v34 = vld [vmem:[#allocation2 + $0x4e] sm:$0xff]  ;;  %v1290_v40 = vmax.f32 %v1226_v23, %v1258_v32  ;;  %v1144_v24 = vld [vmem:[#allocation2 + $0x146] sm:$0xff]  ;;  %v713_v59 = vadd.f32 %v4276_v52, %v4751_v25  ;;  %v4261_v60 = vpop.f32.mrb[10].mxu0  ;;  %v4870_v61 = vpop.f32.mrb[9].mxu1  ;;  %4288 = vmatprep.mubr.msk.bf16.mxu1 %vm320_vm1, %v801_v35 }
  0xfb   : > { %v1322_v42 = vld [vmem:[#allocation2 + $0x6a] sm:$0xff]  ;;  %v1161_v43 = vmax.f32 %v4775_v47, %v1129_v34  ;;  %v641_v47 = vadd.f32 %v4751_v25, %v640_v51  ;;  %v1291_v0 = vmax.f32 %v1227_v39, %v1259_v33  ;;  %v4877_v10 = vpop.f32.mrb[11].mxu0  ;;  %v4879_v11 = vpop.f32.mrb[10].mxu1  ;;  %4289 = vmatmul.mubr.msk.bf16.gmra.mrb[20].mxu1 %vm320_vm1, %v802_v29  ;;  %v1176_v18 = vmax.f32 %v4770_v45, %v1144_v24  ;;  %v1321_v37 = vld [vmem:[#allocation2 + $0x52] sm:$0xff] }
  0xfc   : > { %v1193_v44 = vld [vmem:[#allocation2 + $0x4f] sm:$0xff]  ;;  %v1210_v55 = vld [vmem:[#allocation2 + $0x167] sm:$0xff]  ;;  %v4875_v1 = vmax.f32 %v1290_v40, %v1322_v42  ;;  %v4886_v23 = vmax.f32 %v649_v49, 0.0  ;;  %v4890_v26 = vpop.f32.mrb[11].mxu1 }
  0xfd   : > { %v4859_v46 = vld [vmem:[#allocation2 + $0x49] sm:$0xff]  ;;  %v1225_v3 = vmax.f32 %v1161_v43, %v1193_v44  ;;  %v1242_v4 = vmax.f32 %v1178_v20, %v1210_v55  ;;  %v1257_v13 = vld [vmem:[#allocation2 + $0x51] sm:$0xff]  ;;  %v4888_v20 = vmax.f32 %v641_v47, 0.0  ;;  %v4892_v27 = vmax.f32 %v1291_v0, %v1323_v12 }
  0xfe   : > { %v1208_v57 = vld [vmem:[#allocation2 + $0x147] sm:$0xff]  ;;  %v1211_v7 = vld [vmem:[#allocation2 + $0x16f] sm:$0xff]  ;;  %1386 = vst.msk [vmem:[#allocation2 + $0x68] sm:$0xff] %vm320_vm1, %v4875_v1  ;;  %1106 = vst.msk [vmem:[#allocation2 + $0xe8] sm:$0xff] %vm320_vm1, %v4886_v23 }
  0xff   : > { %v1147_v5 = vld [vmem:[#allocation2 + $0x16e] sm:$0xff]  ;;  %v1134_v17 = vld [vmem:[#allocation2 + $0xa6] sm:$0xff]  ;;  %v1289_v28 = vmax.f32 %v1225_v3, %v1257_v13  ;;  %v4900_v43 = vmax.f32 %v1176_v18, %v1208_v57  ;;  %1104 = vst.msk [vmem:[#allocation2 + $0xc8] sm:$0xff] %vm320_vm1, %v4888_v20  ;;  %1387 = vst.msk [vmem:[#allocation2 + $0x70] sm:$0xff] %vm320_vm1, %v4892_v27 }
 0x100   : > { %v1274_v9 = vld [vmem:[#allocation2 + $0x169] sm:$0xff]  ;;  %v1179_v19 = vmax.f32 %v4779_v48, %v1147_v5  ;;  %v1166_v29 = vmax.f32 %v4806_v63, %v1134_v17  ;;  %v4897_v33 = vld [vmem:[#allocation2 + $0x171] sm:$0xff]  ;;  %v4906_v63 = vmax.f32 %v713_v59, 0.0 }
 0x101   : > { %v4882_v16 = vld [vmem:[#allocation2 + $0x10] sm:$0xff]  ;;  %v1132_v32 = vld [vmem:[#allocation2 + $0x86] sm:$0xff]  ;;  %v1306_v34 = vmax.f32 %v1242_v4, %v1274_v9  ;;  %v4921_v9 = vpop.f32.mrb[12].mxu0 }
 0x102   : > { %v1338_v35 = vld [vmem:[#allocation2 + $0x16a] sm:$0xff]  ;;  %v1164_v40 = vmax.f32 %v4811_v6, %v1132_v32  ;;  %v1243_v44 = vmax.f32 %v1179_v19, %v1211_v7  ;;  %v1353_v6 = vmax.f32 %v1289_v28, %v1321_v37  ;;  %1122 = vst.msk [vmem:[#allocation2 + $0x1e8] sm:$0xff] %vm320_vm1, %v4906_v63  ;;  %v652_v7 = vadd.f32 %v4261_v60, %v4751_v25  ;;  %v4928_v32 = vpop.f32.mrb[13].mxu0  ;;  %v1339_v37 = vld [vmem:[#allocation2 + $0x172] sm:$0xff] }
 0x103   : > { %v1198_v39 = vld [vmem:[#allocation2 + $0xa7] sm:$0xff]  ;;  %v1199_v57 = vld [vmem:[#allocation2 + $0xaf] sm:$0xff]  ;;  %v4916_v5 = vmax.f32 %v1306_v34, %v1338_v35 }
 0x104   : > { %v1135_v42 = vld [vmem:[#allocation2 + $0xae] sm:$0xff]  ;;  %v1230_v52 = vmax.f32 %v1166_v29, %v1198_v39  ;;  %v1307_v59 = vmax.f32 %v1243_v44, %v4897_v33  ;;  %v4926_v29 = vpop.f32.mrb[12].mxu1  ;;  %v4932_v39 = vmax.f32 %v652_v7, 0.0  ;;  %v4940_v44 = vpop.f32.mrb[14].mxu0 }
 0x105   : > { %v4912_v51 = vld [vmem:[#allocation2 + $0x4a] sm:$0xff]  ;;  %v1167_v24 = vmax.f32 %v4820_v14, %v1135_v42  ;;  %v1449_v14 = vmax.f32 %v1353_v6, %v4882_v16  ;;  %v1327_v33 = vld [vmem:[#allocation2 + $0xb2] sm:$0xff]  ;;  %1402 = vst.msk [vmem:[#allocation2 + $0x168] sm:$0xff] %vm320_vm1, %v4916_v5  ;;  %v4938_v42 = vpop.f32.mrb[13].mxu1 }
 0x106   : > { %v1196_v55 = vld [vmem:[#allocation2 + $0x87] sm:$0xff]  ;;  %v1263_v3 = vld [vmem:[#allocation2 + $0xb1] sm:$0xff]  ;;  %1385 = vst.msk [vmem:[#allocation2 + $0x50] sm:$0xff] %vm320_vm1, %v1353_v6  ;;  %1107 = vst.msk [vmem:[#allocation2 + $0xf0] sm:$0xff] %vm320_vm1, %v4932_v39 }
 0x107   : > { %v1228_v47 = vmax.f32 %v1164_v40, %v1196_v55  ;;  %v1262_v0 = vld [vmem:[#allocation2 + $0xa9] sm:$0xff]  ;;  %v1231_v12 = vmax.f32 %v1167_v24, %v1199_v57  ;;  %v1261_v34 = vld [vmem:[#allocation2 + $0x91] sm:$0xff]  ;;  %v644_v40 = vadd.f32 %v4751_v25, %v4877_v10  ;;  %v4943_v6 = vmax.f32 %v1449_v14, %v4864_v54 }
 0x108   : > { %v1133_v4 = vld [vmem:[#allocation2 + $0x8e] sm:$0xff]  ;;  %v1294_v13 = vmax.f32 %v1230_v52, %v1262_v0 }
 0x109   : > { %v1326_v17 = vld [vmem:[#allocation2 + $0xaa] sm:$0xff]  ;;  %v1165_v18 = vmax.f32 %v4829_v21, %v1133_v4  ;;  %v705_v21 = vadd.f32 %v4751_v25, %v4870_v61  ;;  %v1295_v52 = vmax.f32 %v1231_v12, %v1263_v3  ;;  %v4947_v4 = vpop.f32.mrb[14].mxu1  ;;  %v4949_v61 = vpop.f32.mrb[15].mxu0  ;;  %v1325_v7 = vld [vmem:[#allocation2 + $0x92] sm:$0xff] }
 0x10a   : > { %v1197_v19 = vld [vmem:[#allocation2 + $0x8f] sm:$0xff]  ;;  %v4945_v55 = vmax.f32 %v1294_v13, %v1326_v17  ;;  %v1150_v12 = vld [vmem:[#allocation2 + $0x1a6] sm:$0xff]  ;;  %v4959_v17 = vpop.f32.mrb[15].mxu1 }
 0x10b   : > { %v1260_v28 = vld [vmem:[#allocation2 + $0x89] sm:$0xff]  ;;  %v1229_v24 = vmax.f32 %v1165_v18, %v1197_v19  ;;  %v1273_v14 = vld [vmem:[#allocation2 + $0x151] sm:$0xff]  ;;  %v4961_v18 = vmax.f32 %v1295_v52, %v1327_v33 }
 0x10c   : > { %v1292_v60 = vmax.f32 %v1228_v47, %v1260_v28  ;;  %v1324_v35 = vld [vmem:[#allocation2 + $0x8a] sm:$0xff]  ;;  %v4953_v28 = vmax.f32 %v1307_v59, %v1339_v37  ;;  %1390 = vst.msk [vmem:[#allocation2 + $0xa8] sm:$0xff] %vm320_vm1, %v4945_v55  ;;  %v1182_v59 = vmax.f32 %v4814_v8, %v1150_v12  ;;  %v1337_v53 = vld [vmem:[#allocation2 + $0x152] sm:$0xff] }
 0x10d   : > { %v1145_v16 = vld [vmem:[#allocation2 + $0x14e] sm:$0xff]  ;;  %v1293_v19 = vmax.f32 %v1229_v24, %v1261_v34  ;;  %1391 = vst.msk [vmem:[#allocation2 + $0xb0] sm:$0xff] %vm320_vm1, %v4961_v18 }
 0x10e   : > { %v1209_v57 = vld [vmem:[#allocation2 + $0x14f] sm:$0xff]  ;;  %v4951_v10 = vmax.f32 %v1292_v60, %v1324_v35  ;;  %7252 = vst [vmem:[#allocation3_spill] sm:$0xff] %v4953_v28  ;;  %v1177_v2 = vmax.f32 %v4787_v50, %v1145_v16  ;;  %v1214_v13 = vld [vmem:[#allocation2 + $0x1a7] sm:$0xff]  ;;  %1403 = vst.msk [vmem:[#allocation2 + $0x170] sm:$0xff] %vm320_vm1, %v4953_v28  ;;  %v4988_v28 = vmax.f32 %v644_v40, 0.0 }
 0x10f   : > { %v1272_v47 = vld [vmem:[#allocation2 + $0x149] sm:$0xff]  ;;  %v1357_v58 = vmax.f32 %v1293_v19, %v1325_v7  ;;  %v1246_v49 = vmax.f32 %v1182_v59, %v1214_v13  ;;  %v1279_v56 = vld [vmem:[#allocation2 + $0x1b1] sm:$0xff] }
 0x110   : > { %v1336_v0 = vld [vmem:[#allocation2 + $0x14a] sm:$0xff]  ;;  %v1304_v3 = vmax.f32 %v4900_v43, %v1272_v47  ;;  %1388 = vst.msk [vmem:[#allocation2 + $0x88] sm:$0xff] %vm320_vm1, %v4951_v10  ;;  %v1241_v33 = vmax.f32 %v1177_v2, %v1209_v57  ;;  %v4982_v2 = vmax.f32 %v705_v21, 0.0  ;;  %1105 = vst.msk [vmem:[#allocation2 + $0xd0] sm:$0xff] %vm320_vm1, %v4988_v28 }
 0x111   : > { %v1148_v60 = vld [vmem:[#allocation2 + $0x186] sm:$0xff]  ;;  %v1151_v37 = vld [vmem:[#allocation2 + $0x1ae] sm:$0xff]  ;;  %1389 = vst.msk [vmem:[#allocation2 + $0x90] sm:$0xff] %vm320_vm1, %v1357_v58 }
 0x112   : > { %v1212_v35 = vld [vmem:[#allocation2 + $0x187] sm:$0xff]  ;;  %v4968_v16 = vld [vmem:[#allocation2 + $0x70] sm:$0xff]  ;;  %v4974_v52 = vmax.f32 %v1304_v3, %v1336_v0  ;;  %v1180_v34 = vmax.f32 %v4822_v15, %v1148_v60  ;;  %v1183_v24 = vmax.f32 %v4833_v22, %v1151_v37  ;;  %v1305_v0 = vmax.f32 %v1241_v33, %v1273_v14  ;;  %1120 = vst.msk [vmem:[#allocation2 + $0x1c8] sm:$0xff] %vm320_vm1, %v4982_v2 }
 0x113   : > { %v1215_v47 = vld [vmem:[#allocation2 + $0x1af] sm:$0xff]  ;;  %v1138_v43 = vld [vmem:[#allocation2 + $0xe6] sm:$0xff]  ;;  %v716_v14 = vadd.f32 %v4879_v11, %v4751_v25 }
 0x114   : > { %7253 = vst [vmem:[#allocation4_spill] sm:$0xff] %v4974_v52  ;;  %v1278_v12 = vld [vmem:[#allocation2 + $0x1a9] sm:$0xff]  ;;  %1400 = vst.msk [vmem:[#allocation2 + $0x148] sm:$0xff] %vm320_vm1, %v4974_v52  ;;  %v1244_v3 = vmax.f32 %v1180_v34, %v1212_v35  ;;  %v1247_v60 = vmax.f32 %v1183_v24, %v1215_v47  ;;  %v1343_v37 = vld [vmem:[#allocation2 + $0x1b2] sm:$0xff]  ;;  %v1170_v21 = vmax.f32 %v4886_v23, %v1138_v43 }
 0x115   : > { %v1342_v62 = vld [vmem:[#allocation2 + $0x1aa] sm:$0xff]  ;;  %v1310_v13 = vmax.f32 %v1246_v49, %v1278_v12  ;;  %v4997_v35 = vmax.f32 %v1305_v0, %v1337_v53  ;;  %v803_v53 = vpack.c.bf16 %v4988_v28, %v4888_v20  ;;  %v1341_v0 = vld [vmem:[#allocation2 + $0x192] sm:$0xff] }
 0x116   : > { %v4984_v57 = vld [vmem:[#allocation2 + $0x50] sm:$0xff]  ;;  %v1311_v40 = vmax.f32 %v1247_v60, %v1279_v56  ;;  %v1202_v33 = vld [vmem:[#allocation2 + $0xe7] sm:$0xff] }
 0x117   : > { %v1453_v7 = vmax.f32 %v1357_v58, %v4984_v57  ;;  %v1149_v19 = vld [vmem:[#allocation2 + $0x18e] sm:$0xff]  ;;  %v5005_v43 = vmax.f32 %v1310_v13, %v1342_v62  ;;  %v1234_v47 = vmax.f32 %v1170_v21, %v1202_v33  ;;  %v1136_v52 = vld [vmem:[#allocation2 + $0xc6] sm:$0xff]  ;;  %1401 = vst.msk [vmem:[#allocation2 + $0x150] sm:$0xff] %vm320_vm1, %v4997_v35  ;;  %4292 = vmatprep.mubr.msk.bf16.mxu1 %vm320_vm1, %v803_v53 }
 0x118   : > { %v1213_v59 = vld [vmem:[#allocation2 + $0x18f] sm:$0xff]  ;;  %v1181_v34 = vmax.f32 %v4842_v30, %v1149_v19  ;;  %v1154_v11 = vld [vmem:[#allocation2 + $0x1e6] sm:$0xff]  ;;  %v5011_v56 = vmax.f32 %v1311_v40, %v1343_v37  ;;  %v1168_v60 = vmax.f32 %v4888_v20, %v1136_v52  ;;  %v5022_v40 = vmax.f32 %v716_v14, 0.0 }
 0x119   : > { %v1276_v36 = vld [vmem:[#allocation2 + $0x189] sm:$0xff]  ;;  %v5003_v49 = vmax.f32 %v1453_v7, %v4968_v16  ;;  %7254 = vst [vmem:[#allocation5_spill] sm:$0xff] %v5005_v43  ;;  %v1277_v12 = vld [vmem:[#allocation2 + $0x191] sm:$0xff]  ;;  %1406 = vst.msk [vmem:[#allocation2 + $0x1a8] sm:$0xff] %vm320_vm1, %v5005_v43  ;;  %v1186_v19 = vmax.f32 %v4906_v63, %v1154_v11  ;;  %v7258_v14 = vpack.c.bf16 %v4932_v39, %v4886_v23 }
 0x11a   : > { %v1308_v24 = vmax.f32 %v1244_v3, %v1276_v36  ;;  %v1340_v58 = vld [vmem:[#allocation2 + $0x18a] sm:$0xff]  ;;  %7255 = vst [vmem:[#allocation6_spill] sm:$0xff] %v5011_v56  ;;  %v1245_v36 = vmax.f32 %v1181_v34, %v1213_v59  ;;  %v708_v59 = vadd.f32 %v4751_v25, %v4890_v26  ;;  %1407 = vst.msk [vmem:[#allocation2 + $0x1b0] sm:$0xff] %vm320_vm1, %v5011_v56 }
 0x11b   : > { %v1218_v62 = vld [vmem:[#allocation2 + $0x1e7] sm:$0xff]  ;;  %v5016_v13 = vld [vmem:[#allocation2 + $0x170] sm:$0xff]  ;;  %4293 = vmatmul.mubr.msk.bf16.gmra.mrb[24].mxu1 %vm320_vm1, %v7258_v14  ;;  %1123 = vst.msk [vmem:[#allocation2 + $0x1f0] sm:$0xff] %vm320_vm1, %v5022_v40 }
 0x11c   : > { %v5013_v3 = vmax.f32 %v1308_v24, %v1340_v58  ;;  %v1139_v7 = vld [vmem:[#allocation2 + $0xee] sm:$0xff]  ;;  %7257 = vst [vmem:[#allocation8_spill] sm:$0xff] %v5016_v13  ;;  %v1309_v52 = vmax.f32 %v1245_v36, %v1277_v12  ;;  %v5037_v26 = vmax.f32 %v1186_v19, %v1218_v62  ;;  %v5043_v12 = vmax.f32 %v708_v59, 0.0 }
 0x11d   : > { %v1200_v21 = vld [vmem:[#allocation2 + $0xc7] sm:$0xff]  ;;  %v1171_v33 = vmax.f32 %v4932_v39, %v1139_v7  ;;  %v1203_v24 = vld [vmem:[#allocation2 + $0xef] sm:$0xff]  ;;  %v665_v39 = vadd.f32 %v4921_v9, %v4751_v25  ;;  %v729_v62 = vadd.f32 %v4926_v29, %v4751_v25  ;;  %v721_v59 = vadd.f32 %v4751_v25, %v4938_v42 }
 0x11e   : > { %7256 = vst [vmem:[#allocation7_spill] sm:$0xff] %v5013_v3  ;;  %v1266_v37 = vld [vmem:[#allocation2 + $0xe9] sm:$0xff]  ;;  %1404 = vst.msk [vmem:[#allocation2 + $0x188] sm:$0xff] %vm320_vm1, %v5013_v3  ;;  %v1232_v34 = vmax.f32 %v1168_v60, %v1200_v21  ;;  %v1373_v36 = vmax.f32 %v1309_v52, %v1341_v0  ;;  %v1267_v60 = vld [vmem:[#allocation2 + $0xf1] sm:$0xff]  ;;  %v657_v0 = vadd.f32 %v4751_v25, %v4928_v32 }
 0x11f   : > { %v1298_v58 = vmax.f32 %v1234_v47, %v1266_v37  ;;  %v1235_v11 = vmax.f32 %v1171_v33, %v1203_v24  ;;  %v1330_v53 = vld [vmem:[#allocation2 + $0xea] sm:$0xff]  ;;  %1121 = vst.msk [vmem:[#allocation2 + $0x1d0] sm:$0xff] %vm320_vm1, %v5043_v12  ;;  %v1331_v9 = vld [vmem:[#allocation2 + $0xf2] sm:$0xff]  ;;  %v5064_v14 = vmax.f32 %v665_v39, 0.0 }
 0x120   : > { %v1152_v21 = vld [vmem:[#allocation2 + $0x1c6] sm:$0xff]  ;;  %v1137_v37 = vld [vmem:[#allocation2 + $0xce] sm:$0xff]  ;;  %1405 = vst.msk [vmem:[#allocation2 + $0x190] sm:$0xff] %vm320_vm1, %v1373_v36  ;;  %v5074_v7 = vmax.f32 %v657_v0, 0.0 }
 0x121   : > { %v5045_v47 = vmax.f32 %v1298_v58, %v1330_v53  ;;  %v1216_v23 = vld [vmem:[#allocation2 + $0x1c7] sm:$0xff]  ;;  %v1299_v19 = vmax.f32 %v1235_v11, %v1267_v60  ;;  %v1184_v33 = vmax.f32 %v4982_v2, %v1152_v21  ;;  %v5059_v52 = vld [vmem:[#allocation2 + $0xb0] sm:$0xff]  ;;  %v1169_v29 = vmax.f32 %v4988_v28, %v1137_v37  ;;  %1110 = vst.msk [vmem:[#allocation2 + $0x128] sm:$0xff] %vm320_vm1, %v5064_v14 }
 0x122   : > { %v1264_v24 = vld [vmem:[#allocation2 + $0xc9] sm:$0xff]  ;;  %v5066_v11 = vmax.f32 %v729_v62, 0.0  ;;  %1108 = vst.msk [vmem:[#allocation2 + $0x108] sm:$0xff] %vm320_vm1, %v5074_v7 }
 0x123   : > { %1394 = vst.msk [vmem:[#allocation2 + $0xe8] sm:$0xff] %vm320_vm1, %v5045_v47  ;;  %v1296_v58 = vmax.f32 %v1232_v34, %v1264_v24  ;;  %v5068_v53 = vld [vmem:[#allocation2 + $0x150] sm:$0xff]  ;;  %v5070_v60 = vmax.f32 %v1299_v19, %v1331_v9  ;;  %v5072_v32 = vmax.f32 %v1184_v33, %v1216_v23  ;;  %v668_v23 = vadd.f32 %v4940_v44, %v4751_v25 }
 0x124   : > { %7259 = vst [vmem:[#allocation9_spill] sm:$0xff] %v5068_v53  ;;  %v1201_v21 = vld [vmem:[#allocation2 + $0xcf] sm:$0xff]  ;;  %v1469_v28 = vmax.f32 %v1373_v36, %v5068_v53  ;;  %1126 = vst.msk [vmem:[#allocation2 + $0x228] sm:$0xff] %vm320_vm1, %v5066_v11  ;;  %v732_v19 = vadd.f32 %v4947_v4, %v4751_v25  ;;  %v660_v44 = vadd.f32 %v4751_v25, %v4949_v61 }
 0x125   : > { %v1328_v20 = vld [vmem:[#allocation2 + $0xca] sm:$0xff]  ;;  %v1233_v34 = vmax.f32 %v1169_v29, %v1201_v21  ;;  %1395 = vst.msk [vmem:[#allocation2 + $0xf0] sm:$0xff] %vm320_vm1, %v5070_v60  ;;  %v5106_v29 = vmax.f32 %v668_v23, 0.0  ;;  %v1329_v4 = vld [vmem:[#allocation2 + $0xd2] sm:$0xff] }
 0x126   : > { %v5079_v39 = vmax.f32 %v1296_v58, %v1328_v20  ;;  %v5087_v62 = vld [vmem:[#allocation2 + $0x90] sm:$0xff]  ;;  %v5095_v20 = vmax.f32 %v721_v59, 0.0  ;;  %v5102_v33 = vmax.f32 %v1469_v28, %v5016_v13  ;;  %v724_v59 = vadd.f32 %v4751_v25, %v4959_v17  ;;  %v5110_v58 = vld [vmem:[#allocation2 + $0x8] sm:$0xff] }
 0x127   : > { %v1265_v36 = vld [vmem:[#allocation2 + $0xd1] sm:$0xff]  ;;  %v1282_v9 = vld [vmem:[#allocation2 + $0x1e9] sm:$0xff]  ;;  %7261 = vst [vmem:[#allocation11_spill] sm:$0xff] %v5110_v58  ;;  %v5118_v42 = vmax.f32 %v660_v44, 0.0  ;;  %v806_v17 = vpack.c.bf16 %v5106_v29, %v5064_v14  ;;  %1111 = vst.msk [vmem:[#allocation2 + $0x130] sm:$0xff] %vm320_vm1, %v5106_v29 }
 0x128   : > { %7260 = vst [vmem:[#allocation10_spill] sm:$0xff] %v5102_v33  ;;  %v1297_v37 = vmax.f32 %v1233_v34, %v1265_v36  ;;  %1392 = vst.msk [vmem:[#allocation2 + $0xc8] sm:$0xff] %vm320_vm1, %v5079_v39  ;;  %v1155_v24 = vld [vmem:[#allocation2 + $0x1ee] sm:$0xff]  ;;  %v1314_v28 = vmax.f32 %v5037_v26, %v1282_v9  ;;  %v5116_v36 = vmax.f32 %v732_v19, 0.0  ;;  %v7262_v26 = vmax.f32 %v4844_v31, %v4859_v46 }
 0x129   : > { %v1219_v0 = vld [vmem:[#allocation2 + $0x1ef] sm:$0xff]  ;;  %v1187_v61 = vmax.f32 %v5022_v40, %v1155_v24  ;;  %1124 = vst.msk [vmem:[#allocation2 + $0x208] sm:$0xff] %vm320_vm1, %v5095_v20  ;;  %v5124_v24 = vmax.f32 %v724_v59, 0.0  ;;  %1109 = vst.msk [vmem:[#allocation2 + $0x110] sm:$0xff] %vm320_vm1, %v5118_v42  ;;  %v1140_v53 = vld [vmem:[#allocation2 + $0x106] sm:$0xff] }
 0x12a   : > { %v1283_v21 = vld [vmem:[#allocation2 + $0x1f1] sm:$0xff]  ;;  %v1361_v23 = vmax.f32 %v1297_v37, %v1329_v4  ;;  %v1280_v25 = vld [vmem:[#allocation2 + $0x1c9] sm:$0xff]  ;;  %v1352_v19 = vmax.f32 %v7262_v26, %v4912_v51  ;;  %1127 = vst.msk [vmem:[#allocation2 + $0x230] sm:$0xff] %vm320_vm1, %v5116_v36 }
 0x12b   : > { %v1346_v34 = vld [vmem:[#allocation2 + $0x1ea] sm:$0xff]  ;;  %v1251_v9 = vmax.f32 %v1187_v61, %v1219_v0  ;;  %v1312_v4 = vmax.f32 %v5072_v32, %v1280_v25  ;;  %v1347_v31 = vld [vmem:[#allocation2 + $0x1f2] sm:$0xff]  ;;  %1125 = vst.msk [vmem:[#allocation2 + $0x210] sm:$0xff] %vm320_vm1, %v5124_v24 }
 0x12c   : > { %v1153_v13 = vld [vmem:[#allocation2 + $0x1ce] sm:$0xff]  ;;  %v5130_v44 = vmax.f32 %v1314_v28, %v1346_v34  ;;  %1393 = vst.msk [vmem:[#allocation2 + $0xd0] sm:$0xff] %vm320_vm1, %v1361_v23  ;;  %v1457_v59 = vmax.f32 %v1361_v23, %v5087_v62  ;;  %1384 = vst.msk [vmem:[#allocation2 + $0x48] sm:$0xff] %vm320_vm1, %v1352_v19  ;;  %v1142_v25 = vld [vmem:[#allocation2 + $0x126] sm:$0xff]  ;;  %v1448_v51 = vmax.f32 %v1352_v19, %v5110_v58 }
 0x12d   : > { %v1217_v56 = vld [vmem:[#allocation2 + $0x1cf] sm:$0xff]  ;;  %v1185_v37 = vmax.f32 %v5043_v12, %v1153_v13  ;;  %v805_v13 = vpack.c.bf16 %v5118_v42, %v5074_v7  ;;  %v1315_v61 = vmax.f32 %v1251_v9, %v1283_v21  ;;  %v1158_v26 = vld [vmem:[#allocation2 + $0x226] sm:$0xff]  ;;  %v1174_v3 = vmax.f32 %v5064_v14, %v1142_v25 }
 0x12e   : > { %7263 = vst [vmem:[#allocation12_spill] sm:$0xff] %v5130_v44  ;;  %v1344_v43 = vld [vmem:[#allocation2 + $0x1ca] sm:$0xff]  ;;  %1410 = vst.msk [vmem:[#allocation2 + $0x1e8] sm:$0xff] %vm320_vm1, %v5130_v44  ;;  %v5159_v32 = vmax.f32 %v1457_v59, %v5059_v52  ;;  %v1345_v33 = vld [vmem:[#allocation2 + $0x1d2] sm:$0xff]  ;;  %v1190_v21 = vmax.f32 %v5066_v11, %v1158_v26 }
 0x12f   : > { %v1281_v46 = vld [vmem:[#allocation2 + $0x1d1] sm:$0xff]  ;;  %v5149_v0 = vld [vmem:[#allocation2 + $0x28] sm:$0xff]  ;;  %v1249_v34 = vmax.f32 %v1185_v37, %v1217_v56  ;;  %v5155_v23 = vmax.f32 %v1312_v4, %v1344_v43  ;;  %4296 = vmatprep.mubr.msk.bf16.mxu1 %vm320_vm1, %v805_v13  ;;  %v1579_v43 = vmax.f32 %v4943_v6, %v4968_v16  ;;  %v5166_v56 = vmax.f32 %v1315_v61, %v1347_v31 }
 0x130   : > { %v5151_v28 = vld [vmem:[#allocation2 + $0x1b0] sm:$0xff]  ;;  %v1222_v9 = vld [vmem:[#allocation2 + $0x227] sm:$0xff]  ;;  %v1172_v4 = vmax.f32 %v5074_v7, %v1140_v53  ;;  %4297 = vmatmul.mubr.msk.bf16.gmra.mrb[28].mxu1 %vm320_vm1, %v806_v17  ;;  %v1513_v14 = vmax.f32 %v1448_v51, %v5149_v0  ;;  %v7266_v31 = vpack.c.bf16 %v4787_v50, %v4770_v45 }
 0x131   : > { %7264 = vst [vmem:[#allocation13_spill] sm:$0xff] %v5155_v23  ;;  %7265 = vst [vmem:[#allocation14_spill] sm:$0xff] %v5166_v56  ;;  %v1313_v37 = vmax.f32 %v1249_v34, %v1281_v46  ;;  %v1206_v19 = vld [vmem:[#allocation2 + $0x127] sm:$0xff]  ;;  %v1254_v13 = vmax.f32 %v1190_v21, %v1222_v9  ;;  %v5180_v46 = vmax.f32 %v1579_v43, %v5087_v62  ;;  %v5193_v34 = vld [vmem:[#allocation2 + $0x190] sm:$0xff] }
 0x132   : > { %1408 = vst.msk [vmem:[#allocation2 + $0x1c8] sm:$0xff] %vm320_vm1, %v5155_v23  ;;  %v5173_v59 = vld [vmem:[#allocation2 + $0x68] sm:$0xff]  ;;  %v1238_v25 = vmax.f32 %v1174_v3, %v1206_v19  ;;  %4300 = vmatprep.mubr.msk.bf16.mxu1 %vm320_vm1, %v7266_v31  ;;  %1411 = vst.msk [vmem:[#allocation2 + $0x1f0] sm:$0xff] %vm320_vm1, %v5166_v56  ;;  %v1271_v3 = vld [vmem:[#allocation2 + $0x131] sm:$0xff] }
 0x133   : > { %v1204_v26 = vld [vmem:[#allocation2 + $0x107] sm:$0xff]  ;;  %v1377_v53 = vmax.f32 %v1313_v37, %v1345_v33  ;;  %7267 = vst [vmem:[#allocation15_spill] sm:$0xff] %v5193_v34  ;;  %v1207_v9 = vld [vmem:[#allocation2 + $0x12f] sm:$0xff]  ;;  %v1578_v31 = vmax.f32 %v1513_v14, %v5173_v59  ;;  %2002 = vst.msk [vmem:[#allocation2 + $0x50] sm:$0xff] %vm320_vm1, %v5180_v46  ;;  %v7268_v33 = vmax.f32 %v4892_v27, %v4864_v54 }
 0x134   : > { %v1156_v44 = vld [vmem:[#allocation2 + $0x206] sm:$0xff]  ;;  %v5188_v17 = vmax.f32 %v1172_v4, %v1204_v26  ;;  %v1143_v45 = vld [vmem:[#allocation2 + $0x12e] sm:$0xff]  ;;  %v1583_v14 = vmax.f32 %v5003_v49, %v5059_v52 }
 0x135   : > { %v1220_v6 = vld [vmem:[#allocation2 + $0x207] sm:$0xff]  ;;  %v1188_v51 = vmax.f32 %v5095_v20, %v1156_v44  ;;  %v1175_v21 = vmax.f32 %v5106_v29, %v1143_v45  ;;  %v1516_v44 = vmax.f32 %v7268_v33, %v4984_v57  ;;  %v5203_v37 = vld [vmem:[#allocation2 + $0xd0] sm:$0xff]  ;;  %1409 = vst.msk [vmem:[#allocation2 + $0x1d0] sm:$0xff] %vm320_vm1, %v1377_v53  ;;  %v1473_v4 = vmax.f32 %v1377_v53, %v5193_v34 }
 0x136   : > { %v1270_v50 = vld [vmem:[#allocation2 + $0x129] sm:$0xff]  ;;  %v1454_v45 = vmax.f32 %v4945_v55, %v5173_v59  ;;  %v1335_v49 = vld [vmem:[#allocation2 + $0x132] sm:$0xff] }
 0x137   : > { %v5191_v61 = vld [vmem:[#allocation2 + $0x88] sm:$0xff]  ;;  %v1302_v43 = vmax.f32 %v1238_v25, %v1270_v50  ;;  %v5207_v29 = vmax.f32 %v1188_v51, %v1220_v6  ;;  %v1239_v50 = vmax.f32 %v1175_v21, %v1207_v9  ;;  %v5222_v51 = vmax.f32 %v1473_v4, %v5151_v28  ;;  %v5224_v7 = vld [vmem:[#allocation2 + $0xf0] sm:$0xff] }
 0x138   : > { %v1334_v19 = vld [vmem:[#allocation2 + $0x12a] sm:$0xff]  ;;  %v5217_v53 = vmax.f32 %v1578_v31, %v5191_v61  ;;  %v1351_v56 = vld [vmem:[#allocation2 + $0x232] sm:$0xff] }
 0x139   : > { %v1159_v25 = vld [vmem:[#allocation2 + $0x22e] sm:$0xff]  ;;  %v5213_v54 = vmax.f32 %v1302_v43, %v1334_v19  ;;  %7269 = vst [vmem:[#allocation16_spill] sm:$0xff] %v5222_v51  ;;  %v1581_v43 = vmax.f32 %v1516_v44, %v5087_v62  ;;  %v5228_v19 = vmax.f32 %v1583_v14, %v5203_v37 }
 0x13a   : > { %v1223_v26 = vld [vmem:[#allocation2 + $0x22f] sm:$0xff]  ;;  %v1191_v27 = vmax.f32 %v5116_v36, %v1159_v25  ;;  %v1303_v25 = vmax.f32 %v1239_v50, %v1271_v3  ;;  %v1707_v34 = vpack.c.bf16 %v5180_v46, %v5217_v53  ;;  %v7270_v3 = vpack.c.bf16 %v4779_v48, %v4763_v41 }
 0x13b   : > { %v1286_v57 = vld [vmem:[#allocation2 + $0x229] sm:$0xff]  ;;  %v1287_v55 = vld [vmem:[#allocation2 + $0x231] sm:$0xff]  ;;  %1398 = vst.msk [vmem:[#allocation2 + $0x128] sm:$0xff] %vm320_vm1, %v5213_v54  ;;  %2006 = vst.msk [vmem:[#allocation2 + $0x90] sm:$0xff] %vm320_vm1, %v5228_v19 }
 0x13c   : > { %v1350_v33 = vld [vmem:[#allocation2 + $0x22a] sm:$0xff]  ;;  %v1318_v21 = vmax.f32 %v1254_v13, %v1286_v57  ;;  %v1255_v31 = vmax.f32 %v1191_v27, %v1223_v26  ;;  %4301 = vmatmul.mubr.msk.bf16.gmra.mrb[32].mxu1 %vm320_vm1, %v7270_v3  ;;  %v5243_v26 = vmax.f32 %v1581_v43, %v5059_v52  ;;  %v5248_v50 = vmax.f32 %v1303_v25, %v1335_v49 }
 0x13d   : > { %v5219_v6 = vld [vmem:[#allocation2 + $0xc8] sm:$0xff]  ;;  %v1269_v57 = vld [vmem:[#allocation2 + $0x111] sm:$0xff]  ;;  %4318 = vmatprep.mubr.msk.bf16.mxu0 %vm320_vm1, %v1707_v34  ;;  %v7272_v34 = vmax.f32 %v4961_v18, %v4968_v16 }
 0x13e   : > { %v1141_v9 = vld [vmem:[#allocation2 + $0x10e] sm:$0xff]  ;;  %v5235_v13 = vmax.f32 %v1318_v21, %v1350_v33  ;;  %v1319_v27 = vmax.f32 %v1255_v31, %v1287_v55  ;;  %2004 = vst.msk [vmem:[#allocation2 + $0x70] sm:$0xff] %vm320_vm1, %v5243_v26  ;;  %1399 = vst.msk [vmem:[#allocation2 + $0x130] sm:$0xff] %vm320_vm1, %v5248_v50 }
 0x13f   : > { %v1173_v4 = vmax.f32 %v5118_v42, %v1141_v9  ;;  %v1205_v51 = vld [vmem:[#allocation2 + $0x10f] sm:$0xff]  ;;  %v1519_v42 = vmax.f32 %v1454_v45, %v5191_v61  ;;  %v1520_v55 = vmax.f32 %v7272_v34, %v5087_v62  ;;  %v7273_v62 = vmax.f32 %v4875_v1, %v5149_v0 }
 0x140   : > { %v1268_v23 = vld [vmem:[#allocation2 + $0x109] sm:$0xff]  ;;  %1414 = vst.msk [vmem:[#allocation2 + $0x228] sm:$0xff] %vm320_vm1, %v5235_v13  ;;  %v1285_v9 = vld [vmem:[#allocation2 + $0x211] sm:$0xff]  ;;  %v5274_v31 = vmax.f32 %v1319_v27, %v1351_v56 }
 0x141   : > { %v1300_v44 = vmax.f32 %v5188_v17, %v1268_v23  ;;  %v1157_v14 = vld [vmem:[#allocation2 + $0x20e] sm:$0xff]  ;;  %v1237_v23 = vmax.f32 %v1173_v4, %v1205_v51  ;;  %v7271_v51 = vpack.c.bf16 %v4842_v30, %v4822_v15  ;;  %v1584_v25 = vmax.f32 %v1519_v42, %v5219_v6 }
 0x142   : > { %v1221_v58 = vld [vmem:[#allocation2 + $0x20f] sm:$0xff]  ;;  %v1189_v21 = vmax.f32 %v5124_v24, %v1157_v14  ;;  %1415 = vst.msk [vmem:[#allocation2 + $0x230] sm:$0xff] %vm320_vm1, %v5274_v31 }
 0x143   : > { %v5250_v33 = vld [vmem:[#allocation2 + $0x1f0] sm:$0xff]  ;;  %v1420_v43 = vld [vmem:[#allocation2 + $0x48] sm:$0xff]  ;;  %4304 = vmatprep.mubr.msk.bf16.mxu1 %vm320_vm1, %v7271_v51  ;;  %v1301_v4 = vmax.f32 %v1237_v23, %v1269_v57  ;;  %v1585_v57 = vmax.f32 %v1520_v55, %v5203_v37  ;;  %v7274_v51 = vpack.c.bf16 %v4833_v22, %v4814_v8  ;;  %v7276_v22 = vmax.f32 %v5070_v60, %v5059_v52 }
 0x144   : > { %v1332_v17 = vld [vmem:[#allocation2 + $0x10a] sm:$0xff]  ;;  %2001 = vst.msk [vmem:[#allocation2 + $0x48] sm:$0xff] %vm320_vm1, %v5217_v53  ;;  %v1333_v30 = vld [vmem:[#allocation2 + $0x112] sm:$0xff]  ;;  %v1515_v14 = vmax.f32 %v7273_v62, %v1420_v43  ;;  %v1452_v56 = vmax.f32 %v4951_v10, %v1420_v43 }
 0x145   : > { %v1284_v41 = vld [vmem:[#allocation2 + $0x209] sm:$0xff]  ;;  %v5256_v48 = vmax.f32 %v1300_v44, %v1332_v17  ;;  %v1253_v44 = vmax.f32 %v1189_v21, %v1221_v58  ;;  %v1349_v18 = vld [vmem:[#allocation2 + $0x212] sm:$0xff]  ;;  %v1365_v42 = vmax.f32 %v1301_v4, %v1333_v30  ;;  %v5303_v21 = vmax.f32 %v1585_v57, %v5224_v7  ;;  %4305 = vmatmul.mubr.msk.bf16.gmra.mrb[36].mxu1 %vm320_vm1, %v7274_v51 }
 0x146   : > { %v1316_v45 = vmax.f32 %v5207_v29, %v1284_v41  ;;  %v1348_v49 = vld [vmem:[#allocation2 + $0x20a] sm:$0xff]  ;;  %v1463_v29 = vmax.f32 %v5248_v50, %v5224_v7  ;;  %v1580_v1 = vmax.f32 %v1515_v14, %v5191_v61  ;;  %v1517_v10 = vmax.f32 %v1452_v56, %v5173_v59 }
 0x147   : > { %v1613_v15 = vld [vmem:[#allocation2 + $0xa8] sm:$0xff]  ;;  %1396 = vst.msk [vmem:[#allocation2 + $0x108] sm:$0xff] %vm320_vm1, %v5256_v48  ;;  %v1317_v27 = vmax.f32 %v1253_v44, %v1285_v9  ;;  %v5296_v17 = vld [vmem:[#allocation2 + $0x1d0] sm:$0xff]  ;;  %v1456_v41 = vmax.f32 %v5079_v39, %v5191_v61  ;;  %1397 = vst.msk [vmem:[#allocation2 + $0x110] sm:$0xff] %vm320_vm1, %v1365_v42  ;;  %v1461_v9 = vmax.f32 %v1365_v42, %v5203_v37 }
 0x148   : > { %v5280_v16 = vmax.f32 %v1316_v45, %v1348_v49  ;;  %v5287_v58 = vld [vmem:[#allocation2 + $0xe8] sm:$0xff]  ;;  %v1587_v49 = vmax.f32 %v5159_v32, %v5224_v7  ;;  %v1458_v43 = vmax.f32 %v5045_v47, %v1613_v15  ;;  %v5314_v59 = vmax.f32 %v1580_v1, %v1613_v15  ;;  %2008 = vst.msk [vmem:[#allocation2 + $0xb0] sm:$0xff] %vm320_vm1, %v5303_v21  ;;  %v5340_v44 = vld [vmem:[#allocation2 + $0x130] sm:$0xff] }
 0x149   : > { %v5294_v23 = vmax.f32 %v1584_v25, %v5287_v58  ;;  %v1381_v45 = vmax.f32 %v1317_v27, %v1349_v18  ;;  %v1582_v39 = vmax.f32 %v1517_v10, %v1613_v15  ;;  %v1521_v34 = vmax.f32 %v1456_v41, %v1613_v15  ;;  %v5338_v4 = vld [vmem:[#allocation2 + $0x128] sm:$0xff]  ;;  %v5374_v10 = vld [vmem:[#allocation2 + $0x51] sm:$0xff] }
 0x14a   : > { %1412 = vst.msk [vmem:[#allocation2 + $0x208] sm:$0xff] %vm320_vm1, %v5280_v16  ;;  %v1526_v55 = vmax.f32 %v1461_v9, %v5224_v7  ;;  %v7275_v32 = vpack.c.bf16 %v5043_v12, %v4982_v2  ;;  %v1523_v8 = vmax.f32 %v1458_v43, %v5219_v6  ;;  %v5336_v25 = vmax.f32 %v7276_v22, %v5203_v37 }
 0x14b   : > { %2007 = vst.msk [vmem:[#allocation2 + $0xa8] sm:$0xff] %vm320_vm1, %v5294_v23  ;;  %v1710_v61 = vpack.c.bf16 %v5303_v21, %v5294_v23  ;;  %1413 = vst.msk [vmem:[#allocation2 + $0x210] sm:$0xff] %vm320_vm1, %v1381_v45  ;;  %v1477_v47 = vmax.f32 %v1381_v45, %v5296_v17  ;;  %v2033_v15 = vld [vmem:[#allocation2 + $0x46] sm:$0xff]  ;;  %v2034_v30 = vld [vmem:[#allocation2 + $0x4e] sm:$0xff]  ;;  %v1708_v18 = vpack.c.bf16 %v5243_v26, %v5314_v59 }
 0x14c   : > { %4308 = vmatprep.mubr.msk.bf16.mxu1 %vm320_vm1, %v7275_v32  ;;  %v5345_v2 = vmax.f32 %v1582_v39, %v5219_v6  ;;  %2003 = vst.msk [vmem:[#allocation2 + $0x68] sm:$0xff] %vm320_vm1, %v5314_v59  ;;  %v1586_v12 = vmax.f32 %v1521_v34, %v5287_v58  ;;  %v1460_v52 = vmax.f32 %v5256_v48, %v5219_v6  ;;  %v2097_v56 = vld [vmem:[#allocation2 + $0x47] sm:$0xff]  ;;  %v2098_v57 = vld [vmem:[#allocation2 + $0x4f] sm:$0xff] }
 0x14d   : > { %v5353_v60 = vmax.f32 %v1477_v47, %v5250_v33  ;;  %v2065_v37 = vmax.f32 %v5217_v53, %v2033_v15  ;;  %v2066_v62 = vmax.f32 %v5180_v46, %v2034_v30  ;;  %v1591_v14 = vmax.f32 %v1526_v55, %v5340_v44  ;;  %4319 = vmatmul.mubr.msk.bf16.vlgmr.msra.gmra.mrb[16].mxu0 %vm320_vm1, %v1708_v18  ;;  %v5381_v45 = vld [vmem:[#allocation2 + $0x150] sm:$0xff]  ;;  %v7277_v34 = vld [vmem:[#allocation4_spill] sm:$0xff] }
 0x14e   : > { %v1709_v42 = vpack.c.bf16 %v5228_v19, %v5345_v2  ;;  %2005 = vst.msk [vmem:[#allocation2 + $0x88] sm:$0xff] %vm320_vm1, %v5345_v2  ;;  %v5363_v6 = vld [vmem:[#allocation2 + $0x108] sm:$0xff]  ;;  %v1525_v48 = vmax.f32 %v1460_v52, %v5287_v58  ;;  %v1462_v53 = vmax.f32 %v5213_v54, %v5287_v58  ;;  %v1466_v46 = vmax.f32 %v4916_v5, %v5338_v4  ;;  %v5383_v43 = vld [vmem:[#allocation2 + $0x110] sm:$0xff] }
 0x14f   : > { %v5370_v27 = vmax.f32 %v2065_v37, %v2097_v56  ;;  %v5372_v1 = vmax.f32 %v2066_v62, %v2098_v57  ;;  %4385 = vmatpush3.bf16.msra.mxu0 %v4856_v38  ;;  %v5378_v41 = vmax.f32 %v1586_v12, %v5363_v6  ;;  %v1588_v9 = vmax.f32 %v1523_v8, %v5363_v6  ;;  %v5385_v54 = vld [vmem:[#allocation2 + $0x49] sm:$0xff] }
 0x150   : > { %4322 = vmatprep.mubr.msk.bf16.mxu0 %vm320_vm1, %v1709_v42  ;;  %v1590_v51 = vmax.f32 %v1525_v48, %v5338_v4  ;;  %v5390_v39 = vmax.f32 %v1591_v14, %v5381_v45  ;;  %v1527_v38 = vmax.f32 %v1462_v53, %v5363_v6  ;;  %v1464_v55 = vmax.f32 %v7277_v34, %v5363_v6  ;;  %v5405_v30 = vld [vmem:[#allocation2 + $0x148] sm:$0xff] }
 0x151   : > { %v2193_v47 = vmax.f32 %v5370_v27, %v5385_v54  ;;  %v2194_v32 = vmax.f32 %v5372_v1, %v5374_v10  ;;  %v5401_v15 = vmax.f32 %v1587_v49, %v5383_v43  ;;  %2009 = vst.msk [vmem:[#allocation2 + $0xc8] sm:$0xff] %vm320_vm1, %v5378_v41  ;;  %v7278_v52 = vpack.c.bf16 %v5022_v40, %v4906_v63  ;;  %v5422_v14 = vld [vmem:[#allocation2 + $0x168] sm:$0xff]  ;;  %v5588_v54 = vld [vmem:[#allocation2 + $0x30] sm:$0xff]  ;;  %v7284_v1 = vld [vmem:[#allocation11_spill] sm:$0xff] }
 0x152   : > { %v2039_v58 = vld [vmem:[#allocation2 + $0xa6] sm:$0xff]  ;;  %v2040_v8 = vld [vmem:[#allocation2 + $0xae] sm:$0xff]  ;;  %v1589_v37 = vmax.f32 %v5336_v25, %v5383_v43  ;;  %v5415_v62 = vmax.f32 %v1588_v9, %v5338_v4  ;;  %v5418_v49 = vmax.f32 %v1590_v51, %v5405_v30  ;;  %2014 = vst.msk [vmem:[#allocation2 + $0x110] sm:$0xff] %vm320_vm1, %v5390_v39  ;;  %v7279_v25 = vpack.c.bf16 %v5124_v24, %v5095_v20 }
 0x153   : > { %v2071_v22 = vmax.f32 %v5294_v23, %v2039_v58  ;;  %v2072_v18 = vmax.f32 %v5303_v21, %v2040_v8  ;;  %v2103_v12 = vld [vmem:[#allocation2 + $0xa7] sm:$0xff]  ;;  %4309 = vmatmul.mubr.msk.bf16.gmra.mrb[40].mxu1 %vm320_vm1, %v7278_v52  ;;  %v2104_v42 = vld [vmem:[#allocation2 + $0xaf] sm:$0xff]  ;;  %v1711_v40 = vpack.c.bf16 %v5401_v15, %v5378_v41  ;;  %2010 = vst.msk [vmem:[#allocation2 + $0xd0] sm:$0xff] %vm320_vm1, %v5401_v15 }
 0x154   : > { %v2035_v56 = vld [vmem:[#allocation2 + $0x66] sm:$0xff]  ;;  %v2036_v57 = vld [vmem:[#allocation2 + $0x6e] sm:$0xff]  ;;  %4312 = vmatprep.mubr.msk.bf16.mxu1 %vm320_vm1, %v7279_v25  ;;  %v1528_v48 = vmax.f32 %v1463_v29, %v5383_v43  ;;  %v1592_v53 = vmax.f32 %v1527_v38, %v5405_v30  ;;  %2011 = vst.msk [vmem:[#allocation2 + $0xe8] sm:$0xff] %vm320_vm1, %v5415_v62  ;;  %2013 = vst.msk [vmem:[#allocation2 + $0x108] sm:$0xff] %vm320_vm1, %v5418_v49  ;;  %v5513_v6 = vmax.f32 %v1466_v46, %v5405_v30 }
 0x155   : > { %v2135_v63 = vmax.f32 %v2071_v22, %v2103_v12  ;;  %v2067_v9 = vmax.f32 %v5314_v59, %v2035_v56  ;;  %v2068_v58 = vmax.f32 %v5243_v26, %v2036_v57  ;;  %v2099_v51 = vld [vmem:[#allocation2 + $0x67] sm:$0xff]  ;;  %v2136_v8 = vmax.f32 %v2072_v18, %v2104_v42  ;;  %v5446_v20 = vld [vmem:[#allocation2 + $0x170] sm:$0xff]  ;;  %4323 = vmatmul.mubr.msk.bf16.gmra.mrb[20].mxu0 %vm320_vm1, %v1710_v61 }
 0x156   : > { %v2167_v22 = vld [vmem:[#allocation2 + $0xa9] sm:$0xff]  ;;  %v5440_v12 = vmax.f32 %v1589_v37, %v5340_v44  ;;  %v1713_v26 = vpack.c.bf16 %v5390_v39, %v5418_v49  ;;  %v1593_v59 = vmax.f32 %v1528_v48, %v5381_v45  ;;  %v5452_v38 = vmax.f32 %v1592_v53, %v5422_v14  ;;  %v2164_v57 = vld [vmem:[#allocation2 + $0x71] sm:$0xff]  ;;  %4326 = vmatprep.mubr.msk.bf16.mxu0 %vm320_vm1, %v1711_v40 }
 0x157   : > { %v2037_v24 = vld [vmem:[#allocation2 + $0x86] sm:$0xff]  ;;  %v2038_v7 = vld [vmem:[#allocation2 + $0x8e] sm:$0xff]  ;;  %v2199_v29 = vmax.f32 %v2135_v63, %v2167_v22  ;;  %v2131_v37 = vmax.f32 %v2067_v9, %v2099_v51 }
 0x158   : > { %v2100_v50 = vld [vmem:[#allocation2 + $0x6f] sm:$0xff]  ;;  %v2069_v18 = vmax.f32 %v5345_v2, %v2037_v24  ;;  %v2070_v52 = vmax.f32 %v5228_v19, %v2038_v7  ;;  %2012 = vst.msk [vmem:[#allocation2 + $0xf0] sm:$0xff] %vm320_vm1, %v5440_v12  ;;  %v2101_v45 = vld [vmem:[#allocation2 + $0x87] sm:$0xff]  ;;  %v1712_v19 = vpack.c.bf16 %v5440_v12, %v5415_v62  ;;  %v5468_v23 = vmax.f32 %v1593_v59, %v5446_v20 }
 0x159   : > { %v2132_v56 = vmax.f32 %v2068_v58, %v2100_v50  ;;  %v2168_v42 = vld [vmem:[#allocation2 + $0xb1] sm:$0xff]  ;;  %v2163_v48 = vld [vmem:[#allocation2 + $0x69] sm:$0xff]  ;;  %2015 = vst.msk [vmem:[#allocation2 + $0x128] sm:$0xff] %vm320_vm1, %v5452_v38 }
 0x15a   : > { %v2231_v63 = vld [vmem:[#allocation2 + $0xaa] sm:$0xff]  ;;  %v2200_v53 = vmax.f32 %v2136_v8, %v2168_v42  ;;  %v2133_v21 = vmax.f32 %v2069_v18, %v2101_v45  ;;  %v2195_v58 = vmax.f32 %v2131_v37, %v2163_v48  ;;  %v2232_v22 = vld [vmem:[#allocation2 + $0xb2] sm:$0xff]  ;;  %v1714_v59 = vpack.c.bf16 %v5468_v23, %v5452_v38  ;;  %2016 = vst.msk [vmem:[#allocation2 + $0x130] sm:$0xff] %vm320_vm1, %v5468_v23 }
 0x15b   : > { %v2102_v25 = vld [vmem:[#allocation2 + $0x8f] sm:$0xff]  ;;  %v5462_v2 = vmax.f32 %v2199_v29, %v2231_v63  ;;  %v2196_v51 = vmax.f32 %v2132_v56, %v2164_v57  ;;  %v2041_v8 = vld [vmem:[#allocation2 + $0xc6] sm:$0xff]  ;;  %v1465_v18 = vmax.f32 %v4997_v35, %v5383_v43 }
 0x15c   : > { %v2134_v61 = vmax.f32 %v2070_v52, %v2102_v25  ;;  %v2166_v9 = vld [vmem:[#allocation2 + $0x91] sm:$0xff]  ;;  %v2165_v24 = vld [vmem:[#allocation2 + $0x89] sm:$0xff]  ;;  %v5472_v40 = vmax.f32 %v2200_v53, %v2232_v22  ;;  %v2073_v29 = vmax.f32 %v5378_v41, %v2041_v8  ;;  %v7280_v41 = vpack.c.bf16 %v5116_v36, %v5066_v11 }
 0x15d   : > { %v2227_v7 = vld [vmem:[#allocation2 + $0x6a] sm:$0xff]  ;;  %v2228_v50 = vld [vmem:[#allocation2 + $0x72] sm:$0xff]  ;;  %2295 = vst.msk [vmem:[#allocation2 + $0xa8] sm:$0xff] %vm320_vm1, %v5462_v2  ;;  %v2197_v52 = vmax.f32 %v2133_v21, %v2165_v24  ;;  %v1529_v53 = vmax.f32 %v1464_v55, %v5338_v4  ;;  %v1530_v21 = vmax.f32 %v1465_v18, %v5340_v44  ;;  %4327 = vmatmul.mubr.msk.bf16.gmra.mrb[24].mxu0 %vm320_vm1, %v1712_v19 }
 0x15e   : > { %v2198_v37 = vmax.f32 %v2134_v61, %v2166_v9  ;;  %v5483_v56 = vmax.f32 %v2195_v58, %v2227_v7  ;;  %v5485_v57 = vmax.f32 %v2196_v51, %v2228_v50  ;;  %v2042_v42 = vld [vmem:[#allocation2 + $0xce] sm:$0xff]  ;;  %4313 = vmatmul.mubr.msk.bf16.gmra.mrb[44].mxu1 %vm320_vm1, %v7280_v41  ;;  %2296 = vst.msk [vmem:[#allocation2 + $0xb0] sm:$0xff] %vm320_vm1, %v5472_v40  ;;  %v2045_v9 = vld [vmem:[#allocation2 + $0x106] sm:$0xff] }
 0x15f   : > { %v2105_v63 = vld [vmem:[#allocation2 + $0xc7] sm:$0xff]  ;;  %v2230_v25 = vld [vmem:[#allocation2 + $0x92] sm:$0xff]  ;;  %v2074_v35 = vmax.f32 %v5401_v15, %v2042_v42  ;;  %v2077_v7 = vmax.f32 %v5418_v49, %v2045_v9  ;;  %4330 = vmatprep.mubr.msk.bf16.mxu0 %vm320_vm1, %v1713_v26 }
 0x160   : > { %v2229_v45 = vld [vmem:[#allocation2 + $0x8a] sm:$0xff]  ;;  %v2137_v48 = vmax.f32 %v2073_v29, %v2105_v63  ;;  %v5501_v11 = vmax.f32 %v2198_v37, %v2230_v25  ;;  %2291 = vst.msk [vmem:[#allocation2 + $0x68] sm:$0xff] %vm320_vm1, %v5483_v56  ;;  %2292 = vst.msk [vmem:[#allocation2 + $0x70] sm:$0xff] %vm320_vm1, %v5485_v57  ;;  %v7281_v58 = vld [vmem:[#allocation3_spill] sm:$0xff]  ;;  %v1594_v29 = vmax.f32 %v1529_v53, %v5422_v14 }
 0x161   : > { %v2106_v43 = vld [vmem:[#allocation2 + $0xcf] sm:$0xff]  ;;  %v5499_v61 = vmax.f32 %v2197_v52, %v2229_v45  ;;  %v2043_v15 = vld [vmem:[#allocation2 + $0xe6] sm:$0xff]  ;;  %v1467_v51 = vmax.f32 %v7281_v58, %v5340_v44 }
 0x162   : > { %v2169_v36 = vld [vmem:[#allocation2 + $0xc9] sm:$0xff]  ;;  %v2138_v34 = vmax.f32 %v2074_v35, %v2106_v43  ;;  %v2170_v55 = vld [vmem:[#allocation2 + $0xd1] sm:$0xff]  ;;  %v2075_v24 = vmax.f32 %v5415_v62, %v2043_v15  ;;  %2294 = vst.msk [vmem:[#allocation2 + $0x90] sm:$0xff] %vm320_vm1, %v5501_v11  ;;  %v1595_v62 = vmax.f32 %v1530_v21, %v5446_v20 }
 0x163   : > { %v2201_v22 = vmax.f32 %v2137_v48, %v2169_v36  ;;  %v2044_v8 = vld [vmem:[#allocation2 + $0xee] sm:$0xff]  ;;  %2293 = vst.msk [vmem:[#allocation2 + $0x88] sm:$0xff] %vm320_vm1, %v5499_v61  ;;  %v2047_v21 = vld [vmem:[#allocation2 + $0x126] sm:$0xff] }
 0x164   : > { %v5517_v50 = vld [vmem:[#allocation2 + $0x188] sm:$0xff]  ;;  %v2234_v5 = vld [vmem:[#allocation2 + $0xd2] sm:$0xff]  ;;  %v2076_v4 = vmax.f32 %v5440_v12, %v2044_v8  ;;  %v2202_v42 = vmax.f32 %v2138_v34, %v2170_v55 }
 0x165   : > { %v2233_v44 = vld [vmem:[#allocation2 + $0xca] sm:$0xff]  ;;  %v1596_v25 = vmax.f32 %v5513_v6, %v5517_v50  ;;  %v5538_v36 = vmax.f32 %v1594_v29, %v5517_v50  ;;  %4331 = vmatmul.mubr.msk.bf16.gmra.mrb[28].mxu0 %vm320_vm1, %v1714_v59 }
 0x166   : > { %v2107_v46 = vld [vmem:[#allocation2 + $0xe7] sm:$0xff]  ;;  %v1628_v18 = vld [vmem:[#allocation2 + $0x190] sm:$0xff]  ;;  %v5528_v63 = vmax.f32 %v2201_v22, %v2233_v44  ;;  %v5540_v15 = vmax.f32 %v2202_v42, %v2234_v5 }
 0x167   : > { %v7282_v52 = vld [vmem:[#allocation9_spill] sm:$0xff]  ;;  %v2139_v45 = vmax.f32 %v2075_v24, %v2107_v46  ;;  %v2109_v12 = vld [vmem:[#allocation2 + $0x107] sm:$0xff]  ;;  %v5545_v6 = vmax.f32 %v1595_v62, %v1628_v18  ;;  %2017 = vst.msk [vmem:[#allocation2 + $0x148] sm:$0xff] %vm320_vm1, %v5538_v36 }
 0x168   : > { %v1532_v37 = vmax.f32 %v1467_v51, %v7282_v52  ;;  %v2108_v41 = vld [vmem:[#allocation2 + $0xef] sm:$0xff]  ;;  %v2141_v53 = vmax.f32 %v2077_v7, %v2109_v12  ;;  %2297 = vst.msk [vmem:[#allocation2 + $0xc8] sm:$0xff] %vm320_vm1, %v5528_v63  ;;  %v2079_v51 = vmax.f32 %v5452_v38, %v2047_v21  ;;  %v2111_v7 = vld [vmem:[#allocation2 + $0x127] sm:$0xff]  ;;  %2298 = vst.msk [vmem:[#allocation2 + $0xd0] sm:$0xff] %vm320_vm1, %v5540_v15 }
 0x169   : > { %v2046_v19 = vld [vmem:[#allocation2 + $0x10e] sm:$0xff]  ;;  %v2140_v35 = vmax.f32 %v2076_v4, %v2108_v41  ;;  %v1715_v52 = vpack.c.bf16 %v5545_v6, %v5538_v36  ;;  %2018 = vst.msk [vmem:[#allocation2 + $0x150] sm:$0xff] %vm320_vm1, %v5545_v6 }
 0x16a   : > { %v2171_v20 = vld [vmem:[#allocation2 + $0xe9] sm:$0xff]  ;;  %v2172_v43 = vld [vmem:[#allocation2 + $0xf1] sm:$0xff]  ;;  %v2078_v48 = vmax.f32 %v5390_v39, %v2046_v19  ;;  %v2143_v62 = vmax.f32 %v2079_v51, %v2111_v7  ;;  %v1597_v42 = vmax.f32 %v1532_v37, %v1628_v18  ;;  %v2355_v7 = vmax.f32 %v5483_v56, %v5149_v0 }
 0x16b   : > { %v2203_v49 = vmax.f32 %v2139_v45, %v2171_v20  ;;  %v2110_v26 = vld [vmem:[#allocation2 + $0x10f] sm:$0xff]  ;;  %v2204_v34 = vmax.f32 %v2140_v35, %v2172_v43  ;;  %4334 = vmatprep.mubr.msk.bf16.mxu0 %vm320_vm1, %v1715_v52 }
 0x16c   : > { %v2173_v9 = vld [vmem:[#allocation2 + $0x109] sm:$0xff]  ;;  %v2142_v55 = vmax.f32 %v2078_v48, %v2110_v26  ;;  %v2174_v22 = vld [vmem:[#allocation2 + $0x111] sm:$0xff]  ;;  %v5570_v18 = vmax.f32 %v1597_v42, %v5151_v28  ;;  %v2356_v42 = vmax.f32 %v5485_v57, %v5588_v54 }
 0x16d   : > { %v2048_v58 = vld [vmem:[#allocation2 + $0x12e] sm:$0xff]  ;;  %v2205_v8 = vmax.f32 %v2141_v53, %v2173_v9 }
 0x16e   : > { %v2235_v39 = vld [vmem:[#allocation2 + $0xea] sm:$0xff]  ;;  %v2080_v24 = vmax.f32 %v5468_v23, %v2048_v58  ;;  %v2236_v5 = vld [vmem:[#allocation2 + $0xf2] sm:$0xff]  ;;  %v2206_v19 = vmax.f32 %v2142_v55, %v2174_v22  ;;  %2020 = vst.msk [vmem:[#allocation2 + $0x170] sm:$0xff] %vm320_vm1, %v5570_v18 }
 0x16f   : > { %v5550_v44 = vld [vmem:[#allocation2 + $0x1a8] sm:$0xff]  ;;  %v5554_v4 = vmax.f32 %v2203_v49, %v2235_v39  ;;  %v2322_v41 = vld [vmem:[#allocation2 + $0x10] sm:$0xff]  ;;  %v5560_v45 = vmax.f32 %v2204_v34, %v2236_v5 }
 0x170   : > { %v2237_v46 = vld [vmem:[#allocation2 + $0x10a] sm:$0xff]  ;;  %v2238_v53 = vld [vmem:[#allocation2 + $0x112] sm:$0xff]  ;;  %v5567_v26 = vmax.f32 %v1596_v25, %v5550_v44 }
 0x171   : > { %v2112_v29 = vld [vmem:[#allocation2 + $0x12f] sm:$0xff]  ;;  %v5562_v12 = vmax.f32 %v2205_v8, %v2237_v46  ;;  %2299 = vst.msk [vmem:[#allocation2 + $0xe8] sm:$0xff] %vm320_vm1, %v5554_v4  ;;  %2300 = vst.msk [vmem:[#allocation2 + $0xf0] sm:$0xff] %vm320_vm1, %v5560_v45  ;;  %v5577_v58 = vmax.f32 %v2206_v19, %v2238_v53  ;;  %v2049_v5 = vld [vmem:[#allocation2 + $0x146] sm:$0xff] }
 0x172   : > { %v2144_v35 = vmax.f32 %v2080_v24, %v2112_v29  ;;  %v2175_v20 = vld [vmem:[#allocation2 + $0x129] sm:$0xff]  ;;  %v2176_v21 = vld [vmem:[#allocation2 + $0x131] sm:$0xff]  ;;  %v1716_v38 = vpack.c.bf16 %v5570_v18, %v5567_v26  ;;  %2019 = vst.msk [vmem:[#allocation2 + $0x168] sm:$0xff] %vm320_vm1, %v5567_v26 }
 0x173   : > { %v2225_v43 = vld [vmem:[#allocation2 + $0x4a] sm:$0xff]  ;;  %v2207_v49 = vmax.f32 %v2143_v62, %v2175_v20  ;;  %v2226_v37 = vld [vmem:[#allocation2 + $0x52] sm:$0xff]  ;;  %2301 = vst.msk [vmem:[#allocation2 + $0x108] sm:$0xff] %vm320_vm1, %v5562_v12  ;;  %2302 = vst.msk [vmem:[#allocation2 + $0x110] sm:$0xff] %vm320_vm1, %v5577_v58  ;;  %v2081_v20 = vmax.f32 %v5538_v36, %v2049_v5 }
 0x174   : > { %v1567_v48 = vld [vmem:[#allocation2 + $0x1b0] sm:$0xff]  ;;  %v2257_v9 = vmax.f32 %v2193_v47, %v2225_v43  ;;  %v2208_v25 = vmax.f32 %v2144_v35, %v2176_v21  ;;  %v2258_v27 = vmax.f32 %v2194_v32, %v2226_v37  ;;  %v7283_v47 = vld [vmem:[#allocation7_spill] sm:$0xff]  ;;  %v7285_v32 = vld [vmem:[#allocation10_spill] sm:$0xff]  ;;  %4335 = vmatmul.mubr.msk.bf16.gmra.mrb[32].mxu0 %vm320_vm1, %v1716_v38 }
 0x175   : > { %v2239_v51 = vld [vmem:[#allocation2 + $0x12a] sm:$0xff]  ;;  %v1468_v34 = vmax.f32 %v7283_v47, %v5405_v30  ;;  %v2240_v55 = vld [vmem:[#allocation2 + $0x132] sm:$0xff]  ;;  %v1599_v30 = vmax.f32 %v7285_v32, %v1567_v48  ;;  %v7287_v21 = vld [vmem:[#allocation15_spill] sm:$0xff] }
 0x176   : > { %v1632_v39 = vld [vmem:[#allocation2 + $0x1d0] sm:$0xff]  ;;  %v5592_v22 = vmax.f32 %v2207_v49, %v2239_v51  ;;  %2289 = vst.msk [vmem:[#allocation2 + $0x48] sm:$0xff] %vm320_vm1, %v2257_v9  ;;  %v2353_v10 = vmax.f32 %v2257_v9, %v7284_v1  ;;  %v5606_v23 = vmax.f32 %v2208_v25, %v2240_v55  ;;  %2290 = vst.msk [vmem:[#allocation2 + $0x50] sm:$0xff] %vm320_vm1, %v2258_v27  ;;  %v5609_v8 = vld [vmem:[#allocation2 + $0x68] sm:$0xff] }
 0x177   : > { %v2354_v59 = vmax.f32 %v2258_v27, %v2322_v41  ;;  %v1533_v24 = vmax.f32 %v1468_v34, %v5422_v14  ;;  %v5617_v29 = vld [vmem:[#allocation2 + $0x70] sm:$0xff]  ;;  %v5619_v62 = vld [vmem:[#allocation2 + $0x1c8] sm:$0xff]  ;;  %v5621_v52 = vmax.f32 %v1599_v30, %v1632_v39  ;;  %v7288_v49 = vld [vmem:[#allocation6_spill] sm:$0xff] }
 0x178   : > { %2303 = vst.msk [vmem:[#allocation2 + $0x128] sm:$0xff] %vm320_vm1, %v5592_v22  ;;  %v2417_v46 = vmax.f32 %v2353_v10, %v5149_v0  ;;  %v7286_v41 = vld [vmem:[#allocation5_spill] sm:$0xff]  ;;  %2304 = vst.msk [vmem:[#allocation2 + $0x130] sm:$0xff] %vm320_vm1, %v5606_v23  ;;  %v5631_v48 = vld [vmem:[#allocation2 + $0x88] sm:$0xff] }
 0x179   : > { %v1470_v19 = vmax.f32 %v7286_v41, %v5422_v14  ;;  %v2050_v35 = vld [vmem:[#allocation2 + $0x14e] sm:$0xff]  ;;  %v2418_v43 = vmax.f32 %v2354_v59, %v5588_v54  ;;  %v1598_v53 = vmax.f32 %v1533_v24, %v5550_v44  ;;  %2022 = vst.msk [vmem:[#allocation2 + $0x190] sm:$0xff] %vm320_vm1, %v5621_v52 }
 0x17a   : > { %v7289_v37 = vld [vmem:[#allocation8_spill] sm:$0xff]  ;;  %v2082_v51 = vmax.f32 %v5545_v6, %v2050_v35  ;;  %v2481_v27 = vmax.f32 %v2417_v46, %v5609_v8  ;;  %v5640_v47 = vld [vmem:[#allocation2 + $0x90] sm:$0xff] }
 0x17b   : > { %v7290_v9 = vmax.f32 %v7288_v49, %v7289_v37  ;;  %v2113_v14 = vld [vmem:[#allocation2 + $0x147] sm:$0xff]  ;;  %v1535_v36 = vmax.f32 %v1470_v19, %v5517_v50  ;;  %v5645_v34 = vld [vmem:[#allocation2 + $0x1f0] sm:$0xff]  ;;  %v2482_v30 = vmax.f32 %v2418_v43, %v5617_v29  ;;  %v5651_v6 = vmax.f32 %v1598_v53, %v5619_v62 }
 0x17c   : > { %v7291_v55 = vld [vmem:[#allocation13_spill] sm:$0xff]  ;;  %v2145_v32 = vmax.f32 %v2081_v20, %v2113_v14  ;;  %v5653_v24 = vld [vmem:[#allocation2 + $0x1e8] sm:$0xff]  ;;  %v5656_v41 = vmax.f32 %v2481_v27, %v5631_v48 }
 0x17d   : > { %v1536_v25 = vmax.f32 %v7290_v9, %v7287_v21  ;;  %v1472_v1 = vmax.f32 %v7291_v55, %v5517_v50  ;;  %v2114_v10 = vld [vmem:[#allocation2 + $0x14f] sm:$0xff]  ;;  %v1600_v19 = vmax.f32 %v1535_v36, %v5619_v62  ;;  %v2051_v20 = vld [vmem:[#allocation2 + $0x166] sm:$0xff]  ;;  %v5662_v53 = vmax.f32 %v2482_v30, %v5640_v47  ;;  %2021 = vst.msk [vmem:[#allocation2 + $0x188] sm:$0xff] %vm320_vm1, %v5651_v6 }
 0x17e   : > { %v2146_v5 = vmax.f32 %v2082_v51, %v2114_v10  ;;  %v2177_v46 = vld [vmem:[#allocation2 + $0x149] sm:$0xff]  ;;  %v2178_v50 = vld [vmem:[#allocation2 + $0x151] sm:$0xff]  ;;  %v2083_v51 = vmax.f32 %v5567_v26, %v2051_v20 }
 0x17f   : > { %v1601_v59 = vmax.f32 %v1536_v25, %v1632_v39  ;;  %v1537_v35 = vmax.f32 %v1472_v1, %v5550_v44  ;;  %v2209_v21 = vmax.f32 %v2145_v32, %v2177_v46  ;;  %v2052_v43 = vld [vmem:[#allocation2 + $0x16e] sm:$0xff]  ;;  %v1717_v39 = vpack.c.bf16 %v5621_v52, %v5651_v6 }
 0x180   : > { %v2210_v37 = vmax.f32 %v2146_v5, %v2178_v50  ;;  %v2241_v9 = vld [vmem:[#allocation2 + $0x14a] sm:$0xff]  ;;  %v2242_v25 = vld [vmem:[#allocation2 + $0x152] sm:$0xff]  ;;  %v2084_v38 = vmax.f32 %v5570_v18, %v2052_v43  ;;  %v5674_v14 = vmax.f32 %v1600_v19, %v5653_v24  ;;  %v2609_v32 = vpack.c.bf16 %v5662_v53, %v5656_v41 }
 0x181   : > { %v5669_v49 = vmax.f32 %v1601_v59, %v5645_v34  ;;  %v5676_v27 = vld [vmem:[#allocation2 + $0x208] sm:$0xff]  ;;  %v5678_v36 = vmax.f32 %v2209_v21, %v2241_v9  ;;  %4338 = vmatprep.mubr.msk.bf16.mxu0 %vm320_vm1, %v1717_v39  ;;  %v1602_v26 = vmax.f32 %v1537_v35, %v5653_v24  ;;  %v2326_v19 = vld [vmem:[#allocation2 + $0x50] sm:$0xff] }
 0x182   : > { %v2115_v55 = vld [vmem:[#allocation2 + $0x167] sm:$0xff]  ;;  %v2116_v1 = vld [vmem:[#allocation2 + $0x16f] sm:$0xff]  ;;  %v5688_v59 = vmax.f32 %v2210_v37, %v2242_v25  ;;  %2023 = vst.msk [vmem:[#allocation2 + $0x1a8] sm:$0xff] %vm320_vm1, %v5674_v14  ;;  %4352 = vmatprep.mubr.msk.bf16.mxu1 %vm320_vm1, %v2609_v32  ;;  %2904 = vst.msk [vmem:[#allocation2 + $0x50] sm:$0xff] %vm320_vm1, %v5662_v53  ;;  %v2420_v0 = vmax.f32 %v2356_v42, %v2326_v19  ;;  %v2358_v43 = vmax.f32 %v5501_v11, %v2326_v19 }
 0x183   : > { %v2325_v10 = vld [vmem:[#allocation2 + $0x48] sm:$0xff]  ;;  %2024 = vst.msk [vmem:[#allocation2 + $0x1b0] sm:$0xff] %vm320_vm1, %v5669_v49  ;;  %v2147_v5 = vmax.f32 %v2083_v51, %v2115_v55  ;;  %v2148_v46 = vmax.f32 %v2084_v38, %v2116_v1  ;;  %v5697_v21 = vld [vmem:[#allocation2 + $0x210] sm:$0xff]  ;;  %2305 = vst.msk [vmem:[#allocation2 + $0x148] sm:$0xff] %vm320_vm1, %v5678_v36  ;;  %v5719_v57 = vmax.f32 %v1602_v26, %v5676_v27 }
 0x184   : > { %v7292_v18 = vld [vmem:[#allocation16_spill] sm:$0xff]  ;;  %2903 = vst.msk [vmem:[#allocation2 + $0x48] sm:$0xff] %vm320_vm1, %v5656_v41  ;;  %v2419_v50 = vmax.f32 %v2355_v7, %v2325_v10  ;;  %v2180_v35 = vld [vmem:[#allocation2 + $0x171] sm:$0xff]  ;;  %v1718_v7 = vpack.c.bf16 %v5669_v49, %v5674_v14  ;;  %v2357_v20 = vmax.f32 %v5499_v61, %v2325_v10  ;;  %2306 = vst.msk [vmem:[#allocation2 + $0x150] sm:$0xff] %vm320_vm1, %v5688_v59 }
 0x185   : > { %v1603_v30 = vmax.f32 %v7292_v18, %v5645_v34  ;;  %v2179_v34 = vld [vmem:[#allocation2 + $0x169] sm:$0xff]  ;;  %v2212_v37 = vmax.f32 %v2148_v46, %v2180_v35  ;;  %v2244_v42 = vld [vmem:[#allocation2 + $0x172] sm:$0xff]  ;;  %v2484_v51 = vmax.f32 %v2420_v0, %v5640_v47  ;;  %v2422_v11 = vmax.f32 %v2358_v43, %v5617_v29  ;;  %2025 = vst.msk [vmem:[#allocation2 + $0x1c8] sm:$0xff] %vm320_vm1, %v5719_v57 }
 0x186   : > { %v5707_v56 = vld [vmem:[#allocation2 + $0xa8] sm:$0xff]  ;;  %v2211_v39 = vmax.f32 %v2147_v5, %v2179_v34  ;;  %v2483_v9 = vmax.f32 %v2419_v50, %v5631_v48  ;;  %v5716_v25 = vld [vmem:[#allocation2 + $0xb0] sm:$0xff]  ;;  %v2421_v61 = vmax.f32 %v2357_v20, %v5609_v8  ;;  %v2359_v46 = vmax.f32 %v5462_v2, %v5609_v8  ;;  %4339 = vmatmul.mubr.msk.bf16.gmra.mrb[36].mxu0 %vm320_vm1, %v1718_v7 }
 0x187   : > { %v2243_v54 = vld [vmem:[#allocation2 + $0x16a] sm:$0xff]  ;;  %v5727_v55 = vmax.f32 %v1603_v30, %v5697_v21  ;;  %v5731_v10 = vmax.f32 %v2212_v37, %v2244_v42  ;;  %v5743_v34 = vmax.f32 %v2484_v51, %v5716_v25  ;;  %v2360_v20 = vmax.f32 %v5472_v40, %v5617_v29 }
 0x188   : > { %v5724_v38 = vld [vmem:[#allocation2 + $0xc8] sm:$0xff]  ;;  %v5729_v1 = vmax.f32 %v2211_v39, %v2243_v54  ;;  %v5734_v5 = vmax.f32 %v2483_v9, %v5707_v56  ;;  %v2485_v35 = vmax.f32 %v2421_v61, %v5707_v56  ;;  %v5747_v0 = vld [vmem:[#allocation2 + $0xd0] sm:$0xff]  ;;  %v2423_v43 = vmax.f32 %v2359_v46, %v5631_v48 }
 0x189   : > { %7293 = vst [vmem:[#allocation4_spill] sm:$0xff] %v5731_v10  ;;  %v2053_v32 = vld [vmem:[#allocation2 + $0x186] sm:$0xff]  ;;  %v2054_v26 = vld [vmem:[#allocation2 + $0x18e] sm:$0xff]  ;;  %2026 = vst.msk [vmem:[#allocation2 + $0x1d0] sm:$0xff] %vm320_vm1, %v5727_v55  ;;  %v1719_v7 = vpack.c.bf16 %v5727_v55, %v5719_v57 }
 0x18a   : > { %v2117_v18 = vld [vmem:[#allocation2 + $0x187] sm:$0xff]  ;;  %v2085_v19 = vmax.f32 %v5651_v6, %v2053_v32  ;;  %v2086_v30 = vmax.f32 %v5621_v52, %v2054_v26  ;;  %v2118_v50 = vld [vmem:[#allocation2 + $0x18f] sm:$0xff]  ;;  %2307 = vst.msk [vmem:[#allocation2 + $0x168] sm:$0xff] %vm320_vm1, %v5729_v1  ;;  %2308 = vst.msk [vmem:[#allocation2 + $0x170] sm:$0xff] %vm320_vm1, %v5731_v10  ;;  %v2486_v6 = vmax.f32 %v2422_v11, %v5716_v25 }
 0x18b   : > { %v2181_v2 = vld [vmem:[#allocation2 + $0x189] sm:$0xff]  ;;  %v2182_v8 = vld [vmem:[#allocation2 + $0x191] sm:$0xff]  ;;  %2905 = vst.msk [vmem:[#allocation2 + $0x68] sm:$0xff] %vm320_vm1, %v5734_v5  ;;  %v2610_v42 = vpack.c.bf16 %v5743_v34, %v5734_v5  ;;  %2906 = vst.msk [vmem:[#allocation2 + $0x70] sm:$0xff] %vm320_vm1, %v5743_v34  ;;  %v5768_v61 = vmax.f32 %v2485_v35, %v5724_v38  ;;  %4342 = vmatprep.mubr.msk.bf16.mxu0 %vm320_vm1, %v1719_v7 }
 0x18c   : > { %v2246_v52 = vld [vmem:[#allocation2 + $0x192] sm:$0xff]  ;;  %v2935_v39 = vld [vmem:[#allocation2 + $0x46] sm:$0xff]  ;;  %v2149_v37 = vmax.f32 %v2085_v19, %v2117_v18  ;;  %v2150_v9 = vmax.f32 %v2086_v30, %v2118_v50  ;;  %v5775_v46 = vmax.f32 %v2486_v6, %v5747_v0  ;;  %v2424_v19 = vmax.f32 %v2360_v20, %v5640_v47 }
 0x18d   : > { %v2245_v54 = vld [vmem:[#allocation2 + $0x18a] sm:$0xff]  ;;  %v2967_v40 = vmax.f32 %v5656_v41, %v2935_v39  ;;  %4353 = vmatmul.mubr.msk.bf16.vlgmr.msra.gmra.mrb[48].mxu1 %vm320_vm1, %v2610_v42  ;;  %2907 = vst.msk [vmem:[#allocation2 + $0x88] sm:$0xff] %vm320_vm1, %v5768_v61 }
 0x18e   : > { %v2055_v51 = vld [vmem:[#allocation2 + $0x1a6] sm:$0xff]  ;;  %v2936_v32 = vld [vmem:[#allocation2 + $0x4e] sm:$0xff]  ;;  %v2213_v50 = vmax.f32 %v2149_v37, %v2181_v2  ;;  %v2214_v35 = vmax.f32 %v2150_v9, %v2182_v8  ;;  %2908 = vst.msk [vmem:[#allocation2 + $0x90] sm:$0xff] %vm320_vm1, %v5775_v46  ;;  %v2487_v2 = vmax.f32 %v2423_v43, %v5724_v38 }
 0x18f   : > { %v5770_v11 = vld [vmem:[#allocation2 + $0xe8] sm:$0xff]  ;;  %v2087_v18 = vmax.f32 %v5674_v14, %v2055_v51  ;;  %v2968_v30 = vmax.f32 %v5662_v53, %v2936_v32  ;;  %v2184_v51 = vld [vmem:[#allocation2 + $0x1b1] sm:$0xff]  ;;  %v2611_v53 = vpack.c.bf16 %v5775_v46, %v5768_v61 }
 0x190   : > { %v2999_v29 = vld [vmem:[#allocation2 + $0x47] sm:$0xff]  ;;  %v2120_v39 = vld [vmem:[#allocation2 + $0x1af] sm:$0xff]  ;;  %v5795_v20 = vmax.f32 %v2213_v50, %v2245_v54  ;;  %v5797_v37 = vmax.f32 %v2214_v35, %v2246_v52 }
 0x191   : > { %v2056_v26 = vld [vmem:[#allocation2 + $0x1ae] sm:$0xff]  ;;  %v5784_v6 = vmax.f32 %v2967_v40, %v2999_v29  ;;  %v2057_v32 = vld [vmem:[#allocation2 + $0x1c6] sm:$0xff]  ;;  %4356 = vmatprep.mubr.msk.bf16.mxu1 %vm320_vm1, %v2611_v53 }
 0x192   : > { %v2088_v3 = vmax.f32 %v5669_v49, %v2056_v26  ;;  %v2119_v41 = vld [vmem:[#allocation2 + $0x1a7] sm:$0xff]  ;;  %v3000_v14 = vld [vmem:[#allocation2 + $0x4f] sm:$0xff]  ;;  %2309 = vst.msk [vmem:[#allocation2 + $0x188] sm:$0xff] %vm320_vm1, %v5795_v20  ;;  %2310 = vst.msk [vmem:[#allocation2 + $0x190] sm:$0xff] %vm320_vm1, %v5797_v37 }
 0x193   : > { %v2183_v10 = vld [vmem:[#allocation2 + $0x1a9] sm:$0xff]  ;;  %7294 = vst [vmem:[#allocation3_spill] sm:$0xff] %v5784_v6  ;;  %v2151_v7 = vmax.f32 %v2087_v18, %v2119_v41  ;;  %v5793_v8 = vmax.f32 %v2968_v30, %v3000_v14  ;;  %v2248_v26 = vld [vmem:[#allocation2 + $0x1b2] sm:$0xff]  ;;  %v2089_v41 = vmax.f32 %v5719_v57, %v2057_v32  ;;  %v2488_v6 = vmax.f32 %v2424_v19, %v5747_v0 }
 0x194   : > { %v5791_v49 = vld [vmem:[#allocation2 + $0xf0] sm:$0xff]  ;;  %v2152_v9 = vmax.f32 %v2088_v3, %v2120_v39  ;;  %v2121_v40 = vld [vmem:[#allocation2 + $0x1c7] sm:$0xff]  ;;  %v5803_v30 = vmax.f32 %v2487_v2, %v5770_v11  ;;  %v2361_v57 = vmax.f32 %v5528_v63, %v5631_v48  ;;  %v2362_v19 = vmax.f32 %v5540_v15, %v5640_v47 }
 0x195   : > { %v2247_v42 = vld [vmem:[#allocation2 + $0x1aa] sm:$0xff]  ;;  %v2215_v29 = vmax.f32 %v2151_v7, %v2183_v10  ;;  %v2153_v14 = vmax.f32 %v2089_v41, %v2121_v40  ;;  %v5818_v53 = vmax.f32 %v2488_v6, %v5791_v49 }
 0x196   : > { %v2058_v18 = vld [vmem:[#allocation2 + $0x1ce] sm:$0xff]  ;;  %v2937_v3 = vld [vmem:[#allocation2 + $0x66] sm:$0xff]  ;;  %v2216_v10 = vmax.f32 %v2152_v9, %v2184_v51  ;;  %2909 = vst.msk [vmem:[#allocation2 + $0xa8] sm:$0xff] %vm320_vm1, %v5803_v30  ;;  %v2425_v15 = vmax.f32 %v2361_v57, %v5707_v56 }
 0x197   : > { %v2122_v43 = vld [vmem:[#allocation2 + $0x1cf] sm:$0xff]  ;;  %v2090_v52 = vmax.f32 %v5727_v55, %v2058_v18  ;;  %v2969_v35 = vmax.f32 %v5734_v5, %v2937_v3  ;;  %v5815_v39 = vmax.f32 %v2215_v29, %v2247_v42  ;;  %v3001_v51 = vld [vmem:[#allocation2 + $0x67] sm:$0xff]  ;;  %v2612_v42 = vpack.c.bf16 %v5818_v53, %v5803_v30  ;;  %2910 = vst.msk [vmem:[#allocation2 + $0xb0] sm:$0xff] %vm320_vm1, %v5818_v53 }
 0x198   : > { %v2185_v54 = vld [vmem:[#allocation2 + $0x1c9] sm:$0xff]  ;;  %v2186_v7 = vld [vmem:[#allocation2 + $0x1d1] sm:$0xff]  ;;  %v5823_v63 = vmax.f32 %v2216_v10, %v2248_v26  ;;  %v2489_v41 = vmax.f32 %v2425_v15, %v5770_v11 }
 0x199   : > { %v2938_v50 = vld [vmem:[#allocation2 + $0x6e] sm:$0xff]  ;;  %v2154_v48 = vmax.f32 %v2090_v52, %v2122_v43  ;;  %v3033_v5 = vmax.f32 %v2969_v35, %v3001_v51  ;;  %2311 = vst.msk [vmem:[#allocation2 + $0x1a8] sm:$0xff] %vm320_vm1, %v5815_v39  ;;  %v2939_v2 = vld [vmem:[#allocation2 + $0x86] sm:$0xff]  ;;  %v2217_v9 = vmax.f32 %v2153_v14, %v2185_v54  ;;  %4357 = vmatmul.mubr.msk.bf16.gmra.mrb[52].mxu1 %vm320_vm1, %v2612_v42 }
 0x19a   : > { %v2970_v55 = vmax.f32 %v5743_v34, %v2938_v50  ;;  %v3002_v47 = vld [vmem:[#allocation2 + $0x6f] sm:$0xff]  ;;  %v2426_v34 = vmax.f32 %v2362_v19, %v5716_v25  ;;  %2312 = vst.msk [vmem:[#allocation2 + $0x1b0] sm:$0xff] %vm320_vm1, %v5823_v63  ;;  %v2971_v26 = vmax.f32 %v5768_v61, %v2939_v2  ;;  %v3003_v54 = vld [vmem:[#allocation2 + $0x87] sm:$0xff] }
 0x19b   : > { %v2249_v6 = vld [vmem:[#allocation2 + $0x1ca] sm:$0xff]  ;;  %v2218_v18 = vmax.f32 %v2154_v48, %v2186_v7  ;;  %v3130_v15 = vld [vmem:[#allocation2 + $0x72] sm:$0xff] }
 0x19c   : > { %v3034_v32 = vmax.f32 %v2970_v55, %v3002_v47  ;;  %v3065_v40 = vld [vmem:[#allocation2 + $0x69] sm:$0xff]  ;;  %v3066_v3 = vld [vmem:[#allocation2 + $0x71] sm:$0xff]  ;;  %v5840_v57 = vmax.f32 %v2217_v9, %v2249_v6  ;;  %v2490_v19 = vmax.f32 %v2426_v34, %v5791_v49  ;;  %v3035_v7 = vmax.f32 %v2971_v26, %v3003_v54 }
 0x19d   : > { %v2940_v29 = vld [vmem:[#allocation2 + $0x8e] sm:$0xff]  ;;  %v3097_v10 = vmax.f32 %v3033_v5, %v3065_v40  ;;  %v7296_v26 = vld [vmem:[#allocation14_spill] sm:$0xff] }
 0x19e   : > { %v5837_v43 = vld [vmem:[#allocation2 + $0x108] sm:$0xff]  ;;  %v2972_v52 = vmax.f32 %v5775_v46, %v2940_v29  ;;  %v5844_v50 = vld [vmem:[#allocation2 + $0x110] sm:$0xff]  ;;  %v3098_v35 = vmax.f32 %v3034_v32, %v3066_v3  ;;  %2313 = vst.msk [vmem:[#allocation2 + $0x1c8] sm:$0xff] %vm320_vm1, %v5840_v57 }
 0x19f   : > { %v3129_v61 = vld [vmem:[#allocation2 + $0x6a] sm:$0xff]  ;;  %v2250_v55 = vld [vmem:[#allocation2 + $0x1d2] sm:$0xff]  ;;  %v5847_v51 = vmax.f32 %v2489_v41, %v5837_v43  ;;  %v5858_v6 = vmax.f32 %v2490_v19, %v5844_v50 }
 0x1a0   : > { %v3004_v14 = vld [vmem:[#allocation2 + $0x8f] sm:$0xff]  ;;  %v5851_v47 = vmax.f32 %v3097_v10, %v3129_v61  ;;  %v5853_v9 = vmax.f32 %v2218_v18, %v2250_v55  ;;  %v5860_v34 = vmax.f32 %v3098_v35, %v3130_v15  ;;  %v2941_v29 = vld [vmem:[#allocation2 + $0xa6] sm:$0xff]  ;;  %v7297_v18 = vmax.f32 %v7296_v26, %v5151_v28 }
 0x1a1   : > { %v7295_v48 = vld [vmem:[#allocation12_spill] sm:$0xff]  ;;  %v3036_v5 = vmax.f32 %v2972_v52, %v3004_v14  ;;  %v1638_v42 = vld [vmem:[#allocation2 + $0x230] sm:$0xff]  ;;  %2911 = vst.msk [vmem:[#allocation2 + $0xc8] sm:$0xff] %vm320_vm1, %v5847_v51  ;;  %v2973_v52 = vmax.f32 %v5803_v30, %v2941_v29  ;;  %v2613_v54 = vpack.c.bf16 %v5858_v6, %v5847_v51  ;;  %2912 = vst.msk [vmem:[#allocation2 + $0xd0] sm:$0xff] %vm320_vm1, %v5858_v6 }
 0x1a2   : > { %v1474_v46 = vmax.f32 %v7295_v48, %v5550_v44  ;;  %v3067_v2 = vld [vmem:[#allocation2 + $0x89] sm:$0xff]  ;;  %v3068_v32 = vld [vmem:[#allocation2 + $0x91] sm:$0xff]  ;;  %v1540_v41 = vmax.f32 %v7297_v18, %v5296_v17  ;;  %3193 = vst.msk [vmem:[#allocation2 + $0x68] sm:$0xff] %vm320_vm1, %v5851_v47  ;;  %2314 = vst.msk [vmem:[#allocation2 + $0x1d0] sm:$0xff] %vm320_vm1, %v5853_v9  ;;  %v1476_v28 = vmax.f32 %v5280_v16, %v5619_v62 }
 0x1a3   : > { %v3099_v40 = vmax.f32 %v3035_v7, %v3067_v2  ;;  %v3100_v3 = vmax.f32 %v3036_v5, %v3068_v32  ;;  %v3131_v10 = vld [vmem:[#allocation2 + $0x8a] sm:$0xff]  ;;  %3194 = vst.msk [vmem:[#allocation2 + $0x70] sm:$0xff] %vm320_vm1, %v5860_v34  ;;  %v3132_v35 = vld [vmem:[#allocation2 + $0x92] sm:$0xff]  ;;  %v1607_v48 = vmax.f32 %v5353_v60, %v1638_v42  ;;  %4360 = vmatprep.mubr.msk.bf16.mxu1 %vm320_vm1, %v2613_v54 }
 0x1a4   : > { %v1539_v44 = vmax.f32 %v1474_v46, %v5619_v62  ;;  %v1637_v19 = vld [vmem:[#allocation2 + $0x228] sm:$0xff]  ;;  %v5880_v17 = vld [vmem:[#allocation2 + $0x250] sm:$0xff]  ;;  %v1605_v55 = vmax.f32 %v1540_v41, %v5697_v21  ;;  %v1541_v15 = vmax.f32 %v1476_v28, %v5653_v24  ;;  %v2364_v41 = vmax.f32 %v5560_v45, %v5716_v25 }
 0x1a5   : > { %v5884_v61 = vmax.f32 %v3099_v40, %v3131_v10  ;;  %v2942_v14 = vld [vmem:[#allocation2 + $0xae] sm:$0xff]  ;;  %v5889_v46 = vmax.f32 %v3100_v3, %v3132_v35  ;;  %v5903_v60 = vmax.f32 %v1607_v48, %v5880_v17  ;;  %v2366_v45 = vmax.f32 %v5577_v58, %v5747_v0 }
 0x1a6   : > { %v3005_v30 = vld [vmem:[#allocation2 + $0xa7] sm:$0xff]  ;;  %v1604_v7 = vmax.f32 %v1539_v44, %v5676_v27  ;;  %v2974_v16 = vmax.f32 %v5818_v53, %v2942_v14  ;;  %v3006_v5 = vld [vmem:[#allocation2 + $0xaf] sm:$0xff]  ;;  %v5898_v40 = vmax.f32 %v1605_v55, %v1638_v42  ;;  %v2363_v53 = vmax.f32 %v5554_v4, %v5707_v56 }
 0x1a7   : > { %v3037_v62 = vmax.f32 %v2973_v52, %v3005_v30  ;;  %3195 = vst.msk [vmem:[#allocation2 + $0x88] sm:$0xff] %vm320_vm1, %v5884_v61  ;;  %v3069_v2 = vld [vmem:[#allocation2 + $0xa9] sm:$0xff]  ;;  %3196 = vst.msk [vmem:[#allocation2 + $0x90] sm:$0xff] %vm320_vm1, %v5889_v46  ;;  %v1606_v18 = vmax.f32 %v1541_v15, %v1637_v19  ;;  %v3070_v42 = vld [vmem:[#allocation2 + $0xb1] sm:$0xff]  ;;  %v2365_v56 = vmax.f32 %v5562_v12, %v5724_v38 }
 0x1a8   : > { %v5896_v32 = vmax.f32 %v1604_v7, %v1637_v19  ;;  %v5900_v21 = vld [vmem:[#allocation2 + $0x248] sm:$0xff]  ;;  %v1512_v29 = vld [vmem:[#allocation2 + $0x210] sm:$0xff]  ;;  %v3038_v44 = vmax.f32 %v2974_v16, %v3006_v5  ;;  %2028 = vst.msk [vmem:[#allocation2 + $0x1f0] sm:$0xff] %vm320_vm1, %v5898_v40  ;;  %v2427_v4 = vmax.f32 %v2363_v53, %v5724_v38  ;;  %v2428_v28 = vmax.f32 %v2364_v41, %v5747_v0 }
 0x1a9   : > { %v3101_v26 = vmax.f32 %v3037_v62, %v3069_v2  ;;  %v3133_v3 = vld [vmem:[#allocation2 + $0xaa] sm:$0xff]  ;;  %2030 = vst.msk [vmem:[#allocation2 + $0x210] sm:$0xff] %vm320_vm1, %v5903_v60  ;;  %v5927_v19 = vmax.f32 %v1606_v18, %v5900_v21  ;;  %v3134_v30 = vld [vmem:[#allocation2 + $0xb2] sm:$0xff]  ;;  %v2429_v38 = vmax.f32 %v2365_v56, %v5770_v11  ;;  %v2430_v55 = vmax.f32 %v2366_v45, %v5791_v49 }
 0x1aa   : > { %v1720_v10 = vpack.c.bf16 %v5898_v40, %v5896_v32  ;;  %2027 = vst.msk [vmem:[#allocation2 + $0x1e8] sm:$0xff] %vm320_vm1, %v5896_v32  ;;  %v3102_v25 = vmax.f32 %v3038_v44, %v3070_v42  ;;  %v2943_v54 = vld [vmem:[#allocation2 + $0xc6] sm:$0xff]  ;;  %v5932_v14 = vld [vmem:[#allocation2 + $0x130] sm:$0xff]  ;;  %v2491_v58 = vmax.f32 %v2427_v4, %v5837_v43 }
 0x1ab   : > { %v5924_v52 = vmax.f32 %v3101_v26, %v3133_v3  ;;  %v5930_v35 = vld [vmem:[#allocation2 + $0x128] sm:$0xff]  ;;  %v2975_v12 = vmax.f32 %v5847_v51, %v2943_v54  ;;  %v1721_v62 = vpack.c.bf16 %v5903_v60, %v5927_v19  ;;  %2029 = vst.msk [vmem:[#allocation2 + $0x208] sm:$0xff] %vm320_vm1, %v5927_v19  ;;  %v2492_v51 = vmax.f32 %v2428_v28, %v5844_v50  ;;  %v5951_v5 = vld [vmem:[#allocation2 + $0x150] sm:$0xff] }
 0x1ac   : > { %v2944_v7 = vld [vmem:[#allocation2 + $0xce] sm:$0xff]  ;;  %4343 = vmatmul.mubr.msk.bf16.gmra.mrb[40].mxu0 %vm320_vm1, %v1720_v10  ;;  %v5939_v48 = vmax.f32 %v3102_v25, %v3134_v30  ;;  %v5954_v44 = vmax.f32 %v2491_v58, %v5930_v35  ;;  %v2494_v26 = vmax.f32 %v2430_v55, %v5932_v14  ;;  %v1478_v3 = vmax.f32 %v5235_v13, %v5653_v24 }
 0x1ad   : > { %3197 = vst.msk [vmem:[#allocation2 + $0xa8] sm:$0xff] %vm320_vm1, %v5924_v52  ;;  %v2976_v0 = vmax.f32 %v5858_v6, %v2944_v7  ;;  %v3007_v16 = vld [vmem:[#allocation2 + $0xc7] sm:$0xff]  ;;  %v3008_v2 = vld [vmem:[#allocation2 + $0xcf] sm:$0xff]  ;;  %v2493_v6 = vmax.f32 %v2429_v38, %v5930_v35  ;;  %4346 = vmatprep.mubr.msk.bf16.mxu0 %vm320_vm1, %v1721_v62  ;;  %v5962_v42 = vmax.f32 %v2492_v51, %v5932_v14 }
 0x1ae   : > { %v5949_v15 = vld [vmem:[#allocation2 + $0x148] sm:$0xff]  ;;  %v3039_v53 = vmax.f32 %v2975_v12, %v3007_v16  ;;  %3198 = vst.msk [vmem:[#allocation2 + $0xb0] sm:$0xff] %vm320_vm1, %v5939_v48  ;;  %v7298_v10 = vmax.f32 %v5274_v31, %v5250_v33  ;;  %v3072_v56 = vld [vmem:[#allocation2 + $0xd1] sm:$0xff]  ;;  %2913 = vst.msk [vmem:[#allocation2 + $0xe8] sm:$0xff] %vm320_vm1, %v5954_v44  ;;  %v5975_v28 = vmax.f32 %v2494_v26, %v5951_v5 }
 0x1af   : > { %v3040_v18 = vmax.f32 %v2976_v0, %v3008_v2  ;;  %v3071_v41 = vld [vmem:[#allocation2 + $0xc9] sm:$0xff]  ;;  %v5972_v54 = vmax.f32 %v2493_v6, %v5949_v15  ;;  %v2367_v13 = vmax.f32 %v5592_v22, %v5770_v11  ;;  %v2614_v7 = vpack.c.bf16 %v5962_v42, %v5954_v44  ;;  %2914 = vst.msk [vmem:[#allocation2 + $0xf0] sm:$0xff] %vm320_vm1, %v5962_v42  ;;  %v3136_v38 = vld [vmem:[#allocation2 + $0xd2] sm:$0xff] }
 0x1b0   : > { %v1544_v4 = vmax.f32 %v7298_v10, %v1512_v29  ;;  %v3103_v45 = vmax.f32 %v3039_v53, %v3071_v41  ;;  %v3135_v25 = vld [vmem:[#allocation2 + $0xca] sm:$0xff]  ;;  %v1543_v12 = vmax.f32 %v1478_v3, %v5676_v27  ;;  %2916 = vst.msk [vmem:[#allocation2 + $0x110] sm:$0xff] %vm320_vm1, %v5975_v28  ;;  %v2368_v53 = vmax.f32 %v5606_v23, %v5791_v49  ;;  %v2252_v23 = vld [vmem:[#allocation2 + $0x1f2] sm:$0xff] }
 0x1b1   : > { %v5977_v30 = vld [vmem:[#allocation2 + $0x270] sm:$0xff]  ;;  %v3104_v24 = vmax.f32 %v3040_v18, %v3072_v56  ;;  %v2059_v33 = vld [vmem:[#allocation2 + $0x1e6] sm:$0xff]  ;;  %v2615_v16 = vpack.c.bf16 %v5975_v28, %v5972_v54  ;;  %2915 = vst.msk [vmem:[#allocation2 + $0x108] sm:$0xff] %vm320_vm1, %v5972_v54  ;;  %4361 = vmatmul.mubr.msk.bf16.gmra.mrb[56].mxu1 %vm320_vm1, %v2614_v7  ;;  %v2431_v10 = vmax.f32 %v2367_v13, %v5837_v43 }
 0x1b2   : > { %v2060_v31 = vld [vmem:[#allocation2 + $0x1ee] sm:$0xff]  ;;  %v1609_v58 = vmax.f32 %v1544_v4, %v5880_v17  ;;  %v5987_v55 = vmax.f32 %v3103_v45, %v3135_v25  ;;  %v2091_v0 = vmax.f32 %v5896_v32, %v2059_v33  ;;  %v1608_v32 = vmax.f32 %v1543_v12, %v5900_v21  ;;  %v2061_v18 = vld [vmem:[#allocation2 + $0x206] sm:$0xff] }
 0x1b3   : > { %v2123_v29 = vld [vmem:[#allocation2 + $0x1e7] sm:$0xff]  ;;  %v2092_v22 = vmax.f32 %v5898_v40, %v2060_v31  ;;  %v2124_v11 = vld [vmem:[#allocation2 + $0x1ef] sm:$0xff]  ;;  %v5999_v62 = vmax.f32 %v3104_v24, %v3136_v38  ;;  %4364 = vmatprep.mubr.msk.bf16.mxu1 %vm320_vm1, %v2615_v16  ;;  %v2369_v4 = vmax.f32 %v5678_v36, %v5837_v43  ;;  %v2093_v49 = vmax.f32 %v5927_v19, %v2061_v18 }
 0x1b4   : > { %v5997_v27 = vld [vmem:[#allocation2 + $0x268] sm:$0xff]  ;;  %v2188_v2 = vld [vmem:[#allocation2 + $0x1f1] sm:$0xff]  ;;  %v6004_v40 = vmax.f32 %v1609_v58, %v5977_v30  ;;  %3199 = vst.msk [vmem:[#allocation2 + $0xc8] sm:$0xff] %vm320_vm1, %v5987_v55  ;;  %v2155_v6 = vmax.f32 %v2091_v0, %v2123_v29  ;;  %v2432_v13 = vmax.f32 %v2368_v53, %v5844_v50  ;;  %v2495_v29 = vmax.f32 %v2431_v10, %v5949_v15 }
 0x1b5   : > { %v2187_v51 = vld [vmem:[#allocation2 + $0x1e9] sm:$0xff]  ;;  %v2156_v26 = vmax.f32 %v2092_v22, %v2124_v11  ;;  %3200 = vst.msk [vmem:[#allocation2 + $0xd0] sm:$0xff] %vm320_vm1, %v5999_v62  ;;  %v6019_v24 = vmax.f32 %v1608_v32, %v5997_v27  ;;  %v2190_v31 = vld [vmem:[#allocation2 + $0x211] sm:$0xff]  ;;  %v2370_v19 = vmax.f32 %v5688_v59, %v5844_v50 }
 0x1b6   : > { %v2062_v41 = vld [vmem:[#allocation2 + $0x20e] sm:$0xff]  ;;  %2032 = vst.msk [vmem:[#allocation2 + $0x230] sm:$0xff] %vm320_vm1, %v6004_v40  ;;  %v2219_v33 = vmax.f32 %v2155_v6, %v2187_v51  ;;  %v2945_v12 = vld [vmem:[#allocation2 + $0xe6] sm:$0xff]  ;;  %v2496_v38 = vmax.f32 %v2432_v13, %v5951_v5 }
 0x1b7   : > { %v2125_v3 = vld [vmem:[#allocation2 + $0x207] sm:$0xff]  ;;  %v2094_v45 = vmax.f32 %v5903_v60, %v2062_v41  ;;  %v2126_v25 = vld [vmem:[#allocation2 + $0x20f] sm:$0xff]  ;;  %v2220_v36 = vmax.f32 %v2156_v26, %v2188_v2  ;;  %v1722_v58 = vpack.c.bf16 %v6004_v40, %v6019_v24  ;;  %2031 = vst.msk [vmem:[#allocation2 + $0x228] sm:$0xff] %vm320_vm1, %v6019_v24  ;;  %v2977_v2 = vmax.f32 %v5954_v44, %v2945_v12 }
 0x1b8   : > { %v2251_v56 = vld [vmem:[#allocation2 + $0x1ea] sm:$0xff]  ;;  %v2157_v7 = vmax.f32 %v2093_v49, %v2125_v3  ;;  %v2254_v50 = vld [vmem:[#allocation2 + $0x212] sm:$0xff]  ;;  %v2371_v49 = vmax.f32 %v5729_v1, %v5930_v35 }
 0x1b9   : > { %v2189_v43 = vld [vmem:[#allocation2 + $0x209] sm:$0xff]  ;;  %v2158_v60 = vmax.f32 %v2094_v45, %v2126_v25  ;;  %v6036_v11 = vmax.f32 %v2219_v33, %v2251_v56  ;;  %v6038_v16 = vmax.f32 %v2220_v36, %v2252_v23  ;;  %4347 = vmatmul.mubr.msk.bf16.gmra.mrb[44].mxu0 %vm320_vm1, %v1722_v58  ;;  %v2434_v23 = vmax.f32 %v2370_v19, %v5932_v14 }
 0x1ba   : > { %v6032_v0 = vld [vmem:[#allocation2 + $0x168] sm:$0xff]  ;;  %v6034_v22 = vld [vmem:[#allocation2 + $0x170] sm:$0xff]  ;;  %v2221_v53 = vmax.f32 %v2157_v7, %v2189_v43 }
 0x1bb   : > { %v2253_v59 = vld [vmem:[#allocation2 + $0x20a] sm:$0xff]  ;;  %v6042_v32 = vmax.f32 %v2495_v29, %v6032_v0  ;;  %v2222_v6 = vmax.f32 %v2158_v60, %v2190_v31  ;;  %v6047_v41 = vmax.f32 %v2496_v38, %v6034_v22  ;;  %2315 = vst.msk [vmem:[#allocation2 + $0x1e8] sm:$0xff] %vm320_vm1, %v6036_v11  ;;  %2316 = vst.msk [vmem:[#allocation2 + $0x1f0] sm:$0xff] %vm320_vm1, %v6038_v16  ;;  %v3138_v60 = vld [vmem:[#allocation2 + $0xf2] sm:$0xff] }
 0x1bc   : > { %v2946_v51 = vld [vmem:[#allocation2 + $0xee] sm:$0xff]  ;;  %v2947_v10 = vld [vmem:[#allocation2 + $0x106] sm:$0xff]  ;;  %v6059_v45 = vmax.f32 %v2221_v53, %v2253_v59  ;;  %v2498_v59 = vmax.f32 %v2434_v23, %v6034_v22 }
 0x1bd   : > { %v2978_v26 = vmax.f32 %v5962_v42, %v2946_v51  ;;  %v3009_v18 = vld [vmem:[#allocation2 + $0xe7] sm:$0xff]  ;;  %v3010_v44 = vld [vmem:[#allocation2 + $0xef] sm:$0xff]  ;;  %2917 = vst.msk [vmem:[#allocation2 + $0x128] sm:$0xff] %vm320_vm1, %v6042_v32  ;;  %v2433_v42 = vmax.f32 %v2369_v4, %v5930_v35  ;;  %v6061_v25 = vmax.f32 %v2222_v6, %v2254_v50  ;;  %v2979_v36 = vmax.f32 %v5972_v54, %v2947_v10 }
 0x1be   : > { %v3041_v3 = vmax.f32 %v2977_v2, %v3009_v18  ;;  %v2948_v56 = vld [vmem:[#allocation2 + $0x10e] sm:$0xff]  ;;  %2918 = vst.msk [vmem:[#allocation2 + $0x130] sm:$0xff] %vm320_vm1, %v6047_v41  ;;  %v2616_v1 = vpack.c.bf16 %v6047_v41, %v6042_v32  ;;  %2317 = vst.msk [vmem:[#allocation2 + $0x208] sm:$0xff] %vm320_vm1, %v6059_v45  ;;  %v2063_v53 = vld [vmem:[#allocation2 + $0x226] sm:$0xff] }
 0x1bf   : > { %v3042_v13 = vmax.f32 %v2978_v26, %v3010_v44  ;;  %v3073_v33 = vld [vmem:[#allocation2 + $0xe9] sm:$0xff]  ;;  %v3074_v31 = vld [vmem:[#allocation2 + $0xf1] sm:$0xff]  ;;  %v2980_v19 = vmax.f32 %v5975_v28, %v2948_v56  ;;  %v2497_v35 = vmax.f32 %v2433_v42, %v6032_v0  ;;  %2318 = vst.msk [vmem:[#allocation2 + $0x210] sm:$0xff] %vm320_vm1, %v6061_v25  ;;  %v2435_v44 = vmax.f32 %v2371_v49, %v5949_v15 }
 0x1c0   : > { %v6066_v43 = vld [vmem:[#allocation2 + $0x188] sm:$0xff]  ;;  %v3105_v4 = vmax.f32 %v3041_v3, %v3073_v33  ;;  %4365 = vmatmul.mubr.msk.bf16.gmra.mrb[60].mxu1 %vm320_vm1, %v2616_v1  ;;  %v3076_v56 = vld [vmem:[#allocation2 + $0x111] sm:$0xff] }
 0x1c1   : > { %v3137_v29 = vld [vmem:[#allocation2 + $0xea] sm:$0xff]  ;;  %v3106_v54 = vmax.f32 %v3042_v13, %v3074_v31  ;;  %v6083_v18 = vmax.f32 %v2497_v35, %v6066_v43 }
 0x1c2   : > { %v3011_v7 = vld [vmem:[#allocation2 + $0x107] sm:$0xff]  ;;  %v3012_v12 = vld [vmem:[#allocation2 + $0x10f] sm:$0xff]  ;;  %v6079_v51 = vmax.f32 %v3105_v4, %v3137_v29 }
 0x1c3   : > { %v3043_v58 = vmax.f32 %v2979_v36, %v3011_v7  ;;  %v3075_v38 = vld [vmem:[#allocation2 + $0x109] sm:$0xff]  ;;  %v3044_v2 = vmax.f32 %v2980_v19, %v3012_v12  ;;  %v6086_v10 = vmax.f32 %v3106_v54, %v3138_v60  ;;  %v2192_v29 = vld [vmem:[#allocation2 + $0x231] sm:$0xff]  ;;  %2919 = vst.msk [vmem:[#allocation2 + $0x148] sm:$0xff] %vm320_vm1, %v6083_v18 }
 0x1c4   : > { %v7299_v28 = vld [vmem:[#allocation4_spill] sm:$0xff]  ;;  %v6090_v33 = vld [vmem:[#allocation2 + $0x190] sm:$0xff]  ;;  %3201 = vst.msk [vmem:[#allocation2 + $0xe8] sm:$0xff] %vm320_vm1, %v6079_v51 }
 0x1c5   : > { %v2372_v50 = vmax.f32 %v7299_v28, %v5932_v14  ;;  %v2064_v6 = vld [vmem:[#allocation2 + $0x22e] sm:$0xff]  ;;  %v3107_v42 = vmax.f32 %v3043_v58, %v3075_v38  ;;  %v2095_v14 = vmax.f32 %v6019_v24, %v2063_v53  ;;  %v3108_v36 = vmax.f32 %v3044_v2, %v3076_v56  ;;  %3202 = vst.msk [vmem:[#allocation2 + $0xf0] sm:$0xff] %vm320_vm1, %v6086_v10  ;;  %v2949_v54 = vld [vmem:[#allocation2 + $0x126] sm:$0xff] }
 0x1c6   : > { %v2127_v26 = vld [vmem:[#allocation2 + $0x227] sm:$0xff]  ;;  %v2096_v23 = vmax.f32 %v6004_v40, %v2064_v6  ;;  %v2128_v13 = vld [vmem:[#allocation2 + $0x22f] sm:$0xff]  ;;  %v6095_v49 = vmax.f32 %v2498_v59, %v6090_v33  ;;  %v2499_v40 = vmax.f32 %v2435_v44, %v6066_v43  ;;  %v2981_v6 = vmax.f32 %v6042_v32, %v2949_v54 }
 0x1c7   : > { %v3063_v3 = vld [vmem:[#allocation2 + $0x49] sm:$0xff]  ;;  %v2436_v24 = vmax.f32 %v2372_v50, %v5951_v5  ;;  %v3140_v19 = vld [vmem:[#allocation2 + $0x112] sm:$0xff]  ;;  %v2159_v1 = vmax.f32 %v2095_v14, %v2127_v26  ;;  %v7300_v58 = vld [vmem:[#allocation3_spill] sm:$0xff] }
 0x1c8   : > { %v3139_v31 = vld [vmem:[#allocation2 + $0x10a] sm:$0xff]  ;;  %v2160_v35 = vmax.f32 %v2096_v23, %v2128_v13  ;;  %v3095_v38 = vmax.f32 %v7300_v58, %v3063_v3  ;;  %v6108_v28 = vmax.f32 %v3108_v36, %v3140_v19  ;;  %v2256_v2 = vld [vmem:[#allocation2 + $0x232] sm:$0xff]  ;;  %v2617_v44 = vpack.c.bf16 %v6095_v49, %v6083_v18  ;;  %2920 = vst.msk [vmem:[#allocation2 + $0x150] sm:$0xff] %vm320_vm1, %v6095_v49 }
 0x1c9   : > { %v2191_v4 = vld [vmem:[#allocation2 + $0x229] sm:$0xff]  ;;  %v6103_v7 = vmax.f32 %v3107_v42, %v3139_v31  ;;  %v3064_v12 = vld [vmem:[#allocation2 + $0x51] sm:$0xff]  ;;  %v2500_v26 = vmax.f32 %v2436_v24, %v6090_v33 }
 0x1ca   : > { %v6105_v60 = vld [vmem:[#allocation2 + $0x1a8] sm:$0xff]  ;;  %v2223_v3 = vmax.f32 %v2159_v1, %v2191_v4  ;;  %v2224_v56 = vmax.f32 %v2160_v35, %v2192_v29  ;;  %v6119_v23 = vld [vmem:[#allocation2 + $0x1b0] sm:$0xff]  ;;  %3204 = vst.msk [vmem:[#allocation2 + $0x110] sm:$0xff] %vm320_vm1, %v6108_v28  ;;  %4368 = vmatprep.mubr.msk.bf16.mxu1 %vm320_vm1, %v2617_v44  ;;  %v3096_v4 = vmax.f32 %v5793_v8, %v3064_v12 }
 0x1cb   : > { %v3223_v59 = vld [vmem:[#allocation2 + $0x8] sm:$0xff]  ;;  %3203 = vst.msk [vmem:[#allocation2 + $0x108] sm:$0xff] %vm320_vm1, %v6103_v7  ;;  %v6122_v32 = vmax.f32 %v2499_v40, %v6105_v60  ;;  %v6128_v24 = vmax.f32 %v2500_v26, %v6119_v23  ;;  %v3128_v54 = vld [vmem:[#allocation2 + $0x52] sm:$0xff] }
 0x1cc   : > { %v2255_v50 = vld [vmem:[#allocation2 + $0x22a] sm:$0xff]  ;;  %v6135_v40 = vmax.f32 %v2224_v56, %v2256_v2  ;;  %v3160_v12 = vmax.f32 %v3096_v4, %v3128_v54 }
 0x1cd   : > { %v2950_v53 = vld [vmem:[#allocation2 + $0x12e] sm:$0xff]  ;;  %v6133_v19 = vmax.f32 %v2223_v3, %v2255_v50  ;;  %2921 = vst.msk [vmem:[#allocation2 + $0x168] sm:$0xff] %vm320_vm1, %v6122_v32  ;;  %v2618_v8 = vpack.c.bf16 %v6128_v24, %v6122_v32  ;;  %2922 = vst.msk [vmem:[#allocation2 + $0x170] sm:$0xff] %vm320_vm1, %v6128_v24  ;;  %v2951_v2 = vld [vmem:[#allocation2 + $0x146] sm:$0xff]  ;;  %v2374_v3 = vmax.f32 %v5797_v37, %v5951_v5 }
 0x1ce   : > { %v2982_v42 = vmax.f32 %v6047_v41, %v2950_v53  ;;  %v3013_v14 = vld [vmem:[#allocation2 + $0x127] sm:$0xff]  ;;  %v3014_v36 = vld [vmem:[#allocation2 + $0x12f] sm:$0xff]  ;;  %v2373_v53 = vmax.f32 %v5795_v20, %v5949_v15  ;;  %2320 = vst.msk [vmem:[#allocation2 + $0x230] sm:$0xff] %vm320_vm1, %v6135_v40 }
 0x1cf   : > { %v3127_v13 = vld [vmem:[#allocation2 + $0x4a] sm:$0xff]  ;;  %v3045_v31 = vmax.f32 %v2981_v6, %v3013_v14  ;;  %2319 = vst.msk [vmem:[#allocation2 + $0x228] sm:$0xff] %vm320_vm1, %v6133_v19  ;;  %4369 = vmatmul.mubr.msk.bf16.gmra.mrb[64].mxu1 %vm320_vm1, %v2618_v8 }
 0x1d0   : > { %v3159_v41 = vmax.f32 %v3095_v38, %v3127_v13  ;;  %v6131_v29 = vld [vmem:[#allocation2 + $0x28] sm:$0xff]  ;;  %v3046_v1 = vmax.f32 %v2982_v42, %v3014_v36  ;;  %v3224_v58 = vld [vmem:[#allocation2 + $0x10] sm:$0xff]  ;;  %v2983_v13 = vmax.f32 %v6083_v18, %v2951_v2  ;;  %3192 = vst.msk [vmem:[#allocation2 + $0x50] sm:$0xff] %vm320_vm1, %v3160_v12 }
 0x1d1   : > { %v3077_v35 = vld [vmem:[#allocation2 + $0x129] sm:$0xff]  ;;  %v3078_v6 = vld [vmem:[#allocation2 + $0x131] sm:$0xff]  ;;  %v3257_v56 = vmax.f32 %v5851_v47, %v6131_v29  ;;  %v3256_v36 = vmax.f32 %v3160_v12, %v3224_v58 }
 0x1d2   : > { %v3109_v44 = vmax.f32 %v3045_v31, %v3077_v35  ;;  %v3255_v38 = vmax.f32 %v3159_v41, %v3223_v59  ;;  %v6145_v50 = vld [vmem:[#allocation2 + $0x30] sm:$0xff]  ;;  %3191 = vst.msk [vmem:[#allocation2 + $0x48] sm:$0xff] %vm320_vm1, %v3159_v41  ;;  %v3110_v20 = vmax.f32 %v3046_v1, %v3078_v6  ;;  %v6152_v26 = vld [vmem:[#allocation2 + $0x68] sm:$0xff]  ;;  %v2437_v59 = vmax.f32 %v2373_v53, %v6032_v0 }
 0x1d3   : > { %v3141_v15 = vld [vmem:[#allocation2 + $0x12a] sm:$0xff]  ;;  %v3142_v42 = vld [vmem:[#allocation2 + $0x132] sm:$0xff]  ;;  %v2438_v35 = vmax.f32 %v2374_v3, %v6034_v22  ;;  %v3258_v18 = vmax.f32 %v5860_v34, %v6145_v50  ;;  %v3320_v6 = vmax.f32 %v3256_v36, %v6145_v50  ;;  %v2376_v50 = vmax.f32 %v5823_v63, %v6034_v22 }
 0x1d4   : > { %v6159_v14 = vmax.f32 %v3109_v44, %v3141_v15  ;;  %v3319_v31 = vmax.f32 %v3255_v38, %v6131_v29  ;;  %v6164_v4 = vld [vmem:[#allocation2 + $0x70] sm:$0xff]  ;;  %v6167_v37 = vmax.f32 %v3110_v20, %v3142_v42  ;;  %v3015_v41 = vld [vmem:[#allocation2 + $0x147] sm:$0xff]  ;;  %v2501_v54 = vmax.f32 %v2437_v59, %v6105_v60 }
 0x1d5   : > { %v2952_v5 = vld [vmem:[#allocation2 + $0x14e] sm:$0xff]  ;;  %v3047_v53 = vmax.f32 %v2983_v13, %v3015_v41  ;;  %v2502_v34 = vmax.f32 %v2438_v35, %v6119_v23  ;;  %v2953_v59 = vld [vmem:[#allocation2 + $0x166] sm:$0xff]  ;;  %v3384_v42 = vmax.f32 %v3320_v6, %v6164_v4  ;;  %v2440_v63 = vmax.f32 %v2376_v50, %v6090_v33 }
 0x1d6   : > { %v6169_v1 = vld [vmem:[#allocation2 + $0x88] sm:$0xff]  ;;  %3205 = vst.msk [vmem:[#allocation2 + $0x128] sm:$0xff] %vm320_vm1, %v6159_v14  ;;  %v2984_v58 = vmax.f32 %v6095_v49, %v2952_v5  ;;  %v3383_v44 = vmax.f32 %v3319_v31, %v6152_v26  ;;  %3206 = vst.msk [vmem:[#allocation2 + $0x130] sm:$0xff] %vm320_vm1, %v6167_v37  ;;  %v6184_v20 = vld [vmem:[#allocation2 + $0x90] sm:$0xff]  ;;  %v2375_v49 = vmax.f32 %v5815_v39, %v6032_v0 }
 0x1d7   : > { %v6180_v8 = vld [vmem:[#allocation2 + $0x1c8] sm:$0xff]  ;;  %v6196_v36 = vld [vmem:[#allocation2 + $0x1d0] sm:$0xff]  ;;  %v2985_v35 = vmax.f32 %v6122_v32, %v2953_v59 }
 0x1d8   : > { %v3016_v12 = vld [vmem:[#allocation2 + $0x14f] sm:$0xff]  ;;  %v6188_v15 = vmax.f32 %v2501_v54, %v6180_v8  ;;  %v3447_v13 = vmax.f32 %v3383_v44, %v6169_v1  ;;  %v6200_v54 = vmax.f32 %v2502_v34, %v6196_v36  ;;  %v2439_v39 = vmax.f32 %v2375_v49, %v6066_v43  ;;  %v3017_v6 = vld [vmem:[#allocation2 + $0x167] sm:$0xff] }
 0x1d9   : > { %v3079_v38 = vld [vmem:[#allocation2 + $0x149] sm:$0xff]  ;;  %v3048_v2 = vmax.f32 %v2984_v58, %v3016_v12  ;;  %v3080_v31 = vld [vmem:[#allocation2 + $0x151] sm:$0xff]  ;;  %v3448_v44 = vmax.f32 %v3384_v42, %v6184_v20  ;;  %v3049_v12 = vmax.f32 %v2985_v35, %v3017_v6 }
 0x1da   : > { %v3111_v3 = vmax.f32 %v3047_v53, %v3079_v38  ;;  %v3143_v5 = vld [vmem:[#allocation2 + $0x14a] sm:$0xff]  ;;  %2923 = vst.msk [vmem:[#allocation2 + $0x188] sm:$0xff] %vm320_vm1, %v6188_v15  ;;  %v3144_v22 = vld [vmem:[#allocation2 + $0x152] sm:$0xff]  ;;  %v2619_v38 = vpack.c.bf16 %v6200_v54, %v6188_v15  ;;  %2924 = vst.msk [vmem:[#allocation2 + $0x190] sm:$0xff] %vm320_vm1, %v6200_v54  ;;  %v2503_v50 = vmax.f32 %v2439_v39, %v6180_v8 }
 0x1db   : > { %v2954_v41 = vld [vmem:[#allocation2 + $0x16e] sm:$0xff]  ;;  %v3112_v0 = vmax.f32 %v3048_v2, %v3080_v31  ;;  %v2504_v2 = vmax.f32 %v2440_v63, %v6196_v36  ;;  %v3511_v42 = vpack.c.bf16 %v3448_v44, %v3447_v13 }
 0x1dc   : > { %v6206_v58 = vmax.f32 %v3111_v3, %v3143_v5  ;;  %v2986_v53 = vmax.f32 %v6128_v24, %v2954_v41  ;;  %v3018_v32 = vld [vmem:[#allocation2 + $0x16f] sm:$0xff]  ;;  %4372 = vmatprep.mubr.msk.bf16.mxu1 %vm320_vm1, %v2619_v38 }
 0x1dd   : > { %v3289_v34 = vld [vmem:[#allocation2 + $0x48] sm:$0xff]  ;;  %v3290_v49 = vld [vmem:[#allocation2 + $0x50] sm:$0xff]  ;;  %v6216_v3 = vmax.f32 %v3112_v0, %v3144_v22  ;;  %4386 = vmatprep.mubr.msk.bf16.mxu0 %vm320_vm1, %v3511_v42 }
 0x1de   : > { %3207 = vst.msk [vmem:[#allocation2 + $0x148] sm:$0xff] %vm320_vm1, %v6206_v58  ;;  %v3050_v24 = vmax.f32 %v2986_v53, %v3018_v32  ;;  %v3081_v59 = vld [vmem:[#allocation2 + $0x169] sm:$0xff]  ;;  %v3321_v31 = vmax.f32 %v3257_v56, %v3289_v34  ;;  %v3082_v41 = vld [vmem:[#allocation2 + $0x171] sm:$0xff]  ;;  %v3322_v39 = vmax.f32 %v3258_v18, %v3290_v49  ;;  %v3259_v63 = vmax.f32 %v5884_v61, %v3289_v34 }
 0x1df   : > { %v6223_v5 = vld [vmem:[#allocation2 + $0xa8] sm:$0xff]  ;;  %v3113_v35 = vmax.f32 %v3049_v12, %v3081_v59  ;;  %v3260_v0 = vmax.f32 %v5889_v46, %v3290_v49  ;;  %v6230_v53 = vld [vmem:[#allocation2 + $0x1f0] sm:$0xff]  ;;  %3208 = vst.msk [vmem:[#allocation2 + $0x150] sm:$0xff] %vm320_vm1, %v6216_v3 }
 0x1e0   : > { %v6228_v22 = vld [vmem:[#allocation2 + $0x1e8] sm:$0xff]  ;;  %v3114_v47 = vmax.f32 %v3050_v24, %v3082_v41  ;;  %v3385_v56 = vmax.f32 %v3321_v31, %v6169_v1  ;;  %v6236_v13 = vld [vmem:[#allocation2 + $0xb0] sm:$0xff]  ;;  %v6242_v61 = vmax.f32 %v2504_v2, %v6230_v53  ;;  %v3386_v44 = vmax.f32 %v3322_v39, %v6184_v20 }
 0x1e1   : > { %v3145_v29 = vld [vmem:[#allocation2 + $0x16a] sm:$0xff]  ;;  %v6239_v18 = vmax.f32 %v2503_v50, %v6228_v22  ;;  %v3146_v46 = vld [vmem:[#allocation2 + $0x172] sm:$0xff]  ;;  %v3323_v32 = vmax.f32 %v3259_v63, %v6152_v26  ;;  %v3324_v12 = vmax.f32 %v3260_v0, %v6164_v4  ;;  %v2377_v2 = vmax.f32 %v5840_v57, %v6066_v43 }
 0x1e2   : > { %v6244_v6 = vmax.f32 %v3113_v35, %v3145_v29  ;;  %v6249_v38 = vmax.f32 %v3114_v47, %v3146_v46  ;;  %v2955_v34 = vld [vmem:[#allocation2 + $0x186] sm:$0xff]  ;;  %v3449_v49 = vmax.f32 %v3385_v56, %v6223_v5  ;;  %2926 = vst.msk [vmem:[#allocation2 + $0x1b0] sm:$0xff] %vm320_vm1, %v6242_v61  ;;  %v3450_v42 = vmax.f32 %v3386_v44, %v6236_v13  ;;  %v6268_v35 = vld [vmem:[#allocation2 + $0xd0] sm:$0xff] }
 0x1e3   : > { %v6252_v24 = vld [vmem:[#allocation2 + $0xc8] sm:$0xff]  ;;  %v2620_v50 = vpack.c.bf16 %v6242_v61, %v6239_v18  ;;  %2925 = vst.msk [vmem:[#allocation2 + $0x1a8] sm:$0xff] %vm320_vm1, %v6239_v18  ;;  %v2987_v59 = vmax.f32 %v6188_v15, %v2955_v34  ;;  %v3387_v31 = vmax.f32 %v3323_v32, %v6223_v5  ;;  %v3388_v41 = vmax.f32 %v3324_v12, %v6236_v13 }
 0x1e4   : > { %3209 = vst.msk [vmem:[#allocation2 + $0x168] sm:$0xff] %vm320_vm1, %v6244_v6  ;;  %3210 = vst.msk [vmem:[#allocation2 + $0x170] sm:$0xff] %vm320_vm1, %v6249_v38  ;;  %v2956_v39 = vld [vmem:[#allocation2 + $0x18e] sm:$0xff]  ;;  %v2378_v57 = vmax.f32 %v5853_v9, %v6090_v33  ;;  %v2441_v43 = vmax.f32 %v2377_v2, %v6105_v60  ;;  %v3261_v15 = vmax.f32 %v5924_v52, %v6152_v26 }
 0x1e5   : > { %v3019_v63 = vld [vmem:[#allocation2 + $0x187] sm:$0xff]  ;;  %4373 = vmatmul.mubr.msk.bf16.gmra.mrb[68].mxu1 %vm320_vm1, %v2620_v50  ;;  %v3262_v0 = vmax.f32 %v5939_v48, %v6164_v4  ;;  %v2988_v47 = vmax.f32 %v6200_v54, %v2956_v39  ;;  %v3512_v56 = vpack.c.bf16 %v3450_v42, %v3449_v49  ;;  %v3451_v46 = vmax.f32 %v3387_v31, %v6252_v24  ;;  %v3020_v44 = vld [vmem:[#allocation2 + $0x18f] sm:$0xff] }
 0x1e6   : > { %v3051_v29 = vmax.f32 %v2987_v59, %v3019_v63  ;;  %v3083_v32 = vld [vmem:[#allocation2 + $0x189] sm:$0xff]  ;;  %v3452_v12 = vmax.f32 %v3388_v41, %v6268_v35  ;;  %v2442_v9 = vmax.f32 %v2378_v57, %v6119_v23  ;;  %v2505_v33 = vmax.f32 %v2441_v43, %v6228_v22  ;;  %v3084_v49 = vld [vmem:[#allocation2 + $0x191] sm:$0xff] }
 0x1e7   : > { %v3325_v34 = vmax.f32 %v3261_v15, %v6169_v1  ;;  %v3052_v52 = vmax.f32 %v2988_v47, %v3020_v44  ;;  %4387 = vmatmul.mubr.msk.bf16.vlgmr.msra.gmra.mrb[48].mxu0 %vm320_vm1, %v3512_v56  ;;  %v6287_v48 = vld [vmem:[#allocation2 + $0x208] sm:$0xff]  ;;  %v3326_v4 = vmax.f32 %v3262_v0, %v6184_v20  ;;  %v3263_v54 = vmax.f32 %v5987_v55, %v6169_v1  ;;  %v6293_v42 = vld [vmem:[#allocation2 + $0x210] sm:$0xff] }
 0x1e8   : > { %v3115_v26 = vmax.f32 %v3051_v29, %v3083_v32  ;;  %v3147_v50 = vld [vmem:[#allocation2 + $0x18a] sm:$0xff]  ;;  %v3513_v2 = vpack.c.bf16 %v3452_v12, %v3451_v46  ;;  %v2506_v59 = vmax.f32 %v2442_v9, %v6230_v53  ;;  %v6296_v31 = vmax.f32 %v2505_v33, %v6287_v48  ;;  %v3148_v0 = vld [vmem:[#allocation2 + $0x192] sm:$0xff] }
 0x1e9   : > { %v3389_v41 = vmax.f32 %v3325_v34, %v6252_v24  ;;  %v3116_v39 = vmax.f32 %v3052_v52, %v3084_v49  ;;  %v3390_v15 = vmax.f32 %v3326_v4, %v6268_v35  ;;  %v6302_v55 = vld [vmem:[#allocation2 + $0xe8] sm:$0xff]  ;;  %v3264_v1 = vmax.f32 %v5999_v62, %v6184_v20  ;;  %v6314_v46 = vld [vmem:[#allocation2 + $0xf0] sm:$0xff] }
 0x1ea   : > { %v6299_v63 = vmax.f32 %v3115_v26, %v3147_v50  ;;  %v2957_v57 = vld [vmem:[#allocation2 + $0x1a6] sm:$0xff]  ;;  %v2958_v43 = vld [vmem:[#allocation2 + $0x1ae] sm:$0xff]  ;;  %4390 = vmatprep.mubr.msk.bf16.mxu0 %vm320_vm1, %v3513_v2  ;;  %v6310_v56 = vmax.f32 %v2506_v59, %v6293_v42  ;;  %2927 = vst.msk [vmem:[#allocation2 + $0x1c8] sm:$0xff] %vm320_vm1, %v6296_v31  ;;  %v2379_v4 = vmax.f32 %v6036_v11, %v6105_v60 }
 0x1eb   : > { %v2989_v47 = vmax.f32 %v6239_v18, %v2957_v57  ;;  %v2990_v29 = vmax.f32 %v6242_v61, %v2958_v43  ;;  %v3453_v44 = vmax.f32 %v3389_v41, %v6302_v55  ;;  %v6317_v32 = vmax.f32 %v3116_v39, %v3148_v0  ;;  %v3021_v62 = vld [vmem:[#allocation2 + $0x1a7] sm:$0xff]  ;;  %v3022_v20 = vld [vmem:[#allocation2 + $0x1af] sm:$0xff] }
 0x1ec   : > { %3211 = vst.msk [vmem:[#allocation2 + $0x188] sm:$0xff] %vm320_vm1, %v6299_v63  ;;  %v3454_v18 = vmax.f32 %v3390_v15, %v6314_v46  ;;  %v3327_v61 = vmax.f32 %v3263_v54, %v6223_v5  ;;  %v3328_v12 = vmax.f32 %v3264_v1, %v6236_v13  ;;  %v2621_v34 = vpack.c.bf16 %v6310_v56, %v6296_v31  ;;  %v6328_v52 = vld [vmem:[#allocation2 + $0x108] sm:$0xff]  ;;  %v6330_v26 = vld [vmem:[#allocation2 + $0x110] sm:$0xff] }
 0x1ed   : > { %v3053_v9 = vmax.f32 %v2989_v47, %v3021_v62  ;;  %v3054_v33 = vmax.f32 %v2990_v29, %v3022_v20  ;;  %2928 = vst.msk [vmem:[#allocation2 + $0x1d0] sm:$0xff] %vm320_vm1, %v6310_v56  ;;  %3212 = vst.msk [vmem:[#allocation2 + $0x190] sm:$0xff] %vm320_vm1, %v6317_v32  ;;  %v3085_v54 = vld [vmem:[#allocation2 + $0x1a9] sm:$0xff]  ;;  %v3086_v49 = vld [vmem:[#allocation2 + $0x1b1] sm:$0xff]  ;;  %v2380_v41 = vmax.f32 %v6038_v16, %v6119_v23 }
 0x1ee   : > { %v3514_v50 = vpack.c.bf16 %v3454_v18, %v3453_v44  ;;  %v3391_v2 = vmax.f32 %v3327_v61, %v6302_v55  ;;  %v3392_v59 = vmax.f32 %v3328_v12, %v6314_v46  ;;  %4376 = vmatprep.mubr.msk.bf16.mxu1 %vm320_vm1, %v2621_v34  ;;  %v2443_v43 = vmax.f32 %v2379_v4, %v6180_v8  ;;  %v3149_v60 = vld [vmem:[#allocation2 + $0x1aa] sm:$0xff]  ;;  %v3150_v15 = vld [vmem:[#allocation2 + $0x1b2] sm:$0xff] }
 0x1ef   : > { %v3117_v39 = vmax.f32 %v3053_v9, %v3085_v54  ;;  %v3118_v57 = vmax.f32 %v3054_v33, %v3086_v49  ;;  %v2381_v11 = vmax.f32 %v6059_v45, %v6180_v8  ;;  %v2444_v47 = vmax.f32 %v2380_v41, %v6196_v36  ;;  %v2539_v16 = vld [vmem:[#allocation2 + $0x228] sm:$0xff]  ;;  %v2540_v8 = vld [vmem:[#allocation2 + $0x230] sm:$0xff] }
 0x1f0   : > { %4391 = vmatmul.mubr.msk.bf16.gmra.mrb[52].mxu0 %vm320_vm1, %v3514_v50  ;;  %v3455_v1 = vmax.f32 %v3391_v2, %v6328_v52  ;;  %v3456_v0 = vmax.f32 %v3392_v59, %v6330_v26  ;;  %v2382_v23 = vmax.f32 %v6061_v25, %v6196_v36  ;;  %v2507_v45 = vmax.f32 %v2443_v43, %v6287_v48  ;;  %v6382_v59 = vld [vmem:[#allocation2 + $0x128] sm:$0xff] }
 0x1f1   : > { %v6350_v29 = vmax.f32 %v3117_v39, %v3149_v60  ;;  %v6352_v44 = vmax.f32 %v3118_v57, %v3150_v15  ;;  %v2445_v62 = vmax.f32 %v2381_v11, %v6228_v22  ;;  %v2959_v20 = vld [vmem:[#allocation2 + $0x1c6] sm:$0xff]  ;;  %v2508_v61 = vmax.f32 %v2444_v47, %v6293_v42 }
 0x1f2   : > { %v3515_v18 = vpack.c.bf16 %v3456_v0, %v3455_v1  ;;  %v2446_v12 = vmax.f32 %v2382_v23, %v6230_v53  ;;  %v3265_v9 = vmax.f32 %v6079_v51, %v6223_v5  ;;  %v2991_v25 = vmax.f32 %v6296_v31, %v2959_v20  ;;  %v3023_v54 = vld [vmem:[#allocation2 + $0x1c7] sm:$0xff] }
 0x1f3   : > { %3213 = vst.msk [vmem:[#allocation2 + $0x1a8] sm:$0xff] %vm320_vm1, %v6350_v29  ;;  %3214 = vst.msk [vmem:[#allocation2 + $0x1b0] sm:$0xff] %vm320_vm1, %v6352_v44  ;;  %v6365_v36 = vmax.f32 %v2507_v45, %v2539_v16  ;;  %v2509_v33 = vmax.f32 %v2445_v62, %v2539_v16  ;;  %v3266_v34 = vmax.f32 %v6086_v10, %v6236_v13  ;;  %v6413_v62 = vld [vmem:[#allocation2 + $0x248] sm:$0xff] }
 0x1f4   : > { %v2960_v4 = vld [vmem:[#allocation2 + $0x1ce] sm:$0xff]  ;;  %4394 = vmatprep.mubr.msk.bf16.mxu0 %vm320_vm1, %v3515_v18  ;;  %v6370_v49 = vmax.f32 %v2508_v61, %v2540_v8  ;;  %v2510_v51 = vmax.f32 %v2446_v12, %v2540_v8  ;;  %v3329_v5 = vmax.f32 %v3265_v9, %v6252_v24  ;;  %v3267_v50 = vmax.f32 %v6103_v7, %v6252_v24 }
 0x1f5   : > { %v2992_v31 = vmax.f32 %v6310_v56, %v2960_v4  ;;  %v3055_v2 = vmax.f32 %v2991_v25, %v3023_v54  ;;  %2929 = vst.msk [vmem:[#allocation2 + $0x1e8] sm:$0xff] %vm320_vm1, %v6365_v36  ;;  %v6379_v10 = vmax.f32 %v2509_v33, %v5900_v21  ;;  %v3330_v13 = vmax.f32 %v3266_v34, %v6268_v35  ;;  %v3024_v41 = vld [vmem:[#allocation2 + $0x1cf] sm:$0xff] }
 0x1f6   : > { %v3087_v39 = vld [vmem:[#allocation2 + $0x1c9] sm:$0xff]  ;;  %v2622_v57 = vpack.c.bf16 %v6370_v49, %v6365_v36  ;;  %2930 = vst.msk [vmem:[#allocation2 + $0x1f0] sm:$0xff] %vm320_vm1, %v6370_v49  ;;  %v6389_v7 = vmax.f32 %v2510_v51, %v5880_v17  ;;  %v3393_v24 = vmax.f32 %v3329_v5, %v6328_v52  ;;  %v3268_v21 = vmax.f32 %v6108_v28, %v6268_v35  ;;  %v3088_v1 = vld [vmem:[#allocation2 + $0x1d1] sm:$0xff] }
 0x1f7   : > { %v6392_v56 = vld [vmem:[#allocation2 + $0x130] sm:$0xff]  ;;  %v3056_v43 = vmax.f32 %v2992_v31, %v3024_v41  ;;  %v3119_v11 = vmax.f32 %v3055_v2, %v3087_v39  ;;  %2931 = vst.msk [vmem:[#allocation2 + $0x208] sm:$0xff] %vm320_vm1, %v6379_v10  ;;  %v3394_v60 = vmax.f32 %v3330_v13, %v6330_v26  ;;  %v3331_v15 = vmax.f32 %v3267_v50, %v6302_v55  ;;  %v6417_v61 = vld [vmem:[#allocation2 + $0x148] sm:$0xff] }
 0x1f8   : > { %v3151_v0 = vld [vmem:[#allocation2 + $0x1ca] sm:$0xff]  ;;  %4377 = vmatmul.mubr.msk.bf16.gmra.mrb[72].mxu1 %vm320_vm1, %v2622_v57  ;;  %v2623_v17 = vpack.c.bf16 %v6389_v7, %v6379_v10  ;;  %2932 = vst.msk [vmem:[#allocation2 + $0x210] sm:$0xff] %vm320_vm1, %v6389_v7  ;;  %v3457_v28 = vmax.f32 %v3393_v24, %v6382_v59  ;;  %v3332_v35 = vmax.f32 %v3268_v21, %v6314_v46  ;;  %v3152_v20 = vld [vmem:[#allocation2 + $0x1d2] sm:$0xff] }
 0x1f9   : > { %v2383_v47 = vmax.f32 %v6133_v19, %v6228_v22  ;;  %v3120_v16 = vmax.f32 %v3056_v43, %v3088_v1  ;;  %v6409_v23 = vmax.f32 %v3119_v11, %v3151_v0  ;;  %v3458_v45 = vmax.f32 %v3394_v60, %v6392_v56  ;;  %v6428_v33 = vld [vmem:[#allocation2 + $0x150] sm:$0xff] }
 0x1fa   : > { %v3395_v8 = vmax.f32 %v3331_v15, %v6382_v59  ;;  %4380 = vmatprep.mubr.msk.bf16.mxu1 %vm320_vm1, %v2623_v17  ;;  %v3396_v18 = vmax.f32 %v3332_v35, %v6392_v56  ;;  %v2384_v12 = vmax.f32 %v6135_v40, %v6230_v53  ;;  %v3269_v22 = vmax.f32 %v6159_v14, %v6302_v55  ;;  %v6431_v4 = vld [vmem:[#allocation2 + $0x250] sm:$0xff] }
 0x1fb   : > { %v2447_v19 = vmax.f32 %v2383_v47, %v6287_v48  ;;  %v6424_v9 = vmax.f32 %v3120_v16, %v3152_v20  ;;  %3215 = vst.msk [vmem:[#allocation2 + $0x1c8] sm:$0xff] %vm320_vm1, %v6409_v23  ;;  %v3516_v25 = vpack.c.bf16 %v3458_v45, %v3457_v28  ;;  %v3270_v40 = vmax.f32 %v6167_v37, %v6314_v46  ;;  %v6444_v37 = vld [vmem:[#allocation2 + $0x168] sm:$0xff]  ;;  %v6455_v57 = vld [vmem:[#allocation2 + $0x170] sm:$0xff] }
 0x1fc   : > { %v3459_v34 = vmax.f32 %v3395_v8, %v6417_v61  ;;  %v2961_v53 = vld [vmem:[#allocation2 + $0x1e6] sm:$0xff]  ;;  %v3460_v48 = vmax.f32 %v3396_v18, %v6428_v33  ;;  %v2448_v14 = vmax.f32 %v2384_v12, %v6293_v42  ;;  %v3333_v54 = vmax.f32 %v3269_v22, %v6328_v52  ;;  %v6477_v18 = vld [vmem:[#allocation2 + $0x190] sm:$0xff] }
 0x1fd   : > { %v2511_v55 = vmax.f32 %v2447_v19, %v6413_v62  ;;  %3216 = vst.msk [vmem:[#allocation2 + $0x1d0] sm:$0xff] %vm320_vm1, %v6424_v9  ;;  %v2962_v51 = vld [vmem:[#allocation2 + $0x1ee] sm:$0xff]  ;;  %v2993_v5 = vmax.f32 %v6365_v36, %v2961_v53  ;;  %4395 = vmatmul.mubr.msk.bf16.gmra.mrb[56].mxu0 %vm320_vm1, %v3516_v25  ;;  %v3334_v50 = vmax.f32 %v3270_v40, %v6330_v26 }
 0x1fe   : > { %v3271_v46 = vmax.f32 %v6206_v58, %v6328_v52  ;;  %v3272_v42 = vmax.f32 %v6216_v3, %v6330_v26  ;;  %v2994_v31 = vmax.f32 %v6370_v49, %v2962_v51  ;;  %v3025_v2 = vld [vmem:[#allocation2 + $0x1e7] sm:$0xff]  ;;  %v3026_v13 = vld [vmem:[#allocation2 + $0x1ef] sm:$0xff]  ;;  %v3517_v41 = vpack.c.bf16 %v3460_v48, %v3459_v34 }
 0x1ff   : > { %v2512_v39 = vmax.f32 %v2448_v14, %v6431_v4  ;;  %v6453_v36 = vmax.f32 %v2511_v55, %v5997_v27  ;;  %v3057_v24 = vmax.f32 %v2993_v5, %v3025_v2  ;;  %v2963_v21 = vld [vmem:[#allocation2 + $0x206] sm:$0xff]  ;;  %v2964_v43 = vld [vmem:[#allocation2 + $0x20e] sm:$0xff]  ;;  %v3397_v58 = vmax.f32 %v3333_v54, %v6417_v61 }
 0x200   : > { %v3027_v11 = vld [vmem:[#allocation2 + $0x207] sm:$0xff]  ;;  %v3398_v3 = vmax.f32 %v3334_v50, %v6428_v33  ;;  %v3335_v52 = vmax.f32 %v3271_v46, %v6382_v59  ;;  %v3058_v26 = vmax.f32 %v2994_v31, %v3026_v13  ;;  %v2995_v60 = vmax.f32 %v6379_v10, %v2963_v21  ;;  %v3028_v27 = vld [vmem:[#allocation2 + $0x20f] sm:$0xff]  ;;  %4398 = vmatprep.mubr.msk.bf16.mxu0 %vm320_vm1, %v3517_v41 }
 0x201   : > { %v3089_v49 = vld [vmem:[#allocation2 + $0x1e9] sm:$0xff]  ;;  %v2996_v15 = vmax.f32 %v6389_v7, %v2964_v43  ;;  %v6464_v1 = vmax.f32 %v2512_v39, %v5977_v30  ;;  %2933 = vst.msk [vmem:[#allocation2 + $0x228] sm:$0xff] %vm320_vm1, %v6453_v36  ;;  %v3090_v0 = vld [vmem:[#allocation2 + $0x1f1] sm:$0xff]  ;;  %v3461_v35 = vmax.f32 %v3397_v58, %v6444_v37  ;;  %v3336_v10 = vmax.f32 %v3272_v42, %v6392_v56 }
 0x202   : > { %v3121_v17 = vmax.f32 %v3057_v24, %v3089_v49  ;;  %v3091_v28 = vld [vmem:[#allocation2 + $0x209] sm:$0xff]  ;;  %v3462_v47 = vmax.f32 %v3398_v3, %v6455_v57  ;;  %v3122_v16 = vmax.f32 %v3058_v26, %v3090_v0  ;;  %v3059_v45 = vmax.f32 %v2995_v60, %v3027_v11  ;;  %v3154_v12 = vld [vmem:[#allocation2 + $0x1f2] sm:$0xff] }
 0x203   : > { %v3153_v7 = vld [vmem:[#allocation2 + $0x1ea] sm:$0xff]  ;;  %v3060_v8 = vmax.f32 %v2996_v15, %v3028_v27  ;;  %v2624_v30 = vpack.c.bf16 %v6464_v1, %v6453_v36  ;;  %2934 = vst.msk [vmem:[#allocation2 + $0x230] sm:$0xff] %vm320_vm1, %v6464_v1  ;;  %v3399_v34 = vmax.f32 %v3335_v52, %v6444_v37  ;;  %v3400_v40 = vmax.f32 %v3336_v10, %v6455_v57  ;;  %v3156_v51 = vld [vmem:[#allocation2 + $0x212] sm:$0xff] }
 0x204   : > { %v6475_v20 = vld [vmem:[#allocation2 + $0x188] sm:$0xff]  ;;  %v6479_v19 = vmax.f32 %v3121_v17, %v3153_v7  ;;  %v3092_v22 = vld [vmem:[#allocation2 + $0x211] sm:$0xff]  ;;  %v3518_v25 = vpack.c.bf16 %v3462_v47, %v3461_v35  ;;  %v6483_v53 = vmax.f32 %v3122_v16, %v3154_v12  ;;  %v3123_v48 = vmax.f32 %v3059_v45, %v3091_v28 }
 0x205   : > { %v3124_v14 = vmax.f32 %v3060_v8, %v3092_v22  ;;  %4381 = vmatmul.mubr.msk.bf16.gmra.mrb[76].mxu1 %vm320_vm1, %v2624_v30  ;;  %v3273_v55 = vmax.f32 %v6244_v6, %v6382_v59  ;;  %v3155_v54 = vld [vmem:[#allocation2 + $0x20a] sm:$0xff]  ;;  %v3463_v5 = vmax.f32 %v3399_v34, %v6475_v20  ;;  %v3464_v50 = vmax.f32 %v3400_v40, %v6477_v18 }
 0x206   : > { %3217 = vst.msk [vmem:[#allocation2 + $0x1e8] sm:$0xff] %vm320_vm1, %v6479_v19  ;;  %4399 = vmatmul.mubr.msk.bf16.gmra.mrb[60].mxu0 %vm320_vm1, %v3518_v25  ;;  %v3274_v46 = vmax.f32 %v6249_v38, %v6392_v56  ;;  %v3275_v42 = vmax.f32 %v6299_v63, %v6417_v61  ;;  %3218 = vst.msk [vmem:[#allocation2 + $0x1f0] sm:$0xff] %vm320_vm1, %v6483_v53  ;;  %v6499_v6 = vmax.f32 %v3123_v48, %v3155_v54  ;;  %v6504_v2 = vld [vmem:[#allocation2 + $0x1a8] sm:$0xff]  ;;  %v6509_v63 = vld [vmem:[#allocation2 + $0x1b0] sm:$0xff] }
 0x207   : > { %v6501_v59 = vmax.f32 %v3124_v14, %v3156_v51  ;;  %v3337_v31 = vmax.f32 %v3273_v55, %v6417_v61  ;;  %v3276_v13 = vmax.f32 %v6317_v32, %v6428_v33  ;;  %v3519_v38 = vpack.c.bf16 %v3464_v50, %v3463_v5  ;;  %v6533_v27 = vld [vmem:[#allocation2 + $0x1d0] sm:$0xff]  ;;  %v6566_v50 = vpop.f32.mrb[16].mxu1 }
 0x208   : > { %v2965_v41 = vld [vmem:[#allocation2 + $0x226] sm:$0xff]  ;;  %v3338_v56 = vmax.f32 %v3274_v46, %v6428_v33  ;;  %v3339_v24 = vmax.f32 %v3275_v42, %v6444_v37  ;;  %v3277_v21 = vmax.f32 %v6350_v29, %v6444_v37  ;;  %3219 = vst.msk [vmem:[#allocation2 + $0x208] sm:$0xff] %vm320_vm1, %v6499_v6  ;;  %v3278_v33 = vmax.f32 %v6352_v44, %v6455_v57 }
 0x209   : > { %v3029_v39 = vld [vmem:[#allocation2 + $0x227] sm:$0xff]  ;;  %3220 = vst.msk [vmem:[#allocation2 + $0x210] sm:$0xff] %vm320_vm1, %v6501_v59  ;;  %v2997_v32 = vmax.f32 %v6453_v36, %v2965_v41  ;;  %v3401_v61 = vmax.f32 %v3337_v31, %v6475_v20  ;;  %v3340_v43 = vmax.f32 %v3276_v13, %v6455_v57  ;;  %4402 = vmatprep.mubr.msk.bf16.mxu0 %vm320_vm1, %v3519_v38 }
 0x20a   : > { %v2966_v11 = vld [vmem:[#allocation2 + $0x22e] sm:$0xff]  ;;  %v3402_v29 = vmax.f32 %v3338_v56, %v6477_v18  ;;  %v3403_v37 = vmax.f32 %v3339_v24, %v6504_v2  ;;  %v3341_v52 = vmax.f32 %v3277_v21, %v6475_v20  ;;  %v3279_v36 = vmax.f32 %v6409_v23, %v6475_v20 }
 0x20b   : > { %v3030_v58 = vld [vmem:[#allocation2 + $0x22f] sm:$0xff]  ;;  %v2998_v26 = vmax.f32 %v6464_v1, %v2966_v11  ;;  %v3061_v49 = vmax.f32 %v2997_v32, %v3029_v39  ;;  %v3465_v60 = vmax.f32 %v3401_v61, %v6504_v2  ;;  %v3404_v44 = vmax.f32 %v3340_v43, %v6509_v63 }
 0x20c   : > { %v3093_v3 = vld [vmem:[#allocation2 + $0x229] sm:$0xff]  ;;  %v3466_v15 = vmax.f32 %v3402_v29, %v6509_v63  ;;  %v3342_v17 = vmax.f32 %v3278_v33, %v6477_v18  ;;  %v3280_v10 = vmax.f32 %v6424_v9, %v6477_v18  ;;  %v3094_v16 = vld [vmem:[#allocation2 + $0x231] sm:$0xff]  ;;  %v3343_v20 = vmax.f32 %v3279_v36, %v6504_v2 }
 0x20d   : > { %v3435_v57 = vld [vmem:[#allocation2 + $0x1c8] sm:$0xff]  ;;  %v3062_v35 = vmax.f32 %v2998_v26, %v3030_v58  ;;  %v3125_v47 = vmax.f32 %v3061_v49, %v3093_v3  ;;  %v3468_v23 = vmax.f32 %v3404_v44, %v6533_v27  ;;  %v6549_v34 = vld [vmem:[#allocation2 + $0x1f0] sm:$0xff]  ;;  %v3281_v14 = vmax.f32 %v6479_v19, %v6504_v2 }
 0x20e   : > { %v3467_v0 = vmax.f32 %v3403_v37, %v3435_v57  ;;  %v3405_v28 = vmax.f32 %v3341_v52, %v3435_v57  ;;  %v6537_v1 = vld [vmem:[#allocation2 + $0x1e8] sm:$0xff]  ;;  %v3520_v45 = vpack.c.bf16 %v3466_v15, %v3465_v60  ;;  %v3406_v8 = vmax.f32 %v3342_v17, %v6533_v27  ;;  %v3158_v9 = vld [vmem:[#allocation2 + $0x232] sm:$0xff] }
 0x20f   : > { %v3157_v7 = vld [vmem:[#allocation2 + $0x22a] sm:$0xff]  ;;  %v3126_v12 = vmax.f32 %v3062_v35, %v3094_v16  ;;  %v3344_v40 = vmax.f32 %v3280_v10, %v6509_v63  ;;  %v3407_v48 = vmax.f32 %v3343_v20, %v6537_v1  ;;  %v3282_v55 = vmax.f32 %v6483_v53, %v6509_v63 }
 0x210   : > { %v6543_v30 = vmax.f32 %v3405_v28, %v6537_v1  ;;  %v6547_v22 = vmax.f32 %v3125_v47, %v3157_v7  ;;  %v3521_v25 = vpack.c.bf16 %v3468_v23, %v3467_v0  ;;  %4403 = vmatmul.mubr.msk.bf16.gmra.mrb[64].mxu0 %vm320_vm1, %v3520_v45  ;;  %v6554_v18 = vmax.f32 %v3406_v8, %v6549_v34  ;;  %v6575_v53 = vld [vmem:[#allocation2 + $0x208] sm:$0xff]  ;;  %v3440_v46 = vld [vmem:[#allocation2 + $0x210] sm:$0xff] }
 0x211   : > { %v3190_v54 = vmax.f32 %v3126_v12, %v3158_v9  ;;  %v3408_v51 = vmax.f32 %v3344_v40, %v6549_v34  ;;  %v3283_v5 = vmax.f32 %v6499_v6, %v3435_v57  ;;  %v3284_v42 = vmax.f32 %v6501_v59, %v6533_v27  ;;  %v6579_v6 = vpop.f32.mrb[17].mxu1  ;;  %v3445_v9 = vld [vmem:[#allocation2 + $0x268] sm:$0xff] }
 0x212   : > { %3221 = vst.msk [vmem:[#allocation2 + $0x228] sm:$0xff] %vm320_vm1, %v6547_v22  ;;  %4406 = vmatprep.mubr.msk.bf16.mxu0 %vm320_vm1, %v3521_v25  ;;  %v3522_v19 = vpack.c.bf16 %v6554_v18, %v6543_v30  ;;  %v3471_v31 = vmax.f32 %v3407_v48, %v6575_v53  ;;  %v3345_v13 = vmax.f32 %v3281_v14, %v3435_v57  ;;  %v6584_v39 = vpop.f32.mrb[18].mxu1  ;;  %v7301_v24 = vmov 0.0  }
 0x213   : > { %3222 = vst.msk [vmem:[#allocation2 + $0x230] sm:$0xff] %vm320_vm1, %v3190_v54  ;;  %v3472_v2 = vmax.f32 %v3408_v51, %v3440_v46  ;;  %v3346_v41 = vmax.f32 %v3282_v55, %v6533_v27  ;;  %v3286_v59 = vmax.f32 %v3190_v54, %v6549_v34  ;;  %v6587_v38 = vpop.f32.mrb[19].mxu1  ;;  %v3347_v63 = vmax.f32 %v3283_v5, %v6537_v1 }
 0x214   : > { %290 = vst.msk [vmem:[%s6571_s16 + $0x10] sm:$0xff] %vm287_vm4, %v7301_v24  ;;  %288 = vst.msk [vmem:[%s6571_s16] sm:$0xff] %vm287_vm4, %v7301_v24  ;;  %v3409_v21 = vmax.f32 %v3345_v13, %v6575_v53  ;;  %v3348_v61 = vmax.f32 %v3284_v42, %v6549_v34  ;;  %v3285_v33 = vmax.f32 %v6547_v22, %v6537_v1  ;;  %v4290_v3 = vpop.f32.mrb[20].mxu1  ;;  %v3446_v22 = vld [vmem:[#allocation2 + $0x270] sm:$0xff] }
 0x215   : > { %v3523_v56 = vpack.c.bf16 %v3472_v2, %v3471_v31  ;;  %289 = vst.msk [vmem:[%s6571_s16 + $0x8] sm:$0xff] %vm287_vm4, %v7301_v24  ;;  %291 = vst.msk [vmem:[%s6571_s16 + $0x18] sm:$0xff] %vm287_vm4, %v7301_v24  ;;  %v3410_v32 = vmax.f32 %v3346_v41, %v3440_v46  ;;  %v3350_v11 = vmax.f32 %v3286_v59, %v3440_v46  ;;  %v919_v37 = vpop.f32.mrb[21].mxu1 }
 0x216   : > { %292 = vst.msk [vmem:[%s6571_s16 + $0x20] sm:$0xff] %vm287_vm4, %v7301_v24  ;;  %293 = vst.msk [vmem:[%s6571_s16 + $0x28] sm:$0xff] %vm287_vm4, %v7301_v24  ;;  %v4291_v49 = vpop.f32.mrb[22].mxu1  ;;  %v3349_v44 = vmax.f32 %v3285_v33, %v6575_v53 }
 0x217   : > { %294 = vst.msk [vmem:[%s6571_s16 + $0x30] sm:$0xff] %vm287_vm4, %v7301_v24  ;;  %295 = vst.msk [vmem:[%s6571_s16 + $0x38] sm:$0xff] %vm287_vm4, %v7301_v24  ;;  %v3414_v57 = vmax.f32 %v3350_v11, %v6431_v4  ;;  %v922_v17 = vpop.f32.mrb[23].mxu1 }
 0x218   : > { %296 = vst.msk [vmem:[%s6571_s16 + $0x40] sm:$0xff] %vm287_vm4, %v7301_v24  ;;  %297 = vst.msk [vmem:[%s6571_s16 + $0x48] sm:$0xff] %vm287_vm4, %v7301_v24  ;;  %4407 = vmatmul.mubr.msk.bf16.gmra.mrb[68].mxu0 %vm320_vm1, %v3522_v19  ;;  %v3413_v40 = vmax.f32 %v3349_v44, %v6413_v62  ;;  %v4294_v54 = vpop.f32.mrb[24].mxu1 }
 0x219   : > { %298 = vst.msk [vmem:[%s6571_s16 + $0x50] sm:$0xff] %vm287_vm4, %v7301_v24  ;;  %299 = vst.msk [vmem:[%s6571_s16 + $0x58] sm:$0xff] %vm287_vm4, %v7301_v24  ;;  %v3441_v43 = vld [vmem:[#allocation2 + $0x228] sm:$0xff]  ;;  %4410 = vmatprep.mubr.msk.bf16.mxu0 %vm320_vm1, %v3523_v56  ;;  %v3478_v18 = vmax.f32 %v3414_v57, %v3446_v22 }
 0x21a   : > { %300 = vst.msk [vmem:[%s6571_s16 + $0x60] sm:$0xff] %vm287_vm4, %v7301_v24  ;;  %301 = vst.msk [vmem:[%s6571_s16 + $0x68] sm:$0xff] %vm287_vm4, %v7301_v24  ;;  %v3411_v58 = vmax.f32 %v3347_v63, %v3441_v43  ;;  %v3442_v29 = vld [vmem:[#allocation2 + $0x230] sm:$0xff]  ;;  %v3473_v52 = vmax.f32 %v3409_v21, %v3441_v43 }
 0x21b   : > { %302 = vst.msk [vmem:[%s6571_s16 + $0x70] sm:$0xff] %vm287_vm4, %v7301_v24  ;;  %303 = vst.msk [vmem:[%s6571_s16 + $0x78] sm:$0xff] %vm287_vm4, %v7301_v24  ;;  %v3474_v36 = vmax.f32 %v3410_v32, %v3442_v29  ;;  %v3412_v26 = vmax.f32 %v3348_v61, %v3442_v29  ;;  %v769_v15 = vld [vmem:[%s6571_s16 + $0x10] sm:$0xff]  ;;  %v767_v27 = vld [vmem:[%s6571_s16] sm:$0xff] }
 0x21c   : > { %304 = vst.msk [vmem:[%s6571_s16 + $0x80] sm:$0xff] %vm287_vm4, %v7301_v24  ;;  %305 = vst.msk [vmem:[%s6571_s16 + $0x88] sm:$0xff] %vm287_vm4, %v7301_v24  ;;  %v3475_v60 = vmax.f32 %v3411_v58, %v6413_v62  ;;  %v770_v0 = vld [vmem:[%s6571_s16 + $0x18] sm:$0xff]  ;;  %v1032_v47 = vadd.f32 %v6566_v50, %v769_v15  ;;  %v1030_v23 = vadd.f32 %v6579_v6, %v767_v27  ;;  %v768_v1 = vld [vmem:[%s6571_s16 + $0x8] sm:$0xff]  ;;  %v935_v50 = vpop.f32.mrb[25].mxu1 }
 0x21d   : > { %306 = vst.msk [vmem:[%s6571_s16 + $0x90] sm:$0xff] %vm287_vm4, %v7301_v24  ;;  %307 = vst.msk [vmem:[%s6571_s16 + $0x98] sm:$0xff] %vm287_vm4, %v7301_v24  ;;  %v3524_v28 = vpack.c.bf16 %v3474_v36, %v3473_v52  ;;  %v3476_v35 = vmax.f32 %v3412_v26, %v6431_v4  ;;  %v771_v16 = vld [vmem:[%s6571_s16 + $0x20] sm:$0xff]  ;;  %v1033_v7 = vadd.f32 %v6584_v39, %v770_v0  ;;  %v772_v4 = vld [vmem:[%s6571_s16 + $0x28] sm:$0xff]  ;;  %v4295_v46 = vpop.f32.mrb[26].mxu1 }
 0x21e   : > { %308 = vst.msk [vmem:[%s6571_s16 + $0xa0] sm:$0xff] %vm287_vm4, %v7301_v24  ;;  %309 = vst.msk [vmem:[%s6571_s16 + $0xa8] sm:$0xff] %vm287_vm4, %v7301_v24  ;;  %v773_v10 = vld [vmem:[%s6571_s16 + $0x30] sm:$0xff]  ;;  %v1031_v45 = vadd.f32 %v6587_v38, %v768_v1  ;;  %v1034_v30 = vadd.f32 %v919_v37, %v771_v16  ;;  %v774_v20 = vld [vmem:[%s6571_s16 + $0x38] sm:$0xff]  ;;  %v1035_v34 = vadd.f32 %v922_v17, %v772_v4  ;;  %v938_v6 = vpop.f32.mrb[27].mxu1 }
 0x21f   : > { %310 = vst.msk [vmem:[%s6571_s16 + $0xb0] sm:$0xff] %vm287_vm4, %v7301_v24  ;;  %311 = vst.msk [vmem:[%s6571_s16 + $0xb8] sm:$0xff] %vm287_vm4, %v7301_v24  ;;  %v1036_v8 = vadd.f32 %v4290_v3, %v773_v10  ;;  %v3525_v12 = vpack.c.bf16 %v3476_v35, %v3475_v60  ;;  %v1037_v25 = vadd.f32 %v4291_v49, %v774_v20  ;;  %v775_v55 = vld [vmem:[%s6571_s16 + $0x40] sm:$0xff]  ;;  %v776_v19 = vld [vmem:[%s6571_s16 + $0x48] sm:$0xff]  ;;  %v4298_v41 = vpop.f32.mrb[28].mxu1 }
 0x220   : > { %312 = vst.msk [vmem:[%s6571_s16 + $0xc0] sm:$0xff] %vm287_vm4, %v7301_v24  ;;  %313 = vst.msk [vmem:[%s6571_s16 + $0xc8] sm:$0xff] %vm287_vm4, %v7301_v24  ;;  %4411 = vmatmul.mubr.msk.bf16.gmra.mrb[72].mxu0 %vm320_vm1, %v3524_v28  ;;  %v3477_v62 = vmax.f32 %v3413_v40, %v3445_v9  ;;  %v777_v14 = vld [vmem:[%s6571_s16 + $0x50] sm:$0xff]  ;;  %v778_v51 = vld [vmem:[%s6571_s16 + $0x58] sm:$0xff]  ;;  %v1038_v53 = vadd.f32 %v935_v50, %v775_v55  ;;  %v1039_v31 = vadd.f32 %v938_v6, %v776_v19  ;;  %v951_v38 = vpop.f32.mrb[29].mxu1  ;;  %v4320_v16 = vpop.f32.mrb[16].mxu0 }
 0x221   : > { %314 = vst.msk [vmem:[%s6571_s16 + $0xd0] sm:$0xff] %vm287_vm4, %v7301_v24  ;;  %315 = vst.msk [vmem:[%s6571_s16 + $0xd8] sm:$0xff] %vm287_vm4, %v7301_v24  ;;  %4414 = vmatprep.mubr.msk.bf16.mxu0 %vm320_vm1, %v3525_v12  ;;  %v1040_v5 = vadd.f32 %v4294_v54, %v777_v14  ;;  %v1041_v42 = vadd.f32 %v4295_v46, %v778_v51  ;;  %v779_v13 = vld [vmem:[%s6571_s16 + $0x60] sm:$0xff]  ;;  %v780_v56 = vld [vmem:[%s6571_s16 + $0x68] sm:$0xff] }
 0x222   : > { %316 = vst.msk [vmem:[%s6571_s16 + $0xe0] sm:$0xff] %vm287_vm4, %v7301_v24  ;;  %317 = vst.msk [vmem:[%s6571_s16 + $0xe8] sm:$0xff] %vm287_vm4, %v7301_v24  ;;  %v3526_v48 = vpack.c.bf16 %v3478_v18, %v3477_v62  ;;  %v781_v2 = vld [vmem:[%s6571_s16 + $0x70] sm:$0xff]  ;;  %v782_v39 = vld [vmem:[%s6571_s16 + $0x78] sm:$0xff]  ;;  %v1042_v63 = vadd.f32 %v951_v38, %v779_v13 }
 0x223   : > { %318 = vst.msk [vmem:[%s6571_s16 + $0xf0] sm:$0xff] %vm287_vm4, %v7301_v24  ;;  %319 = vst.msk [vmem:[%s6571_s16 + $0xf8] sm:$0xff] %vm287_vm4, %v7301_v24  ;;  %v1044_v59 = vadd.f32 %v4298_v41, %v781_v2  ;;  %v4299_v24 = vpop.f32.mrb[30].mxu1  ;;  %v783_v33 = vld [vmem:[%s6571_s16 + $0x80] sm:$0xff]  ;;  %v784_v37 = vld [vmem:[%s6571_s16 + $0x88] sm:$0xff] }
 0x224   : > { %1065 = vst.msk [vmem:[%s6571_s16 + $0x10] sm:$0xff] %vm287_vm4, %v1032_v47  ;;  %1063 = vst.msk [vmem:[%s6571_s16] sm:$0xff] %vm287_vm4, %v1030_v23  ;;  %v1045_v21 = vadd.f32 %v4299_v24, %v782_v39  ;;  %v954_v32 = vpop.f32.mrb[31].mxu1  ;;  %v785_v43 = vld [vmem:[%s6571_s16 + $0x90] sm:$0xff]  ;;  %v786_v58 = vld [vmem:[%s6571_s16 + $0x98] sm:$0xff] }
 0x225   : > { %1066 = vst.msk [vmem:[%s6571_s16 + $0x18] sm:$0xff] %vm287_vm4, %v1033_v7  ;;  %1064 = vst.msk [vmem:[%s6571_s16 + $0x8] sm:$0xff] %vm287_vm4, %v1031_v45  ;;  %v1043_v61 = vadd.f32 %v954_v32, %v780_v56  ;;  %v4302_v11 = vpop.f32.mrb[32].mxu1  ;;  %v787_v57 = vld [vmem:[%s6571_s16 + $0xa0] sm:$0xff]  ;;  %v788_v28 = vld [vmem:[%s6571_s16 + $0xa8] sm:$0xff] }
 0x226   : > { %1069 = vst.msk [vmem:[%s6571_s16 + $0x30] sm:$0xff] %vm287_vm4, %v1036_v8  ;;  %1067 = vst.msk [vmem:[%s6571_s16 + $0x20] sm:$0xff] %vm287_vm4, %v1034_v30  ;;  %v1048_v3 = vadd.f32 %v4302_v11, %v785_v43  ;;  %v967_v29 = vpop.f32.mrb[33].mxu1  ;;  %v789_v44 = vld [vmem:[%s6571_s16 + $0xb0] sm:$0xff]  ;;  %v790_v27 = vld [vmem:[%s6571_s16 + $0xb8] sm:$0xff]  ;;  %v1810_v30 = vpop.f32.mrb[17].mxu0 }
 0x227   : > { %1070 = vst.msk [vmem:[%s6571_s16 + $0x38] sm:$0xff] %vm287_vm4, %v1037_v25  ;;  %1068 = vst.msk [vmem:[%s6571_s16 + $0x28] sm:$0xff] %vm287_vm4, %v1035_v34  ;;  %v1046_v52 = vadd.f32 %v967_v29, %v783_v33  ;;  %v4303_v36 = vpop.f32.mrb[34].mxu1  ;;  %v4321_v12 = vpop.f32.mrb[18].mxu0  ;;  %v791_v9 = vld [vmem:[%s6571_s16 + $0xc0] sm:$0xff]  ;;  %v792_v54 = vld [vmem:[%s6571_s16 + $0xc8] sm:$0xff] }
 0x228   : > { %4415 = vmatmul.mubr.msk.bf16.gmra.mrb[76].mxu0 %vm320_vm1, %v3526_v48  ;;  %1073 = vst.msk [vmem:[%s6571_s16 + $0x50] sm:$0xff] %vm287_vm4, %v1040_v5  ;;  %1071 = vst.msk [vmem:[%s6571_s16 + $0x40] sm:$0xff] %vm287_vm4, %v1038_v53  ;;  %v1049_v26 = vadd.f32 %v4303_v36, %v786_v58  ;;  %v970_v49 = vpop.f32.mrb[35].mxu1  ;;  %v793_v22 = vld [vmem:[%s6571_s16 + $0xd0] sm:$0xff]  ;;  %v1813_v40 = vpop.f32.mrb[19].mxu0  ;;  %v794_v48 = vld [vmem:[%s6571_s16 + $0xd8] sm:$0xff] }
 0x229   : > { %1074 = vst.msk [vmem:[%s6571_s16 + $0x58] sm:$0xff] %vm287_vm4, %v1041_v42  ;;  %1072 = vst.msk [vmem:[%s6571_s16 + $0x48] sm:$0xff] %vm287_vm4, %v1039_v31  ;;  %v1047_v60 = vadd.f32 %v970_v49, %v784_v37  ;;  %v4306_v15 = vpop.f32.mrb[36].mxu1  ;;  %v4324_v46 = vpop.f32.mrb[20].mxu0  ;;  %v795_v24 = vld [vmem:[%s6571_s16 + $0xe0] sm:$0xff]  ;;  %v796_v11 = vld [vmem:[%s6571_s16 + $0xe8] sm:$0xff] }
 0x22a   : > { %1077 = vst.msk [vmem:[%s6571_s16 + $0x70] sm:$0xff] %vm287_vm4, %v1044_v59  ;;  %1075 = vst.msk [vmem:[%s6571_s16 + $0x60] sm:$0xff] %vm287_vm4, %v1042_v63  ;;  %v1052_v0 = vadd.f32 %v4306_v15, %v789_v44  ;;  %v983_v17 = vpop.f32.mrb[37].mxu1  ;;  %v1826_v2 = vpop.f32.mrb[21].mxu0  ;;  %v797_v59 = vld [vmem:[%s6571_s16 + $0xf0] sm:$0xff] }
 0x22b   : > { %1078 = vst.msk [vmem:[%s6571_s16 + $0x78] sm:$0xff] %vm287_vm4, %v1045_v21  ;;  %1076 = vst.msk [vmem:[%s6571_s16 + $0x68] sm:$0xff] %vm287_vm4, %v1043_v61  ;;  %v1050_v35 = vadd.f32 %v983_v17, %v787_v57  ;;  %v4307_v47 = vpop.f32.mrb[38].mxu1  ;;  %v1677_v10 = vld [vmem:[%s6571_s16 + $0x10] sm:$0xff]  ;;  %v1675_v8 = vld [vmem:[%s6571_s16] sm:$0xff]  ;;  %v4325_v39 = vpop.f32.mrb[22].mxu0 }
 0x22c   : > { %1081 = vst.msk [vmem:[%s6571_s16 + $0x90] sm:$0xff] %vm287_vm4, %v1048_v3  ;;  %1079 = vst.msk [vmem:[%s6571_s16 + $0x80] sm:$0xff] %vm287_vm4, %v1046_v52  ;;  %v1053_v23 = vadd.f32 %v4307_v47, %v790_v27  ;;  %v986_v1 = vpop.f32.mrb[39].mxu1  ;;  %v1939_v45 = vadd.f32 %v4320_v16, %v1677_v10  ;;  %v1937_v20 = vadd.f32 %v1810_v30, %v1675_v8  ;;  %v1678_v4 = vld [vmem:[%s6571_s16 + $0x18] sm:$0xff]  ;;  %v1676_v34 = vld [vmem:[%s6571_s16 + $0x8] sm:$0xff]  ;;  %v1829_v63 = vpop.f32.mrb[23].mxu0 }
 0x22d   : > { %1082 = vst.msk [vmem:[%s6571_s16 + $0x98] sm:$0xff] %vm287_vm4, %v1049_v26  ;;  %1080 = vst.msk [vmem:[%s6571_s16 + $0x88] sm:$0xff] %vm287_vm4, %v1047_v60  ;;  %v1051_v7 = vadd.f32 %v986_v1, %v788_v28  ;;  %v1940_v25 = vadd.f32 %v4321_v12, %v1678_v4  ;;  %v1938_v18 = vadd.f32 %v1813_v40, %v1676_v34  ;;  %v4310_v62 = vpop.f32.mrb[40].mxu1  ;;  %v1681_v53 = vld [vmem:[%s6571_s16 + $0x30] sm:$0xff]  ;;  %v1679_v31 = vld [vmem:[%s6571_s16 + $0x20] sm:$0xff] }
 0x22e   : > { %1085 = vst.msk [vmem:[%s6571_s16 + $0xb0] sm:$0xff] %vm287_vm4, %v1052_v0  ;;  %1083 = vst.msk [vmem:[%s6571_s16 + $0xa0] sm:$0xff] %vm287_vm4, %v1050_v35  ;;  %v1056_v14 = vadd.f32 %v4310_v62, %v793_v22  ;;  %v999_v55 = vpop.f32.mrb[41].mxu1  ;;  %v1943_v6 = vadd.f32 %v4324_v46, %v1681_v53  ;;  %v1941_v13 = vadd.f32 %v1826_v2, %v1679_v31  ;;  %v1682_v41 = vld [vmem:[%s6571_s16 + $0x38] sm:$0xff]  ;;  %v1680_v56 = vld [vmem:[%s6571_s16 + $0x28] sm:$0xff] }
 0x22f   : > { %1086 = vst.msk [vmem:[%s6571_s16 + $0xb8] sm:$0xff] %vm287_vm4, %v1053_v23  ;;  %1084 = vst.msk [vmem:[%s6571_s16 + $0xa8] sm:$0xff] %vm287_vm4, %v1051_v7  ;;  %v1054_v51 = vadd.f32 %v999_v55, %v791_v9  ;;  %v4311_v5 = vpop.f32.mrb[42].mxu1  ;;  %v1944_v38 = vadd.f32 %v4325_v39, %v1682_v41  ;;  %v1942_v21 = vadd.f32 %v1829_v63, %v1680_v56  ;;  %v798_v61 = vld [vmem:[%s6571_s16 + $0xf8] sm:$0xff]  ;;  %v1685_v52 = vld [vmem:[%s6571_s16 + $0x50] sm:$0xff] }
 0x230   : > { %1971 = vst.msk [vmem:[%s6571_s16 + $0x10] sm:$0xff] %vm287_vm4, %v1939_v45  ;;  %1969 = vst.msk [vmem:[%s6571_s16] sm:$0xff] %vm287_vm4, %v1937_v20  ;;  %v1057_v50 = vadd.f32 %v4311_v5, %v794_v48  ;;  %v1002_v19 = vpop.f32.mrb[43].mxu1  ;;  %v4328_v36 = vpop.f32.mrb[24].mxu0  ;;  %v1683_v60 = vld [vmem:[%s6571_s16 + $0x40] sm:$0xff]  ;;  %v1686_v15 = vld [vmem:[%s6571_s16 + $0x58] sm:$0xff] }
 0x231   : > { %1972 = vst.msk [vmem:[%s6571_s16 + $0x18] sm:$0xff] %vm287_vm4, %v1940_v25  ;;  %1970 = vst.msk [vmem:[%s6571_s16 + $0x8] sm:$0xff] %vm287_vm4, %v1938_v18  ;;  %v1055_v42 = vadd.f32 %v1002_v19, %v792_v54  ;;  %v4314_v32 = vpop.f32.mrb[44].mxu1  ;;  %v1947_v49 = vadd.f32 %v4328_v36, %v1685_v52  ;;  %v1842_v44 = vpop.f32.mrb[25].mxu0  ;;  %v1684_v17 = vld [vmem:[%s6571_s16 + $0x48] sm:$0xff]  ;;  %v1689_v47 = vld [vmem:[%s6571_s16 + $0x70] sm:$0xff] }
 0x232   : > { %1089 = vst.msk [vmem:[%s6571_s16 + $0xd0] sm:$0xff] %vm287_vm4, %v1056_v14  ;;  %1087 = vst.msk [vmem:[%s6571_s16 + $0xc0] sm:$0xff] %vm287_vm4, %v1054_v51  ;;  %v1060_v43 = vadd.f32 %v4314_v32, %v797_v59  ;;  %v1015_v33 = vpop.f32.mrb[45].mxu1  ;;  %v1945_v57 = vadd.f32 %v1842_v44, %v1683_v60  ;;  %v4329_v27 = vpop.f32.mrb[26].mxu0  ;;  %v1687_v10 = vld [vmem:[%s6571_s16 + $0x60] sm:$0xff]  ;;  %v1690_v45 = vld [vmem:[%s6571_s16 + $0x78] sm:$0xff] }
 0x233   : > { %1090 = vst.msk [vmem:[%s6571_s16 + $0xd8] sm:$0xff] %vm287_vm4, %v1057_v50  ;;  %1088 = vst.msk [vmem:[%s6571_s16 + $0xc8] sm:$0xff] %vm287_vm4, %v1055_v42  ;;  %v1058_v58 = vadd.f32 %v1015_v33, %v795_v24  ;;  %v4315_v3 = vpop.f32.mrb[46].mxu1  ;;  %v1948_v0 = vadd.f32 %v4329_v27, %v1686_v15  ;;  %v1845_v28 = vpop.f32.mrb[27].mxu0  ;;  %v1688_v20 = vld [vmem:[%s6571_s16 + $0x68] sm:$0xff]  ;;  %v1693_v22 = vld [vmem:[%s6571_s16 + $0x90] sm:$0xff] }
 0x234   : > { %1975 = vst.msk [vmem:[%s6571_s16 + $0x30] sm:$0xff] %vm287_vm4, %v1943_v6  ;;  %1973 = vst.msk [vmem:[%s6571_s16 + $0x20] sm:$0xff] %vm287_vm4, %v1941_v13  ;;  %v1061_v29 = vadd.f32 %v4315_v3, %v798_v61  ;;  %v1018_v37 = vpop.f32.mrb[47].mxu1  ;;  %v1946_v35 = vadd.f32 %v1845_v28, %v1684_v17  ;;  %v1691_v40 = vld [vmem:[%s6571_s16 + $0x80] sm:$0xff]  ;;  %v1694_v62 = vld [vmem:[%s6571_s16 + $0x98] sm:$0xff] }
 0x235   : > { %1976 = vst.msk [vmem:[%s6571_s16 + $0x38] sm:$0xff] %vm287_vm4, %v1944_v38  ;;  %1974 = vst.msk [vmem:[%s6571_s16 + $0x28] sm:$0xff] %vm287_vm4, %v1942_v21  ;;  %v1059_v26 = vadd.f32 %v1018_v37, %v796_v11  ;;  %v1692_v55 = vld [vmem:[%s6571_s16 + $0x88] sm:$0xff]  ;;  %v1697_v5 = vld [vmem:[%s6571_s16 + $0xb0] sm:$0xff] }
 0x236   : > { %1093 = vst.msk [vmem:[%s6571_s16 + $0xf0] sm:$0xff] %vm287_vm4, %v1060_v43  ;;  %1091 = vst.msk [vmem:[%s6571_s16 + $0xe0] sm:$0xff] %vm287_vm4, %v1058_v58  ;;  %v1695_v53 = vld [vmem:[%s6571_s16 + $0xa0] sm:$0xff]  ;;  %v1698_v6 = vld [vmem:[%s6571_s16 + $0xb8] sm:$0xff] }
 0x237   : > { %1094 = vst.msk [vmem:[%s6571_s16 + $0xf8] sm:$0xff] %vm287_vm4, %v1061_v29  ;;  %1092 = vst.msk [vmem:[%s6571_s16 + $0xe8] sm:$0xff] %vm287_vm4, %v1059_v26  ;;  %v1696_v13 = vld [vmem:[%s6571_s16 + $0xa8] sm:$0xff]  ;;  %v2579_v39 = vld [vmem:[%s6571_s16 + $0x10] sm:$0xff] }
 0x238   : > { %1979 = vst.msk [vmem:[%s6571_s16 + $0x50] sm:$0xff] %vm287_vm4, %v1947_v49  ;;  %1977 = vst.msk [vmem:[%s6571_s16 + $0x40] sm:$0xff] %vm287_vm4, %v1945_v57  ;;  %v4332_v23 = vpop.f32.mrb[28].mxu0  ;;  %v2577_v63 = vld [vmem:[%s6571_s16] sm:$0xff]  ;;  %v2580_v32 = vld [vmem:[%s6571_s16 + $0x18] sm:$0xff] }
 0x239   : > { %1980 = vst.msk [vmem:[%s6571_s16 + $0x58] sm:$0xff] %vm287_vm4, %v1948_v0  ;;  %1978 = vst.msk [vmem:[%s6571_s16 + $0x48] sm:$0xff] %vm287_vm4, %v1946_v35  ;;  %v1951_v1 = vadd.f32 %v4332_v23, %v1689_v47  ;;  %v1858_v16 = vpop.f32.mrb[29].mxu0  ;;  %v2578_v33 = vld [vmem:[%s6571_s16 + $0x8] sm:$0xff]  ;;  %v1701_v0 = vld [vmem:[%s6571_s16 + $0xd0] sm:$0xff] }
 0x23a   : > { %v1949_v7 = vadd.f32 %v1858_v16, %v1687_v10  ;;  %v4333_v8 = vpop.f32.mrb[30].mxu0  ;;  %v1699_v35 = vld [vmem:[%s6571_s16 + $0xc0] sm:$0xff] }
 0x23b   : > { %1983 = vst.msk [vmem:[%s6571_s16 + $0x70] sm:$0xff] %vm287_vm4, %v1951_v1  ;;  %v1952_v30 = vadd.f32 %v4333_v8, %v1690_v45  ;;  %v1861_v4 = vpop.f32.mrb[31].mxu0  ;;  %v2583_v3 = vld [vmem:[%s6571_s16 + $0x30] sm:$0xff]  ;;  %v2581_v52 = vld [vmem:[%s6571_s16 + $0x20] sm:$0xff]  ;;  %v1702_v1 = vld [vmem:[%s6571_s16 + $0xd8] sm:$0xff] }
 0x23c   : > { %1981 = vst.msk [vmem:[%s6571_s16 + $0x60] sm:$0xff] %vm287_vm4, %v1949_v7  ;;  %v1950_v12 = vadd.f32 %v1861_v4, %v1688_v20  ;;  %v2584_v49 = vld [vmem:[%s6571_s16 + $0x38] sm:$0xff]  ;;  %v2582_v57 = vld [vmem:[%s6571_s16 + $0x28] sm:$0xff] }
 0x23d   : > { %1984 = vst.msk [vmem:[%s6571_s16 + $0x78] sm:$0xff] %vm287_vm4, %v1952_v30  ;;  %v1700_v7 = vld [vmem:[%s6571_s16 + $0xc8] sm:$0xff] }
 0x23e   : > { %1982 = vst.msk [vmem:[%s6571_s16 + $0x68] sm:$0xff] %vm287_vm4, %v1950_v12 }
 0x23f   : > { %v2587_v30 = vld [vmem:[%s6571_s16 + $0x50] sm:$0xff]  ;;  %v2585_v12 = vld [vmem:[%s6571_s16 + $0x40] sm:$0xff] }
 0x247   : > { %v4336_v25 = vpop.f32.mrb[32].mxu0 }
 0x248   : > { %v1955_v34 = vadd.f32 %v4336_v25, %v1693_v22  ;;  %v1874_v9 = vpop.f32.mrb[33].mxu0 }
 0x249   : > { %v1953_v18 = vadd.f32 %v1874_v9, %v1691_v40  ;;  %v4337_v48 = vpop.f32.mrb[34].mxu0 }
 0x24a   : > { %1987 = vst.msk [vmem:[%s6571_s16 + $0x90] sm:$0xff] %vm287_vm4, %v1955_v34  ;;  %v1956_v14 = vadd.f32 %v4337_v48, %v1694_v62  ;;  %v1877_v54 = vpop.f32.mrb[35].mxu0  ;;  %v2588_v34 = vld [vmem:[%s6571_s16 + $0x58] sm:$0xff] }
 0x24b   : > { %1985 = vst.msk [vmem:[%s6571_s16 + $0x80] sm:$0xff] %vm287_vm4, %v1953_v18  ;;  %v1954_v51 = vadd.f32 %v1877_v54, %v1692_v55  ;;  %v2586_v18 = vld [vmem:[%s6571_s16 + $0x48] sm:$0xff] }
 0x24c   : > { %1988 = vst.msk [vmem:[%s6571_s16 + $0x98] sm:$0xff] %vm287_vm4, %v1956_v14  ;;  %v1705_v14 = vld [vmem:[%s6571_s16 + $0xf0] sm:$0xff] }
 0x24d   : > { %1986 = vst.msk [vmem:[%s6571_s16 + $0x88] sm:$0xff] %vm287_vm4, %v1954_v51  ;;  %v1703_v51 = vld [vmem:[%s6571_s16 + $0xe0] sm:$0xff] }
 0x259   : > { %v4340_v50 = vpop.f32.mrb[36].mxu0 }
 0x25a   : > { %v1959_v19 = vadd.f32 %v4340_v50, %v1697_v5  ;;  %v1890_v46 = vpop.f32.mrb[37].mxu0 }
 0x25b   : > { %v1957_v42 = vadd.f32 %v1890_v46, %v1695_v53  ;;  %v4341_v31 = vpop.f32.mrb[38].mxu0 }
 0x25c   : > { %1991 = vst.msk [vmem:[%s6571_s16 + $0xb0] sm:$0xff] %vm287_vm4, %v1959_v19  ;;  %v1960_v2 = vadd.f32 %v4341_v31, %v1698_v6  ;;  %v1893_v41 = vpop.f32.mrb[39].mxu0  ;;  %v1706_v19 = vld [vmem:[%s6571_s16 + $0xf8] sm:$0xff] }
 0x25d   : > { %1989 = vst.msk [vmem:[%s6571_s16 + $0xa0] sm:$0xff] %vm287_vm4, %v1957_v42  ;;  %v1958_v38 = vadd.f32 %v1893_v41, %v1696_v13  ;;  %v1704_v42 = vld [vmem:[%s6571_s16 + $0xe8] sm:$0xff] }
 0x25e   : > { %1992 = vst.msk [vmem:[%s6571_s16 + $0xb8] sm:$0xff] %vm287_vm4, %v1960_v2  ;;  %v2591_v2 = vld [vmem:[%s6571_s16 + $0x70] sm:$0xff] }
 0x25f   : > { %1990 = vst.msk [vmem:[%s6571_s16 + $0xa8] sm:$0xff] %vm287_vm4, %v1958_v38 }
 0x260   : > { %v4354_v59 = vpop.f32.mrb[48].mxu1 }
 0x261   : > { %v2841_v56 = vadd.f32 %v4354_v59, %v2579_v39  ;;  %v2712_v24 = vpop.f32.mrb[49].mxu1  ;;  %v2589_v39 = vld [vmem:[%s6571_s16 + $0x60] sm:$0xff] }
 0x262   : > { %v2839_v21 = vadd.f32 %v2712_v24, %v2577_v63  ;;  %v4355_v61 = vpop.f32.mrb[50].mxu1 }
 0x263   : > { %2873 = vst.msk [vmem:[%s6571_s16 + $0x10] sm:$0xff] %vm287_vm4, %v2841_v56  ;;  %v2842_v43 = vadd.f32 %v4355_v61, %v2580_v32  ;;  %v2715_v11 = vpop.f32.mrb[51].mxu1  ;;  %v2592_v56 = vld [vmem:[%s6571_s16 + $0x78] sm:$0xff] }
 0x264   : > { %2871 = vst.msk [vmem:[%s6571_s16] sm:$0xff] %vm287_vm4, %v2839_v21  ;;  %v2840_v58 = vadd.f32 %v2715_v11, %v2578_v33  ;;  %v2590_v21 = vld [vmem:[%s6571_s16 + $0x68] sm:$0xff] }
 0x265   : > { %2874 = vst.msk [vmem:[%s6571_s16 + $0x18] sm:$0xff] %vm287_vm4, %v2842_v43  ;;  %v2595_v43 = vld [vmem:[%s6571_s16 + $0x90] sm:$0xff] }
 0x266   : > { %2872 = vst.msk [vmem:[%s6571_s16 + $0x8] sm:$0xff] %vm287_vm4, %v2840_v58  ;;  %v2593_v58 = vld [vmem:[%s6571_s16 + $0x80] sm:$0xff] }
 0x26c   : > { %v4358_v29 = vpop.f32.mrb[52].mxu1 }
 0x26d   : > { %v2845_v37 = vadd.f32 %v4358_v29, %v2583_v3  ;;  %v2728_v36 = vpop.f32.mrb[53].mxu1 }
 0x26e   : > { %v2843_v26 = vadd.f32 %v2728_v36, %v2581_v52  ;;  %v4359_v60 = vpop.f32.mrb[54].mxu1 }
 0x26f   : > { %2877 = vst.msk [vmem:[%s6571_s16 + $0x30] sm:$0xff] %vm287_vm4, %v2845_v37  ;;  %v2846_v44 = vadd.f32 %v4359_v60, %v2584_v49  ;;  %v2731_v15 = vpop.f32.mrb[55].mxu1  ;;  %v2596_v37 = vld [vmem:[%s6571_s16 + $0x98] sm:$0xff] }
 0x270   : > { %2875 = vst.msk [vmem:[%s6571_s16 + $0x20] sm:$0xff] %vm287_vm4, %v2843_v26  ;;  %v2844_v27 = vadd.f32 %v2731_v15, %v2582_v57  ;;  %v2594_v26 = vld [vmem:[%s6571_s16 + $0x88] sm:$0xff] }
 0x271   : > { %2878 = vst.msk [vmem:[%s6571_s16 + $0x38] sm:$0xff] %vm287_vm4, %v2846_v44  ;;  %v2599_v44 = vld [vmem:[%s6571_s16 + $0xb0] sm:$0xff] }
 0x272   : > { %2876 = vst.msk [vmem:[%s6571_s16 + $0x28] sm:$0xff] %vm287_vm4, %v2844_v27  ;;  %v2597_v27 = vld [vmem:[%s6571_s16 + $0xa0] sm:$0xff] }
 0x27f   : > { %v4344_v17 = vpop.f32.mrb[40].mxu0 }
 0x280   : > { %v1963_v28 = vadd.f32 %v4344_v17, %v1701_v0  ;;  %v1906_v47 = vpop.f32.mrb[41].mxu0 }
 0x281   : > { %v1961_v23 = vadd.f32 %v1906_v47, %v1699_v35  ;;  %v4345_v10 = vpop.f32.mrb[42].mxu0  ;;  %v3481_v47 = vld [vmem:[%s6571_s16 + $0x10] sm:$0xff] }
 0x282   : > { %1995 = vst.msk [vmem:[%s6571_s16 + $0xd0] sm:$0xff] %vm287_vm4, %v1963_v28  ;;  %v1964_v16 = vadd.f32 %v4345_v10, %v1702_v1  ;;  %v1909_v45 = vpop.f32.mrb[43].mxu0  ;;  %v2600_v28 = vld [vmem:[%s6571_s16 + $0xb8] sm:$0xff]  ;;  %v2598_v10 = vld [vmem:[%s6571_s16 + $0xa8] sm:$0xff] }
 0x283   : > { %1993 = vst.msk [vmem:[%s6571_s16 + $0xc0] sm:$0xff] %vm287_vm4, %v1961_v23  ;;  %v1962_v8 = vadd.f32 %v1909_v45, %v1700_v7  ;;  %v3479_v45 = vld [vmem:[%s6571_s16] sm:$0xff] }
 0x284   : > { %1996 = vst.msk [vmem:[%s6571_s16 + $0xd8] sm:$0xff] %vm287_vm4, %v1964_v16  ;;  %v4362_v20 = vpop.f32.mrb[56].mxu1 }
 0x285   : > { %1994 = vst.msk [vmem:[%s6571_s16 + $0xc8] sm:$0xff] %vm287_vm4, %v1962_v8  ;;  %v2849_v4 = vadd.f32 %v4362_v20, %v2587_v30  ;;  %v2744_v22 = vpop.f32.mrb[57].mxu1 }
 0x286   : > { %v2847_v25 = vadd.f32 %v2744_v22, %v2585_v12  ;;  %v4363_v40 = vpop.f32.mrb[58].mxu1 }
 0x287   : > { %2881 = vst.msk [vmem:[%s6571_s16 + $0x50] sm:$0xff] %vm287_vm4, %v2849_v4  ;;  %v2850_v9 = vadd.f32 %v4363_v40, %v2588_v34  ;;  %v2747_v62 = vpop.f32.mrb[59].mxu1  ;;  %v3482_v4 = vld [vmem:[%s6571_s16 + $0x18] sm:$0xff] }
 0x288   : > { %2879 = vst.msk [vmem:[%s6571_s16 + $0x40] sm:$0xff] %vm287_vm4, %v2847_v25  ;;  %v2848_v48 = vadd.f32 %v2747_v62, %v2586_v18  ;;  %v3480_v25 = vld [vmem:[%s6571_s16 + $0x8] sm:$0xff]  ;;  %v3485_v18 = vld [vmem:[%s6571_s16 + $0x30] sm:$0xff] }
 0x289   : > { %2882 = vst.msk [vmem:[%s6571_s16 + $0x58] sm:$0xff] %vm287_vm4, %v2850_v9  ;;  %v6983_v9 = vld [vmem:[%s7234_s4] ss:$0 sm:$0xff] }
 0x28a   : > { %2880 = vst.msk [vmem:[%s6571_s16 + $0x48] sm:$0xff] %vm287_vm4, %v2848_v48 }
 0x28c   : > { %v4348_v55 = vpop.f32.mrb[44].mxu0 }
 0x28d   : > { %v1967_v54 = vadd.f32 %v4348_v55, %v1705_v14  ;;  %v1922_v5 = vpop.f32.mrb[45].mxu0  ;;  %v3483_v14 = vld [vmem:[%s6571_s16 + $0x20] sm:$0xff] }
 0x28e   : > { %v1965_v50 = vadd.f32 %v1922_v5, %v1703_v51  ;;  %v4349_v53 = vpop.f32.mrb[46].mxu0  ;;  %v3486_v5 = vld [vmem:[%s6571_s16 + $0x38] sm:$0xff] }
 0x28f   : > { %1999 = vst.msk [vmem:[%s6571_s16 + $0xf0] sm:$0xff] %vm287_vm4, %v1967_v54  ;;  %v1968_v46 = vadd.f32 %v4349_v53, %v1706_v19  ;;  %v1925_v6 = vpop.f32.mrb[47].mxu0 }
 0x290   : > { %1997 = vst.msk [vmem:[%s6571_s16 + $0xe0] sm:$0xff] %vm287_vm4, %v1965_v50  ;;  %v1966_v31 = vadd.f32 %v1925_v6, %v1704_v42  ;;  %v3484_v42 = vld [vmem:[%s6571_s16 + $0x28] sm:$0xff] }
 0x291   : > { %2000 = vst.msk [vmem:[%s6571_s16 + $0xf8] sm:$0xff] %vm287_vm4, %v1968_v46 }
 0x292   : > { %1998 = vst.msk [vmem:[%s6571_s16 + $0xe8] sm:$0xff] %vm287_vm4, %v1966_v31 }
 0x293   : > { %v4366_v13 = vpop.f32.mrb[60].mxu1 }
 0x294   : > { %v2853_v41 = vadd.f32 %v4366_v13, %v2591_v2  ;;  %v2760_v59 = vpop.f32.mrb[61].mxu1 }
 0x295   : > { %v2851_v38 = vadd.f32 %v2760_v59, %v2589_v39  ;;  %v4367_v63 = vpop.f32.mrb[62].mxu1 }
 0x296   : > { %2885 = vst.msk [vmem:[%s6571_s16 + $0x70] sm:$0xff] %vm287_vm4, %v2853_v41  ;;  %v2854_v24 = vadd.f32 %v4367_v63, %v2592_v56  ;;  %v2763_v32 = vpop.f32.mrb[63].mxu1 }
 0x297   : > { %2883 = vst.msk [vmem:[%s6571_s16 + $0x60] sm:$0xff] %vm287_vm4, %v2851_v38  ;;  %v2852_v61 = vadd.f32 %v2763_v32, %v2590_v21  ;;  %v2603_v21 = vld [vmem:[%s6571_s16 + $0xd0] sm:$0xff] }
 0x298   : > { %2886 = vst.msk [vmem:[%s6571_s16 + $0x78] sm:$0xff] %vm287_vm4, %v2854_v24 }
 0x299   : > { %2884 = vst.msk [vmem:[%s6571_s16 + $0x68] sm:$0xff] %vm287_vm4, %v2852_v61 }
 0x2a2   : > { %v4370_v33 = vpop.f32.mrb[64].mxu1 }
 0x2a3   : > { %v2857_v11 = vadd.f32 %v4370_v33, %v2595_v43  ;;  %v2776_v3 = vpop.f32.mrb[65].mxu1  ;;  %v2601_v43 = vld [vmem:[%s6571_s16 + $0xc0] sm:$0xff] }
 0x2a4   : > { %v2855_v29 = vadd.f32 %v2776_v3, %v2593_v58  ;;  %v4371_v52 = vpop.f32.mrb[66].mxu1  ;;  %v2604_v3 = vld [vmem:[%s6571_s16 + $0xd8] sm:$0xff] }
 0x2a5   : > { %2889 = vst.msk [vmem:[%s6571_s16 + $0x90] sm:$0xff] %vm287_vm4, %v2857_v11  ;;  %v2858_v36 = vadd.f32 %v4371_v52, %v2596_v37  ;;  %v2779_v49 = vpop.f32.mrb[67].mxu1 }
 0x2a6   : > { %2887 = vst.msk [vmem:[%s6571_s16 + $0x80] sm:$0xff] %vm287_vm4, %v2855_v29  ;;  %v2856_v60 = vadd.f32 %v2779_v49, %v2594_v26  ;;  %v2602_v26 = vld [vmem:[%s6571_s16 + $0xc8] sm:$0xff] }
 0x2a7   : > { %2890 = vst.msk [vmem:[%s6571_s16 + $0x98] sm:$0xff] %vm287_vm4, %v2858_v36 }
 0x2a8   : > { %2888 = vst.msk [vmem:[%s6571_s16 + $0x88] sm:$0xff] %vm287_vm4, %v2856_v60 }
 0x2b8   : > { %v4374_v57 = vpop.f32.mrb[68].mxu1 }
 0x2b9   : > { %v2861_v15 = vadd.f32 %v4374_v57, %v2599_v44  ;;  %v2792_v0 = vpop.f32.mrb[69].mxu1 }
 0x2ba   : > { %v2859_v17 = vadd.f32 %v2792_v0, %v2597_v27  ;;  %v4375_v35 = vpop.f32.mrb[70].mxu1  ;;  %v4388_v23 = vpop.f32.mrb[48].mxu0 }
 0x2bb   : > { %2893 = vst.msk [vmem:[%s6571_s16 + $0xb0] sm:$0xff] %vm287_vm4, %v2861_v15  ;;  %v2862_v1 = vadd.f32 %v4375_v35, %v2600_v28  ;;  %v2795_v16 = vpop.f32.mrb[71].mxu1  ;;  %v3743_v7 = vadd.f32 %v4388_v23, %v3481_v47  ;;  %v3614_v8 = vpop.f32.mrb[49].mxu0 }
 0x2bc   : > { %2891 = vst.msk [vmem:[%s6571_s16 + $0xa0] sm:$0xff] %vm287_vm4, %v2859_v17  ;;  %v2860_v30 = vadd.f32 %v2795_v16, %v2598_v10  ;;  %v3741_v20 = vadd.f32 %v3614_v8, %v3479_v45  ;;  %v4389_v12 = vpop.f32.mrb[50].mxu0  ;;  %v3489_v17 = vld [vmem:[%s6571_s16 + $0x50] sm:$0xff]  ;;  %v3490_v45 = vld [vmem:[%s6571_s16 + $0x58] sm:$0xff] }
 0x2bd   : > { %2894 = vst.msk [vmem:[%s6571_s16 + $0xb8] sm:$0xff] %vm287_vm4, %v2862_v1  ;;  %3775 = vst.msk [vmem:[%s6571_s16 + $0x10] sm:$0xff] %vm287_vm4, %v3743_v7  ;;  %v3744_v22 = vadd.f32 %v4389_v12, %v3482_v4  ;;  %v3617_v34 = vpop.f32.mrb[51].mxu0  ;;  %v3487_v1 = vld [vmem:[%s6571_s16 + $0x40] sm:$0xff]  ;;  %v3488_v4 = vld [vmem:[%s6571_s16 + $0x48] sm:$0xff] }
 0x2be   : > { %2892 = vst.msk [vmem:[%s6571_s16 + $0xa8] sm:$0xff] %vm287_vm4, %v2860_v30  ;;  %3773 = vst.msk [vmem:[%s6571_s16] sm:$0xff] %vm287_vm4, %v3741_v20  ;;  %v3742_v40 = vadd.f32 %v3617_v34, %v3480_v25  ;;  %v2607_v25 = vld [vmem:[%s6571_s16 + $0xf0] sm:$0xff] }
 0x2bf   : > { %3776 = vst.msk [vmem:[%s6571_s16 + $0x18] sm:$0xff] %vm287_vm4, %v3744_v22 }
 0x2c0   : > { %3774 = vst.msk [vmem:[%s6571_s16 + $0x8] sm:$0xff] %vm287_vm4, %v3742_v40 }
 0x2c3   : > { %v4392_v62 = vpop.f32.mrb[52].mxu0 }
 0x2c4   : > { %v3747_v48 = vadd.f32 %v4392_v62, %v3485_v18  ;;  %v3630_v55 = vpop.f32.mrb[53].mxu0  ;;  %v3810_v54 = vld [vmem:[%s6571_s16 + $0x10] sm:$0xff]  ;;  %v2605_v18 = vld [vmem:[%s6571_s16 + $0xe0] sm:$0xff] }
 0x2c5   : > { %v3745_v51 = vadd.f32 %v3630_v55, %v3483_v14  ;;  %v4393_v50 = vpop.f32.mrb[54].mxu0  ;;  %v3849_v19 = vadd.f32 %v6983_v9, %v3810_v54  ;;  %v3808_v53 = vld [vmem:[%s6571_s16] sm:$0xff]  ;;  %v2608_v54 = vld [vmem:[%s6571_s16 + $0xf8] sm:$0xff] }
 0x2c6   : > { %3779 = vst.msk [vmem:[%s6571_s16 + $0x30] sm:$0xff] %vm287_vm4, %v3747_v48  ;;  %v3748_v46 = vadd.f32 %v4393_v50, %v3486_v5  ;;  %v3633_v6 = vpop.f32.mrb[55].mxu0  ;;  %v3847_v31 = vadd.f32 %v6983_v9, %v3808_v53  ;;  %v3811_v2 = vld [vmem:[%s6571_s16 + $0x18] sm:$0xff]  ;;  %v3493_v48 = vld [vmem:[%s6571_s16 + $0x70] sm:$0xff]  ;;  %v3491_v50 = vld [vmem:[%s6571_s16 + $0x60] sm:$0xff] }
 0x2c7   : > { %3777 = vst.msk [vmem:[%s6571_s16 + $0x20] sm:$0xff] %vm287_vm4, %v3745_v51  ;;  %v3746_v13 = vadd.f32 %v3633_v6, %v3484_v42  ;;  %v3881_v41 = vmax.f32 %v3849_v19, 0.0  ;;  %v3850_v39 = vadd.f32 %v6983_v9, %v3811_v2  ;;  %v3809_v59 = vld [vmem:[%s6571_s16 + $0x8] sm:$0xff]  ;;  %v3494_v2 = vld [vmem:[%s6571_s16 + $0x78] sm:$0xff] }
 0x2c8   : > { %3780 = vst.msk [vmem:[%s6571_s16 + $0x38] sm:$0xff] %vm287_vm4, %v3748_v46  ;;  %v3879_v38 = vmax.f32 %v3847_v31, 0.0  ;;  %v3848_v56 = vadd.f32 %v6983_v9, %v3809_v59  ;;  %v2606_v42 = vld [vmem:[%s6571_s16 + $0xe8] sm:$0xff] }
 0x2c9   : > { %3778 = vst.msk [vmem:[%s6571_s16 + $0x28] sm:$0xff] %vm287_vm4, %v3746_v13  ;;  %3913 = vst.msk [vmem:[%s6571_s16 + $0x10] sm:$0xff] %vm287_vm4, %v3881_v41  ;;  %v3882_v63 = vmax.f32 %v3850_v39, 0.0 }
 0x2ca   : > { %3911 = vst.msk [vmem:[%s6571_s16] sm:$0xff] %vm287_vm4, %v3879_v38  ;;  %v3880_v24 = vmax.f32 %v3848_v56, 0.0  ;;  %v3492_v56 = vld [vmem:[%s6571_s16 + $0x68] sm:$0xff] }
 0x2cb   : > { %v4378_v32 = vpop.f32.mrb[72].mxu1  ;;  %3914 = vst.msk [vmem:[%s6571_s16 + $0x18] sm:$0xff] %vm287_vm4, %v3882_v63 }
 0x2cc   : > { %v2865_v61 = vadd.f32 %v4378_v32, %v2603_v21  ;;  %v2808_v33 = vpop.f32.mrb[73].mxu1  ;;  %3912 = vst.msk [vmem:[%s6571_s16 + $0x8] sm:$0xff] %vm287_vm4, %v3880_v24 }
 0x2cd   : > { %v3814_v11 = vld [vmem:[%s6571_s16 + $0x30] sm:$0xff]  ;;  %v2863_v58 = vadd.f32 %v2808_v33, %v2601_v43  ;;  %v4379_v29 = vpop.f32.mrb[74].mxu1 }
 0x2ce   : > { %v3853_v37 = vadd.f32 %v6983_v9, %v3814_v11  ;;  %v3812_v52 = vld [vmem:[%s6571_s16 + $0x20] sm:$0xff]  ;;  %2897 = vst.msk [vmem:[%s6571_s16 + $0xd0] sm:$0xff] %vm287_vm4, %v2865_v61  ;;  %v2866_v36 = vadd.f32 %v4379_v29, %v2604_v3  ;;  %v2811_v49 = vpop.f32.mrb[75].mxu1 }
 0x2cf   : > { %v3851_v60 = vadd.f32 %v6983_v9, %v3812_v52  ;;  %v3815_v44 = vld [vmem:[%s6571_s16 + $0x38] sm:$0xff]  ;;  %2895 = vst.msk [vmem:[%s6571_s16 + $0xc0] sm:$0xff] %vm287_vm4, %v2863_v58  ;;  %v2864_v57 = vadd.f32 %v2811_v49, %v2602_v26  ;;  %v3497_v52 = vld [vmem:[%s6571_s16 + $0x90] sm:$0xff] }
 0x2d0   : > { %v3885_v15 = vmax.f32 %v3853_v37, 0.0  ;;  %v3854_v27 = vadd.f32 %v6983_v9, %v3815_v44  ;;  %v3813_v0 = vld [vmem:[%s6571_s16 + $0x28] sm:$0xff]  ;;  %2898 = vst.msk [vmem:[%s6571_s16 + $0xd8] sm:$0xff] %vm287_vm4, %v2866_v36  ;;  %v4396_v28 = vpop.f32.mrb[56].mxu0  ;;  %v3495_v44 = vld [vmem:[%s6571_s16 + $0x80] sm:$0xff] }
 0x2d1   : > { %v3883_v35 = vmax.f32 %v3851_v60, 0.0  ;;  %v3852_v47 = vadd.f32 %v6983_v9, %v3813_v0  ;;  %v3751_v23 = vadd.f32 %v4396_v28, %v3489_v17  ;;  %2896 = vst.msk [vmem:[%s6571_s16 + $0xc8] sm:$0xff] %vm287_vm4, %v2864_v57  ;;  %v3646_v10 = vpop.f32.mrb[57].mxu0  ;;  %v3498_v17 = vld [vmem:[%s6571_s16 + $0x98] sm:$0xff] }
 0x2d2   : > { %3917 = vst.msk [vmem:[%s6571_s16 + $0x30] sm:$0xff] %vm287_vm4, %v3885_v15  ;;  %v3886_v16 = vmax.f32 %v3854_v27, 0.0  ;;  %v3749_v7 = vadd.f32 %v3646_v10, %v3487_v1  ;;  %v4397_v8 = vpop.f32.mrb[58].mxu0  ;;  %v3496_v10 = vld [vmem:[%s6571_s16 + $0x88] sm:$0xff] }
 0x2d3   : > { %3915 = vst.msk [vmem:[%s6571_s16 + $0x20] sm:$0xff] %vm287_vm4, %v3883_v35  ;;  %v3884_v30 = vmax.f32 %v3852_v47, 0.0  ;;  %3783 = vst.msk [vmem:[%s6571_s16 + $0x50] sm:$0xff] %vm287_vm4, %v3751_v23  ;;  %v3752_v20 = vadd.f32 %v4397_v8, %v3490_v45  ;;  %v3649_v12 = vpop.f32.mrb[59].mxu0 }
 0x2d4   : > { %3918 = vst.msk [vmem:[%s6571_s16 + $0x38] sm:$0xff] %vm287_vm4, %v3886_v16  ;;  %3781 = vst.msk [vmem:[%s6571_s16 + $0x40] sm:$0xff] %vm287_vm4, %v3749_v7  ;;  %v3750_v22 = vadd.f32 %v3649_v12, %v3488_v4  ;;  %v3501_v4 = vld [vmem:[%s6571_s16 + $0xb0] sm:$0xff] }
 0x2d5   : > { %3916 = vst.msk [vmem:[%s6571_s16 + $0x28] sm:$0xff] %vm287_vm4, %v3884_v30  ;;  %3784 = vst.msk [vmem:[%s6571_s16 + $0x58] sm:$0xff] %vm287_vm4, %v3752_v20 }
 0x2d6   : > { %3782 = vst.msk [vmem:[%s6571_s16 + $0x48] sm:$0xff] %vm287_vm4, %v3750_v22 }
 0x2d8   : > { %v4382_v34 = vpop.f32.mrb[76].mxu1 }
 0x2d9   : > { %v2869_v40 = vadd.f32 %v4382_v34, %v2607_v25  ;;  %v2824_v62 = vpop.f32.mrb[77].mxu1  ;;  %v4400_v14 = vpop.f32.mrb[60].mxu0  ;;  %v3499_v25 = vld [vmem:[%s6571_s16 + $0xa0] sm:$0xff] }
 0x2da   : > { %v2867_v55 = vadd.f32 %v2824_v62, %v2605_v18  ;;  %v4383_v51 = vpop.f32.mrb[78].mxu1  ;;  %v3755_v5 = vadd.f32 %v4400_v14, %v3493_v48  ;;  %v3662_v19 = vpop.f32.mrb[61].mxu0  ;;  %v3818_v53 = vld [vmem:[%s6571_s16 + $0x50] sm:$0xff]  ;;  %v3502_v62 = vld [vmem:[%s6571_s16 + $0xb8] sm:$0xff] }
 0x2db   : > { %2901 = vst.msk [vmem:[%s6571_s16 + $0xf0] sm:$0xff] %vm287_vm4, %v2869_v40  ;;  %v2870_v46 = vadd.f32 %v4383_v51, %v2608_v54  ;;  %v2827_v6 = vpop.f32.mrb[79].mxu1  ;;  %v3753_v31 = vadd.f32 %v3662_v19, %v3491_v50  ;;  %v4401_v13 = vpop.f32.mrb[62].mxu0  ;;  %v3857_v41 = vadd.f32 %v6983_v9, %v3818_v53  ;;  %v3816_v39 = vld [vmem:[%s6571_s16 + $0x40] sm:$0xff]  ;;  %v3500_v51 = vld [vmem:[%s6571_s16 + $0xa8] sm:$0xff] }
 0x2dc   : > { %2899 = vst.msk [vmem:[%s6571_s16 + $0xe0] sm:$0xff] %vm287_vm4, %v2867_v55  ;;  %3787 = vst.msk [vmem:[%s6571_s16 + $0x70] sm:$0xff] %vm287_vm4, %v3755_v5  ;;  %v2868_v59 = vadd.f32 %v2827_v6, %v2606_v42  ;;  %v3756_v38 = vadd.f32 %v4401_v13, %v3494_v2  ;;  %v3665_v63 = vpop.f32.mrb[63].mxu0  ;;  %v3855_v24 = vadd.f32 %v6983_v9, %v3816_v39  ;;  %v3819_v21 = vld [vmem:[%s6571_s16 + $0x58] sm:$0xff]  ;;  %v3505_v39 = vld [vmem:[%s6571_s16 + $0xd0] sm:$0xff] }
 0x2dd   : > { %2902 = vst.msk [vmem:[%s6571_s16 + $0xf8] sm:$0xff] %vm287_vm4, %v2870_v46  ;;  %3785 = vst.msk [vmem:[%s6571_s16 + $0x60] sm:$0xff] %vm287_vm4, %v3753_v31  ;;  %v3754_v32 = vadd.f32 %v3665_v63, %v3492_v56  ;;  %v3889_v61 = vmax.f32 %v3857_v41, 0.0  ;;  %v3858_v43 = vadd.f32 %v6983_v9, %v3819_v21  ;;  %v3817_v33 = vld [vmem:[%s6571_s16 + $0x48] sm:$0xff]  ;;  %v3503_v56 = vld [vmem:[%s6571_s16 + $0xc0] sm:$0xff] }
 0x2de   : > { %2900 = vst.msk [vmem:[%s6571_s16 + $0xe8] sm:$0xff] %vm287_vm4, %v2868_v59  ;;  %3788 = vst.msk [vmem:[%s6571_s16 + $0x78] sm:$0xff] %vm287_vm4, %v3756_v38  ;;  %v3887_v11 = vmax.f32 %v3855_v24, 0.0  ;;  %v3856_v58 = vadd.f32 %v6983_v9, %v3817_v33 }
 0x2df   : > { %3786 = vst.msk [vmem:[%s6571_s16 + $0x68] sm:$0xff] %vm287_vm4, %v3754_v32  ;;  %3921 = vst.msk [vmem:[%s6571_s16 + $0x50] sm:$0xff] %vm287_vm4, %v3889_v61  ;;  %v3890_v3 = vmax.f32 %v3858_v43, 0.0  ;;  %v3506_v32 = vld [vmem:[%s6571_s16 + $0xd8] sm:$0xff] }
 0x2e0   : > { %3919 = vst.msk [vmem:[%s6571_s16 + $0x40] sm:$0xff] %vm287_vm4, %v3887_v11  ;;  %v3888_v29 = vmax.f32 %v3856_v58, 0.0  ;;  %v3504_v58 = vld [vmem:[%s6571_s16 + $0xc8] sm:$0xff] }
 0x2e1   : > { %3922 = vst.msk [vmem:[%s6571_s16 + $0x58] sm:$0xff] %vm287_vm4, %v3890_v3 }
 0x2e2   : > { %3920 = vst.msk [vmem:[%s6571_s16 + $0x48] sm:$0xff] %vm287_vm4, %v3888_v29 }
 0x2e3   : > { %v3822_v37 = vld [vmem:[%s6571_s16 + $0x70] sm:$0xff]  ;;  %v4404_v36 = vpop.f32.mrb[64].mxu0 }
 0x2e4   : > { %v3861_v26 = vadd.f32 %v6983_v9, %v3822_v37  ;;  %v3820_v49 = vld [vmem:[%s6571_s16 + $0x60] sm:$0xff]  ;;  %v3759_v60 = vadd.f32 %v4404_v36, %v3497_v52  ;;  %v3678_v57 = vpop.f32.mrb[65].mxu0 }
 0x2e5   : > { %v3859_v15 = vadd.f32 %v6983_v9, %v3820_v49  ;;  %v3823_v27 = vld [vmem:[%s6571_s16 + $0x78] sm:$0xff]  ;;  %v3757_v0 = vadd.f32 %v3678_v57, %v3495_v44  ;;  %v4405_v28 = vpop.f32.mrb[66].mxu0 }
 0x2e6   : > { %v3893_v35 = vmax.f32 %v3861_v26, 0.0  ;;  %v3862_v47 = vadd.f32 %v6983_v9, %v3823_v27  ;;  %v3821_v23 = vld [vmem:[%s6571_s16 + $0x68] sm:$0xff]  ;;  %3791 = vst.msk [vmem:[%s6571_s16 + $0x90] sm:$0xff] %vm287_vm4, %v3759_v60  ;;  %v3760_v1 = vadd.f32 %v4405_v28, %v3498_v17  ;;  %v3681_v16 = vpop.f32.mrb[67].mxu0  ;;  %v3509_v27 = vld [vmem:[%s6571_s16 + $0xf0] sm:$0xff]  ;;  %v3507_v28 = vld [vmem:[%s6571_s16 + $0xe0] sm:$0xff] }
 0x2e7   : > { %v3891_v7 = vmax.f32 %v3859_v15, 0.0  ;;  %v3860_v45 = vadd.f32 %v6983_v9, %v3821_v23  ;;  %3789 = vst.msk [vmem:[%s6571_s16 + $0x80] sm:$0xff] %vm287_vm4, %v3757_v0  ;;  %v3758_v8 = vadd.f32 %v3681_v16, %v3496_v10 }
 0x2e8   : > { %3925 = vst.msk [vmem:[%s6571_s16 + $0x70] sm:$0xff] %vm287_vm4, %v3893_v35  ;;  %v3894_v30 = vmax.f32 %v3862_v47, 0.0  ;;  %3792 = vst.msk [vmem:[%s6571_s16 + $0x98] sm:$0xff] %vm287_vm4, %v3760_v1  ;;  %v3510_v1 = vld [vmem:[%s6571_s16 + $0xf8] sm:$0xff] }
 0x2e9   : > { %3923 = vst.msk [vmem:[%s6571_s16 + $0x60] sm:$0xff] %vm287_vm4, %v3891_v7  ;;  %v3892_v20 = vmax.f32 %v3860_v45, 0.0  ;;  %3790 = vst.msk [vmem:[%s6571_s16 + $0x88] sm:$0xff] %vm287_vm4, %v3758_v8  ;;  %v3508_v8 = vld [vmem:[%s6571_s16 + $0xe8] sm:$0xff] }
 0x2ea   : > { %3926 = vst.msk [vmem:[%s6571_s16 + $0x78] sm:$0xff] %vm287_vm4, %v3894_v30 }
 0x2eb   : > { %3924 = vst.msk [vmem:[%s6571_s16 + $0x68] sm:$0xff] %vm287_vm4, %v3892_v20  ;;  %v4408_v12 = vpop.f32.mrb[68].mxu0 }
 0x2ec   : > { %v3763_v22 = vadd.f32 %v4408_v12, %v3501_v4  ;;  %v3694_v34 = vpop.f32.mrb[69].mxu0 }
 0x2ed   : > { %v3826_v40 = vld [vmem:[%s6571_s16 + $0x90] sm:$0xff]  ;;  %v3761_v18 = vadd.f32 %v3694_v34, %v3499_v25  ;;  %v4409_v48 = vpop.f32.mrb[70].mxu0 }
 0x2ee   : > { %v3865_v14 = vadd.f32 %v6983_v9, %v3826_v40  ;;  %v3824_v55 = vld [vmem:[%s6571_s16 + $0x80] sm:$0xff]  ;;  %3795 = vst.msk [vmem:[%s6571_s16 + $0xb0] sm:$0xff] %vm287_vm4, %v3763_v22  ;;  %v3764_v54 = vadd.f32 %v4409_v48, %v3502_v62  ;;  %v3697_v5 = vpop.f32.mrb[71].mxu0 }
 0x2ef   : > { %v3863_v50 = vadd.f32 %v6983_v9, %v3824_v55  ;;  %v3827_v19 = vld [vmem:[%s6571_s16 + $0x98] sm:$0xff]  ;;  %3793 = vst.msk [vmem:[%s6571_s16 + $0xa0] sm:$0xff] %vm287_vm4, %v3761_v18  ;;  %v3762_v53 = vadd.f32 %v3697_v5, %v3500_v51 }
 0x2f0   : > { %v3897_v46 = vmax.f32 %v3865_v14, 0.0  ;;  %v3866_v42 = vadd.f32 %v6983_v9, %v3827_v19  ;;  %v3825_v6 = vld [vmem:[%s6571_s16 + $0x88] sm:$0xff]  ;;  %3796 = vst.msk [vmem:[%s6571_s16 + $0xb8] sm:$0xff] %vm287_vm4, %v3764_v54 }
 0x2f1   : > { %v3895_v31 = vmax.f32 %v3863_v50, 0.0  ;;  %v3864_v2 = vadd.f32 %v6983_v9, %v3825_v6  ;;  %3794 = vst.msk [vmem:[%s6571_s16 + $0xa8] sm:$0xff] %vm287_vm4, %v3762_v53 }
 0x2f2   : > { %3929 = vst.msk [vmem:[%s6571_s16 + $0x90] sm:$0xff] %vm287_vm4, %v3897_v46  ;;  %v3898_v13 = vmax.f32 %v3866_v42, 0.0 }
 0x2f3   : > { %3927 = vst.msk [vmem:[%s6571_s16 + $0x80] sm:$0xff] %vm287_vm4, %v3895_v31  ;;  %v3896_v41 = vmax.f32 %v3864_v2, 0.0  ;;  %v4412_v59 = vpop.f32.mrb[72].mxu0 }
 0x2f4   : > { %3930 = vst.msk [vmem:[%s6571_s16 + $0x98] sm:$0xff] %vm287_vm4, %v3898_v13  ;;  %v3767_v38 = vadd.f32 %v4412_v59, %v3505_v39  ;;  %v3710_v63 = vpop.f32.mrb[73].mxu0 }
 0x2f5   : > { %3928 = vst.msk [vmem:[%s6571_s16 + $0x88] sm:$0xff] %vm287_vm4, %v3896_v41  ;;  %v3830_v24 = vld [vmem:[%s6571_s16 + $0xb0] sm:$0xff]  ;;  %v3765_v21 = vadd.f32 %v3710_v63, %v3503_v56  ;;  %v4413_v61 = vpop.f32.mrb[74].mxu0 }
 0x2f6   : > { %v3869_v43 = vadd.f32 %v6983_v9, %v3830_v24  ;;  %v3828_v33 = vld [vmem:[%s6571_s16 + $0xa0] sm:$0xff]  ;;  %3799 = vst.msk [vmem:[%s6571_s16 + $0xd0] sm:$0xff] %vm287_vm4, %v3767_v38  ;;  %v3768_v11 = vadd.f32 %v4413_v61, %v3506_v32  ;;  %v3713_v3 = vpop.f32.mrb[75].mxu0 }
 0x2f7   : > { %v3867_v29 = vadd.f32 %v6983_v9, %v3828_v33  ;;  %v3831_v37 = vld [vmem:[%s6571_s16 + $0xb8] sm:$0xff]  ;;  %3797 = vst.msk [vmem:[%s6571_s16 + $0xc0] sm:$0xff] %vm287_vm4, %v3765_v21  ;;  %v3766_v52 = vadd.f32 %v3713_v3, %v3504_v58 }
 0x2f8   : > { %v3901_v36 = vmax.f32 %v3869_v43, 0.0  ;;  %v3870_v26 = vadd.f32 %v6983_v9, %v3831_v37  ;;  %v3829_v49 = vld [vmem:[%s6571_s16 + $0xa8] sm:$0xff]  ;;  %3800 = vst.msk [vmem:[%s6571_s16 + $0xd8] sm:$0xff] %vm287_vm4, %v3768_v11 }
 0x2f9   : > { %v3899_v60 = vmax.f32 %v3867_v29, 0.0  ;;  %v3868_v44 = vadd.f32 %v6983_v9, %v3829_v49  ;;  %3798 = vst.msk [vmem:[%s6571_s16 + $0xc8] sm:$0xff] %vm287_vm4, %v3766_v52 }
 0x2fa   : > { %3933 = vst.msk [vmem:[%s6571_s16 + $0xb0] sm:$0xff] %vm287_vm4, %v3901_v36  ;;  %v3902_v57 = vmax.f32 %v3870_v26, 0.0 }
 0x2fb   : > { %3931 = vst.msk [vmem:[%s6571_s16 + $0xa0] sm:$0xff] %vm287_vm4, %v3899_v60  ;;  %v3900_v15 = vmax.f32 %v3868_v44, 0.0  ;;  %v4416_v0 = vpop.f32.mrb[76].mxu0 }
 0x2fc   : > { %3934 = vst.msk [vmem:[%s6571_s16 + $0xb8] sm:$0xff] %vm287_vm4, %v3902_v57  ;;  %v3771_v17 = vadd.f32 %v4416_v0, %v3509_v27  ;;  %v3726_v35 = vpop.f32.mrb[77].mxu0 }
 0x2fd   : > { %3932 = vst.msk [vmem:[%s6571_s16 + $0xa8] sm:$0xff] %vm287_vm4, %v3900_v15  ;;  %v3834_v47 = vld [vmem:[%s6571_s16 + $0xd0] sm:$0xff]  ;;  %v3769_v23 = vadd.f32 %v3726_v35, %v3507_v28  ;;  %v4417_v10 = vpop.f32.mrb[78].mxu0 }
 0x2fe   : > { %v3873_v16 = vadd.f32 %v6983_v9, %v3834_v47  ;;  %v3832_v7 = vld [vmem:[%s6571_s16 + $0xc0] sm:$0xff]  ;;  %3803 = vst.msk [vmem:[%s6571_s16 + $0xf0] sm:$0xff] %vm287_vm4, %v3771_v17  ;;  %v3772_v45 = vadd.f32 %v4417_v10, %v3510_v1  ;;  %v3729_v30 = vpop.f32.mrb[79].mxu0 }
 0x2ff   : > { %v3871_v20 = vadd.f32 %v6983_v9, %v3832_v7  ;;  %v3835_v4 = vld [vmem:[%s6571_s16 + $0xd8] sm:$0xff]  ;;  %3801 = vst.msk [vmem:[%s6571_s16 + $0xe0] sm:$0xff] %vm287_vm4, %v3769_v23  ;;  %v3770_v12 = vadd.f32 %v3729_v30, %v3508_v8 }
 0x300   : > { %v3905_v22 = vmax.f32 %v3873_v16, 0.0  ;;  %v3874_v25 = vadd.f32 %v6983_v9, %v3835_v4  ;;  %v3833_v34 = vld [vmem:[%s6571_s16 + $0xc8] sm:$0xff]  ;;  %3804 = vst.msk [vmem:[%s6571_s16 + $0xf8] sm:$0xff] %vm287_vm4, %v3772_v45 }
 0x301   : > { %v3903_v40 = vmax.f32 %v3871_v20, 0.0  ;;  %v3872_v18 = vadd.f32 %v6983_v9, %v3833_v34  ;;  %3802 = vst.msk [vmem:[%s6571_s16 + $0xe8] sm:$0xff] %vm287_vm4, %v3770_v12 }
 0x302   : > { %3937 = vst.msk [vmem:[%s6571_s16 + $0xd0] sm:$0xff] %vm287_vm4, %v3905_v22  ;;  %v3906_v62 = vmax.f32 %v3874_v25, 0.0 }
 0x303   : > { %3935 = vst.msk [vmem:[%s6571_s16 + $0xc0] sm:$0xff] %vm287_vm4, %v3903_v40  ;;  %v3904_v48 = vmax.f32 %v3872_v18, 0.0 }
 0x304   : > { %3938 = vst.msk [vmem:[%s6571_s16 + $0xd8] sm:$0xff] %vm287_vm4, %v3906_v62 }
 0x305   : > { %3936 = vst.msk [vmem:[%s6571_s16 + $0xc8] sm:$0xff] %vm287_vm4, %v3904_v48  ;;  %v3838_v14 = vld [vmem:[%s6571_s16 + $0xf0] sm:$0xff] }
 0x306   : > { %v3877_v55 = vadd.f32 %v6983_v9, %v3838_v14  ;;  %v3836_v54 = vld [vmem:[%s6571_s16 + $0xe0] sm:$0xff] }
 0x307   : > { %v3875_v51 = vadd.f32 %v6983_v9, %v3836_v54  ;;  %v3839_v5 = vld [vmem:[%s6571_s16 + $0xf8] sm:$0xff] }
 0x308   : > { %v3909_v50 = vmax.f32 %v3877_v55, 0.0  ;;  %v3878_v19 = vadd.f32 %v6983_v9, %v3839_v5  ;;  %v3837_v53 = vld [vmem:[%s6571_s16 + $0xe8] sm:$0xff] }
 0x309   : > { %v3907_v46 = vmax.f32 %v3875_v51, 0.0  ;;  %v3876_v42 = vadd.f32 %v6983_v9, %v3837_v53 }
 0x30a   : > { %3941 = vst.msk [vmem:[%s6571_s16 + $0xf0] sm:$0xff] %vm287_vm4, %v3909_v50  ;;  %v3910_v6 = vmax.f32 %v3878_v19, 0.0 }
 0x30b   : > { %3939 = vst.msk [vmem:[%s6571_s16 + $0xe0] sm:$0xff] %vm287_vm4, %v3907_v46  ;;  %v3908_v31 = vmax.f32 %v3876_v42, 0.0 }
 0x30c   : > { %3942 = vst.msk [vmem:[%s6571_s16 + $0xf8] sm:$0xff] %vm287_vm4, %v3910_v6 }
 0x30d   : > { %3940 = vst.msk [vmem:[%s6571_s16 + $0xe8] sm:$0xff] %vm287_vm4, %v3908_v31 }
 0x30e PF: > { %s15_s20 = sadd.s32 1, %s4489_s20   ;;  %s7302_s18 = smov %s4485_s19 }
 0x30f   : > { %p12_p5 = scmp.ge.s32.totalorder %s15_s20, 4   ;;  %s7303_s19 = smov %s7305_s21 }
 0x311   :  { %14 = sbr.rel (!%p12_p5) target bundleno = 2 (0x2), region = 94 }

</bundles_post_ra>
